<compile_context>
chip_gen: v7x
topology: tpu7x:2x2x1
jax: 0.10.0
libtpu: 0.0.40
codegen_flags: <defaults>
</compile_context>

<pallas_src>
import functools

import jax
import jax.numpy as jnp
from jax.experimental import pallas as pl
from jax.experimental.pallas import tpu as pltpu

EXPANSION = 1            # PreActBlock.expansion
BN_EPS = 1e-5
_VMEM_LIMIT = 32 * 1024 * 1024   # within the default scoped VMEM on v5e/v6e/v7x


# ----------------------------------------------------------------------------
# Kernel 1: fused BatchNorm (eval-mode, folded per-channel scale/bias) + ReLU
# ----------------------------------------------------------------------------
def _bn_relu_kernel(x_ref, scale_ref, bias_ref, o_ref):
    x = x_ref[...].astype(jnp.float32)          # bf16 in HBM, f32 math in vregs
    y = x * scale_ref[...] + bias_ref[...]
    o_ref[...] = jnp.maximum(y, 0.0).astype(o_ref.dtype)


def bn_relu(x_nhwc, bn_params, out_dtype=jnp.bfloat16):
    """out = relu(bn(x)); BN folded into scale/bias. bf16 in, bf16 out."""
    gamma, beta, mean, var = bn_params
    N, H, W, C = x_nhwc.shape
    scale = (gamma * jax.lax.rsqrt(var + BN_EPS)).astype(jnp.float32)
    bias = (beta - mean * scale).astype(jnp.float32)

    x = x_nhwc.astype(jnp.bfloat16)             # halve the HBM read of the activation

    if C < 128 and (W * C) % 128 == 0:
        # Lane-dense layout for narrow channel counts: fold W into the lane axis so
        # stores are full 128-lane vst (not masked partial stores).
        rows, cols = N * H, W * C
        x2 = x.reshape(rows, cols)
        scale2 = jnp.tile(scale, W).reshape(1, cols)
        bias2 = jnp.tile(bias, W).reshape(1, cols)
    else:
        rows, cols = N * H * W, C
        x2 = x.reshape(rows, cols)
        scale2 = scale.reshape(1, C)
        bias2 = bias.reshape(1, C)

    tm = min(rows, 512)
    out = pl.pallas_call(
        _bn_relu_kernel,
        out_shape=jax.ShapeDtypeStruct((rows, cols), out_dtype),
        grid=(pl.cdiv(rows, tm),),              # edge block handled by Pallas masking
        in_specs=[
            pl.BlockSpec((tm, cols), lambda i: (i, 0)),
            pl.BlockSpec((1, cols), lambda i: (0, 0)),
            pl.BlockSpec((1, cols), lambda i: (0, 0)),
        ],
        out_specs=pl.BlockSpec((tm, cols), lambda i: (i, 0)),
        compiler_params=pltpu.CompilerParams(
            dimension_semantics=("parallel",),
            vmem_limit_bytes=_VMEM_LIMIT),
    )(x2, scale2, bias2)
    return out.reshape(N, H, W, C)


# ----------------------------------------------------------------------------
# Phase-split ("space-to-batch") relayout shared by conv1 and the 1x1 shortcut
# ----------------------------------------------------------------------------
def phase_split(x_nhwc, kh, kw, stride, padding):
    """Pad + relayout so every conv tap becomes a static unit-stride window.

    Returns xp of shape (stride*stride, N, Hc, Wc, C) in bf16 with
      xp[a*stride + b, n, i, j, :] == xpad[n, i*stride + a, j*stride + b, :].
    Same byte count as the activation -- no KH*KW im2col blow-up.
    """
    N, H, W, C = x_nhwc.shape
    s = stride
    OH = (H + 2 * padding - kh) // s + 1
    OW = (W + 2 * padding - kw) // s + 1
    Hc = OH + (kh - 1) // s
    Wc = OW + (kw - 1) // s
    pad_h = s * Hc - H - padding
    pad_w = s * Wc - W - padding
    assert pad_h >= 0 and pad_w >= 0
    # TODO(synk): rounding Wc up to the bf16 sublane tile (16) would make per-tap
    # window slices tile-aligned but inflates the x DMA bytes; intentionally skipped.
    xp = jnp.pad(x_nhwc.astype(jnp.bfloat16),
                 ((0, 0), (padding, pad_h), (padding, pad_w), (0, 0)))
    xp = xp.reshape(N, Hc, s, Wc, s, C)
    xp = jnp.transpose(xp, (2, 4, 0, 1, 3, 5)).reshape(s * s, N, Hc, Wc, C)
    meta = dict(stride=s, OH=OH, OW=OW, Hc=Hc, Wc=Wc)
    return xp, meta


# ----------------------------------------------------------------------------
# Kernel 2: fused conv (tap loop inside the kernel) + optional bias/ReLU/residual
# ----------------------------------------------------------------------------
def _pick_channel_tile(c):
    """Largest lane-aligned channel tile (<= 256, v7x-safe) that divides c."""
    if c <= 256:
        return c
    if c % 256 == 0:
        return 256
    if c % 128 == 0:
        return 128
    return c


def _pick_batch_tile(n, ohw, n_cout_tiles, max_rows=2048):
    """Batch-block the conv grid: pick a divisor nb of n so each MXU matmul sees
    nb*ohw rows (target >= 256 to fill the 256-row MXU on v6e/v7x), capped so the
    f32 accumulator stays small (v7x has 64 MiB VMEM), while preserving >= 2
    leading 'parallel' grid tiles so both v7x TensorCores stay busy."""
    divisors = [d for d in range(1, n + 1) if n % d == 0]
    nb = 1
    for d in divisors:
        if d * ohw > max_rows:
            break
        nb = d
        if d * ohw >= 256:
            break
    while nb > 1 and (n // nb) * n_cout_tiles < 2:
        nb = max(d for d in divisors if d < nb)
    return nb


def _make_conv_kernel(taps, oh, ow, has_bias, relu, has_res):
    """taps: list of (phase_index_within_block, row_offset, col_offset)."""

    def kernel(*refs):
        x_ref, w_ref = refs[0], refs[1]
        idx = 2
        bias_ref = res_ref = None
        if has_bias:
            bias_ref = refs[idx]
            idx += 1
        if has_res:
            res_ref = refs[idx]
            idx += 1
        o_ref = refs[idx]
        acc_ref = refs[idx + 1]

        kc = pl.program_id(2)                  # Cin (reduction) axis -- last grid axis

        @pl.when(kc == 0)
        def _():
            acc_ref[...] = jnp.zeros_like(acc_ref)

        nb = x_ref.shape[1]
        ck = x_ref.shape[-1]
        acc = acc_ref[...]
        # Unrolled tap loop: each tap is one bf16 MXU matmul with f32 accumulation;
        # the batch-blocked view gives nb*oh*ow rows per matmul.
        for t, (ph, u0, v0) in enumerate(taps):
            xi = x_ref[ph, :, pl.ds(u0, oh), pl.ds(v0, ow), :]   # (nb, oh, ow, ck)
            a2d = xi.reshape(nb * oh * ow, ck)
            acc = acc + jnp.dot(a2d, w_ref[t], preferred_element_type=jnp.float32)
        acc_ref[...] = acc

        @pl.when(kc == pl.num_programs(2) - 1)
        def _():
            out = acc
            # Epilogue order is bias -> ReLU -> residual; relu and residual are never
            # requested together for this block.
            if has_bias:
                out = out + bias_ref[...]
            if relu:
                out = jnp.maximum(out, 0.0)
            if has_res:
                out = out + res_ref[...].reshape(out.shape).astype(jnp.float32)
            o_ref[...] = out.reshape(o_ref.shape).astype(o_ref.dtype)

    return kernel


def conv_on_phases(xp, meta, w_taps, taps, *, bias=None, relu=False, residual=None,
                   out_dtype=jnp.bfloat16):
    """out = [relu](sum_t window_t(xp) @ w_taps[t] + bias) + residual, one kernel.

    xp:     (s*s, N, Hc, Wc, Cin) phase-split activation (bf16), from phase_split.
    w_taps: (T, Cin, Cout) weight, one (Cin, Cout) matrix per tap.
    taps:   list of (ti, tj) spatial offsets in the padded-input geometry.
    """
    P, N, Hc, Wc, Cin = xp.shape
    T, Cin2, Cout = w_taps.shape
    assert Cin2 == Cin and T == len(taps)
    s, OH, OW = meta["stride"], meta["OH"], meta["OW"]

    # A single-tap conv (the 1x1 shortcut) only touches one phase, so stream just
    # that slab instead of all s*s phases.
    phases = sorted({(ti % s) * s + (tj % s) for (ti, tj) in taps})
    if len(phases) == 1:
        ph_base, ph_len = phases[0], 1
    else:
        ph_base, ph_len = 0, P
    kernel_taps = [((ti % s) * s + (tj % s) - ph_base, ti // s, tj // s)
                   for (ti, tj) in taps]

    cn = _pick_channel_tile(Cout)
    ck = _pick_channel_tile(Cin)
    n_co = Cout // cn
    nb = _pick_batch_tile(N, OH * OW, n_co)
    grid = (N // nb, n_co, Cin // ck)

    in_specs = [
        pl.BlockSpec((ph_len, nb, Hc, Wc, ck),
                     lambda b, co, kc, _p=ph_base: (_p, b, 0, 0, kc)),
        pl.BlockSpec((T, ck, cn), lambda b, co, kc: (0, kc, co)),
    ]
    args = [xp, w_taps.astype(jnp.bfloat16)]
    if bias is not None:
        in_specs.append(pl.BlockSpec((1, cn), lambda b, co, kc: (0, co)))
        args.append(bias.reshape(1, Cout).astype(jnp.float32))
    if residual is not None:
        assert residual.shape[-1] == Cout
        in_specs.append(pl.BlockSpec((nb, OH * OW, cn), lambda b, co, kc: (b, 0, co)))
        args.append(residual.reshape(N, OH * OW, Cout).astype(jnp.bfloat16))

    kernel = _make_conv_kernel(kernel_taps, OH, OW,
                               has_bias=bias is not None, relu=relu,
                               has_res=residual is not None)

    out = pl.pallas_call(
        kernel,
        out_shape=jax.ShapeDtypeStruct((N, OH * OW, Cout), out_dtype),
        grid=grid,
        in_specs=in_specs,
        out_specs=pl.BlockSpec((nb, OH * OW, cn), lambda b, co, kc: (b, 0, co)),
        scratch_shapes=[pltpu.VMEM((nb * OH * OW, cn), jnp.float32)],
        compiler_params=pltpu.CompilerParams(
            dimension_semantics=("parallel", "parallel", "arbitrary"),
            vmem_limit_bytes=_VMEM_LIMIT),
    )(*args)
    return out.reshape(N, OH, OW, Cout)


def _full_kernel_taps(w_oihw):
    """All KHxKW taps of an OIHW conv weight -> (taps, (KH*KW, Cin, Cout))."""
    Cout, Cin, KH, KW = w_oihw.shape
    taps = [(i, j) for i in range(KH) for j in range(KW)]
    wt = jnp.transpose(w_oihw, (2, 3, 1, 0)).reshape(KH * KW, Cin, Cout)
    return taps, wt


# ----------------------------------------------------------------------------
# Parameter init (PyTorch-like shapes, deterministic)
# ----------------------------------------------------------------------------
def init_bn(key, c):
    kg, kb, km, kv = jax.random.split(key, 4)
    gamma = jax.random.uniform(kg, (c,), jnp.float32, 0.5, 1.5)
    beta = 0.1 * jax.random.normal(kb, (c,), jnp.float32)
    mean = 0.1 * jax.random.normal(km, (c,), jnp.float32)
    var = jax.random.uniform(kv, (c,), jnp.float32, 0.5, 1.5)
    return (gamma, beta, mean, var)


def init_conv(key, cout, cin, kh, kw):
    fan_in = cin * kh * kw
    return jax.random.normal(key, (cout, cin, kh, kw), jnp.float32) * (2.0 / fan_in) ** 0.5


def init_preact_block(key, in_planes, planes, stride):
    k1, k2, k3, k4, k5 = jax.random.split(key, 5)
    p = {
        "stride": stride,
        "bn1": init_bn(k1, in_planes),
        "conv1_w": init_conv(k2, planes, in_planes, 3, 3),
        "bn2": init_bn(k3, planes),
        "conv2_w": init_conv(k4, planes, planes, 3, 3),
    }
    if stride != 1 or in_planes != EXPANSION * planes:
        p["shortcut_w"] = init_conv(k5, EXPANSION * planes, in_planes, 1, 1)
    return p


# ----------------------------------------------------------------------------
# PreActBlock forward (Pallas) -- mirrors the PyTorch module's forward
# ----------------------------------------------------------------------------
def preact_block_forward(params, x_nchw):
    stride = params["stride"]
    x = jnp.transpose(x_nchw, (0, 2, 3, 1))            # NCHW -> NHWC

    # out = relu(bn1(x))  -- one fused Pallas pass, bf16 in / bf16 out
    pre1 = bn_relu(x, params["bn1"])                   # (N, H, W, Cin) bf16

    # Single phase-split relayout of pre1, shared by conv1 AND the 1x1 shortcut.
    xp1, meta1 = phase_split(pre1, 3, 3, stride, 1)

    # shortcut = shortcut(out): identity, or 1x1 conv (stride s) of the pre-activation.
    if "shortcut_w" in params:
        # The 1x1/stride-s shortcut is exactly the centre tap (1,1) of conv1's
        # 3x3/pad-1 geometry, so it reuses xp1 (streaming only one phase) and its
        # result stays in bf16 for the fused residual add in conv2.
        w_sc = params["shortcut_w"]                              # (Cout, Cin, 1, 1)
        w_sc_t = jnp.transpose(w_sc[:, :, 0, 0], (1, 0))[None]   # (1, Cin, Cout)
        shortcut = conv_on_phases(xp1, meta1, w_sc_t, [(1, 1)],
                                  out_dtype=jnp.bfloat16)
    else:
        shortcut = pre1                                  # identity shortcut (bf16)

    # conv1 (3x3, stride s) with bn2's scale folded into the weight columns and
    # bias2 + ReLU fused in the epilogue  ->  relu(bn2(conv1(out)))
    g2, b2, m2, v2 = params["bn2"]
    scale2 = g2 * jax.lax.rsqrt(v2 + BN_EPS)
    bias2 = b2 - m2 * scale2
    taps1, w1t = _full_kernel_taps(params["conv1_w"] * scale2[:, None, None, None])
    pre2 = conv_on_phases(xp1, meta1, w1t, taps1, bias=bias2, relu=True,
                          out_dtype=jnp.bfloat16)        # (N, OH, OW, planes) bf16

    # conv2 (3x3, stride 1) with the residual add fused in; NO final ReLU.
    xp2, meta2 = phase_split(pre2, 3, 3, 1, 1)
    taps2, w2t = _full_kernel_taps(params["conv2_w"])
    out = conv_on_phases(xp2, meta2, w2t, taps2, residual=shortcut,
                         out_dtype=jnp.float32)

    # NHWC -> NCHW (f32) to match the PyTorch module's output layout/dtype.
    # TODO(synk): a fused consumer could take the NHWC/bf16 output directly and skip
    # this extra f32 HBM pass.
    return jnp.transpose(out, (0, 3, 1, 2))


# ----------------------------------------------------------------------------
# Pure-JAX (XLA, f32) reference for correctness checking
# ----------------------------------------------------------------------------
def preact_block_ref(params, x_nchw):
    def bn(h, p):
        g, b, m, v = p
        return (h - m) * jax.lax.rsqrt(v + BN_EPS) * g + b

    def conv(h, w_oihw, stride, pad):
        w = jnp.transpose(w_oihw, (2, 3, 1, 0))   # OIHW -> HWIO
        return jax.lax.conv_general_dilated(
            h, w, window_strides=(stride, stride),
            padding=[(pad, pad), (pad, pad)],
            dimension_numbers=("NHWC", "HWIO", "NHWC"))

    s = params["stride"]
    x = jnp.transpose(x_nchw, (0, 2, 3, 1)).astype(jnp.float32)
    out = jax.nn.relu(bn(x, params["bn1"]))
    sc = conv(out, params["shortcut_w"], s, 0) if "shortcut_w" in params else out
    out = conv(out, params["conv1_w"], s, 1)
    out = conv(jax.nn.relu(bn(out, params["bn2"])), params["conv2_w"], 1, 1)
    return jnp.transpose(out + sc, (0, 3, 1, 2))


if __name__ == "__main__":
    key = jax.random.PRNGKey(0)
    kp1, kp2, kx1, kx2 = jax.random.split(key, 4)

    # --- Case 1: downsampling PreActBlock (stride 2 -> 1x1 conv shortcut) ------
    in_planes, planes = 64, 128
    params1 = init_preact_block(kp1, in_planes, planes, stride=2)
    x1 = jax.random.normal(kx1, (2, in_planes, 16, 16), jnp.float32)

    fwd1 = jax.jit(functools.partial(preact_block_forward, params1))
    y1 = jax.block_until_ready(fwd1(x1))
    assert y1.shape == (2, planes, 8, 8)
    assert bool(jnp.all(jnp.isfinite(y1)))
    err1 = float(jnp.max(jnp.abs(y1 - preact_block_ref(params1, x1))))
    assert err1 < 0.25, f"downsample block mismatch: max|err|={err1}"

    # --- Case 2: identity-shortcut PreActBlock (stride 1, in == out planes) ----
    params2 = init_preact_block(kp2, planes, planes, stride=1)
    x2 = jax.random.normal(kx2, (2, planes, 8, 8), jnp.float32)

    fwd2 = jax.jit(functools.partial(preact_block_forward, params2))
    y2 = jax.block_until_ready(fwd2(x2))
    assert y2.shape == (2, planes, 8, 8)
    assert bool(jnp.all(jnp.isfinite(y2)))
    err2 = float(jnp.max(jnp.abs(y2 - preact_block_ref(params2, x2))))
    assert err2 < 0.25, f"identity block mismatch: max|err|={err2}"

    print("KERNEL_OK")
</pallas_src>

<mosaic_0001>
module attributes {stable_mosaic.version = 11 : i64} {
  func.func @_bn_relu_kernel(%arg0: i32, %arg1: memref<32x1024xbf16, #tpu.memory_space<vmem>>, %arg2: memref<1x1024xf32, #tpu.memory_space<vmem>>, %arg3: memref<1x1024xf32, #tpu.memory_space<vmem>>, %arg4: memref<32x1024xbf16, #tpu.memory_space<vmem>>) attributes {dimension_semantics = [#tpu.dimension_semantics<parallel>], iteration_bounds = array<i64: 1>, scalar_prefetch = 0 : i64, scratch_operands = 0 : i64, tpu.core_type = #tpu.core_type<tc>, window_params = [{transform_indices = @transform_0, window_bounds = array<i64: 32, 1024>}, {pipeline_mode = #tpu.pipeline_mode<synchronous>, transform_indices = @transform_1, window_bounds = array<i64: 1, 1024>}, {pipeline_mode = #tpu.pipeline_mode<synchronous>, transform_indices = @transform_2, window_bounds = array<i64: 1, 1024>}, {transform_indices = @transform_3, window_bounds = array<i64: 32, 1024>}]} {
    %c0 = arith.constant 0 : index
    %c0_0 = arith.constant 0 : index
    %0 = vector.load %arg1[%c0, %c0_0] : memref<32x1024xbf16, #tpu.memory_space<vmem>>, vector<32x1024xbf16>
    %1 = arith.extf %0 : vector<32x1024xbf16> to vector<32x1024xf32>
    %c0_1 = arith.constant 0 : index
    %c0_2 = arith.constant 0 : index
    %2 = vector.load %arg2[%c0_1, %c0_2] : memref<1x1024xf32, #tpu.memory_space<vmem>>, vector<1x1024xf32>
    %3 = vector.broadcast %2 : vector<1x1024xf32> to vector<32x1024xf32>
    %4 = arith.mulf %1, %3 : vector<32x1024xf32>
    %c0_3 = arith.constant 0 : index
    %c0_4 = arith.constant 0 : index
    %5 = vector.load %arg3[%c0_3, %c0_4] : memref<1x1024xf32, #tpu.memory_space<vmem>>, vector<1x1024xf32>
    %6 = vector.broadcast %5 : vector<1x1024xf32> to vector<32x1024xf32>
    %7 = arith.addf %4, %6 : vector<32x1024xf32>
    %cst = arith.constant 0.000000e+00 : f32
    %8 = vector.broadcast %cst : f32 to vector<32x1024xf32>
    %9 = arith.maximumf %7, %8 : vector<32x1024xf32>
    %10 = arith.truncf %9 : vector<32x1024xf32> to vector<32x1024xbf16>
    %c0_5 = arith.constant 0 : index
    %c0_6 = arith.constant 0 : index
    %11 = vector.load %arg4[%c0_5, %c0_6] : memref<32x1024xbf16, #tpu.memory_space<vmem>>, vector<32x1024xbf16>
    tpu.vector_store %arg4[%c0_5, %c0_6], %10 {strides = array<i32>} : memref<32x1024xbf16, #tpu.memory_space<vmem>>, vector<32x1024xbf16>,
    return
  }
  func.func @transform_0(%arg0: i32) -> (i32, i32) {
    %c0_i32 = arith.constant 0 : i32
    %c0_i32_0 = arith.constant 0 : i32
    return %arg0, %c0_i32 : i32, i32
  }
  func.func @transform_1(%arg0: i32) -> (i32, i32) {
    %c0_i32 = arith.constant 0 : i32
    %c0_i32_0 = arith.constant 0 : i32
    %c0_i32_1 = arith.constant 0 : i32
    return %c0_i32, %c0_i32_0 : i32, i32
  }
  func.func @transform_2(%arg0: i32) -> (i32, i32) {
    %c0_i32 = arith.constant 0 : i32
    %c0_i32_0 = arith.constant 0 : i32
    %c0_i32_1 = arith.constant 0 : i32
    return %c0_i32, %c0_i32_0 : i32, i32
  }
  func.func @transform_3(%arg0: i32) -> (i32, i32) {
    %c0_i32 = arith.constant 0 : i32
    %c0_i32_0 = arith.constant 0 : i32
    return %arg0, %c0_i32 : i32, i32
  }
}

module attributes {stable_mosaic.version = 11 : i64} {
  func.func @kernel(%arg0: i32, %arg1: i32, %arg2: i32, %arg3: memref<1x1x9x9x64xbf16, #tpu.memory_space<vmem>>, %arg4: memref<1x64x128xbf16, #tpu.memory_space<vmem>>, %arg5: memref<1x64x128xbf16, #tpu.memory_space<vmem>>, %arg6: memref<64x128xf32, #tpu.memory_space<vmem>>) attributes {dimension_semantics = [#tpu.dimension_semantics<parallel>, #tpu.dimension_semantics<parallel>, #tpu.dimension_semantics<arbitrary>], iteration_bounds = array<i64: 2, 1, 1>, scalar_prefetch = 0 : i64, scratch_operands = 1 : i64, tpu.core_type = #tpu.core_type<tc>, window_params = [{transform_indices = @transform_0, window_bounds = array<i64: 1, 1, 9, 9, 64>}, {transform_indices = @transform_1, window_bounds = array<i64: 1, 64, 128>}, {transform_indices = @transform_2, window_bounds = array<i64: 1, 64, 128>}]} {
    %c0_i32 = arith.constant 0 : i32
    %0 = arith.cmpi eq, %arg2, %c0_i32 : i32
    %1 = arith.extui %0 : i1 to i32
    %c0_i32_0 = arith.constant 0 : i32
    %2 = arith.cmpi ne, %1, %c0_i32_0 : i32
    scf.if %2 {
      %cst_14 = arith.constant 0.000000e+00 : f32
      %15 = vector.broadcast %cst_14 : f32 to vector<64x128xf32>
      %c0_15 = arith.constant 0 : index
      %c0_16 = arith.constant 0 : index
      %16 = vector.load %arg6[%c0_15, %c0_16] : memref<64x128xf32, #tpu.memory_space<vmem>>, vector<64x128xf32>
      tpu.vector_store %arg6[%c0_15, %c0_16], %15 {strides = array<i32>} : memref<64x128xf32, #tpu.memory_space<vmem>>, vector<64x128xf32>,
    } else {
    }
    %c0 = arith.constant 0 : index
    %c0_1 = arith.constant 0 : index
    %3 = vector.load %arg6[%c0, %c0_1] : memref<64x128xf32, #tpu.memory_space<vmem>>, vector<64x128xf32>
    %c0_2 = arith.constant 0 : index
    %c0_3 = arith.constant 0 : index
    %c0_4 = arith.constant 0 : index
    %c0_5 = arith.constant 0 : index
    %c0_6 = arith.constant 0 : index
    %4 = vector.load %arg3[%c0_2, %c0_3, %c0_4, %c0_5, %c0_6] : memref<1x1x9x9x64xbf16, #tpu.memory_space<vmem>>, vector<1x1x8x8x64xbf16>
    %5 = vector.shape_cast %4 : vector<1x1x8x8x64xbf16> to vector<1x8x8x64xbf16>
    %6 = vector.shape_cast %5 : vector<1x8x8x64xbf16> to vector<64x64xbf16>
    %c0_7 = arith.constant 0 : index
    %c0_8 = arith.constant 0 : index
    %c0_9 = arith.constant 0 : index
    %7 = vector.load %arg4[%c0_7, %c0_8, %c0_9] : memref<1x64x128xbf16, #tpu.memory_space<vmem>>, vector<1x64x128xbf16>
    %8 = vector.shape_cast %7 : vector<1x64x128xbf16> to vector<64x128xbf16>
    %cst = arith.constant dense<0.000000e+00> : vector<64x128xf32>
    %9 = tpu.matmul %6, %8, %cst {dimension_numbers = #tpu.dot_dimension_numbers<[1], [0], [0], [1], [0, 0, 1, 1], [], []>} : vector<64x64xbf16>, vector<64x128xbf16>, vector<64x128xf32> -> vector<64x128xf32>
    %10 = arith.addf %3, %9 : vector<64x128xf32>
    %c0_10 = arith.constant 0 : index
    %c0_11 = arith.constant 0 : index
    %11 = vector.load %arg6[%c0_10, %c0_11] : memref<64x128xf32, #tpu.memory_space<vmem>>, vector<64x128xf32>
    tpu.vector_store %arg6[%c0_10, %c0_11], %10 {strides = array<i32>} : memref<64x128xf32, #tpu.memory_space<vmem>>, vector<64x128xf32>,
    %c0_i32_12 = arith.constant 0 : i32
    %12 = arith.cmpi eq, %arg2, %c0_i32_12 : i32
    %13 = arith.extui %12 : i1 to i32
    %c0_i32_13 = arith.constant 0 : i32
    %14 = arith.cmpi ne, %13, %c0_i32_13 : i32
    scf.if %14 {
      %15 = vector.shape_cast %10 : vector<64x128xf32> to vector<1x64x128xf32>
      %16 = arith.truncf %15 : vector<1x64x128xf32> to vector<1x64x128xbf16>
      %c0_14 = arith.constant 0 : index
      %c0_15 = arith.constant 0 : index
      %c0_16 = arith.constant 0 : index
      %17 = vector.load %arg5[%c0_14, %c0_15, %c0_16] : memref<1x64x128xbf16, #tpu.memory_space<vmem>>, vector<1x64x128xbf16>
      tpu.vector_store %arg5[%c0_14, %c0_15, %c0_16], %16 {strides = array<i32>} : memref<1x64x128xbf16, #tpu.memory_space<vmem>>, vector<1x64x128xbf16>,
    } else {
    }
    return
  }
  func.func @transform_0(%arg0: i32, %arg1: i32, %arg2: i32) -> (i32, i32, i32, i32, i32) {
    %c3_i32 = arith.constant 3 : i32
    %c0_i32 = arith.constant 0 : i32
    %c0_i32_0 = arith.constant 0 : i32
    %c0_i32_1 = arith.constant 0 : i32
    return %c3_i32, %arg0, %c0_i32, %c0_i32_0, %arg2 : i32, i32, i32, i32, i32
  }
  func.func @transform_1(%arg0: i32, %arg1: i32, %arg2: i32) -> (i32, i32, i32) {
    %c0_i32 = arith.constant 0 : i32
    %c0_i32_0 = arith.constant 0 : i32
    return %c0_i32, %arg2, %arg1 : i32, i32, i32
  }
  func.func @transform_2(%arg0: i32, %arg1: i32, %arg2: i32) -> (i32, i32, i32) {
    %c0_i32 = arith.constant 0 : i32
    %c0_i32_0 = arith.constant 0 : i32
    return %arg0, %c0_i32, %arg1 : i32, i32, i32
  }
}

module attributes {stable_mosaic.version = 11 : i64} {
  func.func @kernel(%arg0: i32, %arg1: i32, %arg2: i32, %arg3: memref<4x1x9x9x64xbf16, #tpu.memory_space<vmem>>, %arg4: memref<9x64x128xbf16, #tpu.memory_space<vmem>>, %arg5: memref<1x128xf32, #tpu.memory_space<vmem>>, %arg6: memref<1x64x128xbf16, #tpu.memory_space<vmem>>, %arg7: memref<64x128xf32, #tpu.memory_space<vmem>>) attributes {dimension_semantics = [#tpu.dimension_semantics<parallel>, #tpu.dimension_semantics<parallel>, #tpu.dimension_semantics<arbitrary>], iteration_bounds = array<i64: 2, 1, 1>, scalar_prefetch = 0 : i64, scratch_operands = 1 : i64, tpu.core_type = #tpu.core_type<tc>, window_params = [{transform_indices = @transform_0, window_bounds = array<i64: 4, 1, 9, 9, 64>}, {transform_indices = @transform_1, window_bounds = array<i64: 9, 64, 128>}, {transform_indices = @transform_2, window_bounds = array<i64: 1, 128>}, {transform_indices = @transform_3, window_bounds = array<i64: 1, 64, 128>}]} {
    %c0_i32 = arith.constant 0 : i32
    %0 = arith.cmpi eq, %arg2, %c0_i32 : i32
    %1 = arith.extui %0 : i1 to i32
    %c0_i32_0 = arith.constant 0 : i32
    %2 = arith.cmpi ne, %1, %c0_i32_0 : i32
    scf.if %2 {
      %cst_78 = arith.constant 0.000000e+00 : f32
      %71 = vector.broadcast %cst_78 : f32 to vector<64x128xf32>
      %c0_79 = arith.constant 0 : index
      %c0_80 = arith.constant 0 : index
      %72 = vector.load %arg7[%c0_79, %c0_80] : memref<64x128xf32, #tpu.memory_space<vmem>>, vector<64x128xf32>
      tpu.vector_store %arg7[%c0_79, %c0_80], %71 {strides = array<i32>} : memref<64x128xf32, #tpu.memory_space<vmem>>, vector<64x128xf32>,
    } else {
    }
    %c0 = arith.constant 0 : index
    %c0_1 = arith.constant 0 : index
    %3 = vector.load %arg7[%c0, %c0_1] : memref<64x128xf32, #tpu.memory_space<vmem>>, vector<64x128xf32>
    %c0_2 = arith.constant 0 : index
    %c0_3 = arith.constant 0 : index
    %c0_4 = arith.constant 0 : index
    %c0_5 = arith.constant 0 : index
    %c0_6 = arith.constant 0 : index
    %4 = vector.load %arg3[%c0_2, %c0_3, %c0_4, %c0_5, %c0_6] : memref<4x1x9x9x64xbf16, #tpu.memory_space<vmem>>, vector<1x1x8x8x64xbf16>
    %5 = vector.shape_cast %4 : vector<1x1x8x8x64xbf16> to vector<1x8x8x64xbf16>
    %6 = vector.shape_cast %5 : vector<1x8x8x64xbf16> to vector<64x64xbf16>
    %c0_7 = arith.constant 0 : index
    %c0_8 = arith.constant 0 : index
    %c0_9 = arith.constant 0 : index
    %7 = vector.load %arg4[%c0_7, %c0_8, %c0_9] : memref<9x64x128xbf16, #tpu.memory_space<vmem>>, vector<1x64x128xbf16>
    %8 = vector.shape_cast %7 : vector<1x64x128xbf16> to vector<64x128xbf16>
    %cst = arith.constant dense<0.000000e+00> : vector<64x128xf32>
    %9 = tpu.matmul %6, %8, %cst {dimension_numbers = #tpu.dot_dimension_numbers<[1], [0], [0], [1], [0, 0, 1, 1], [], []>} : vector<64x64xbf16>, vector<64x128xbf16>, vector<64x128xf32> -> vector<64x128xf32>
    %10 = arith.addf %3, %9 : vector<64x128xf32>
    %c1 = arith.constant 1 : index
    %c0_10 = arith.constant 0 : index
    %c0_11 = arith.constant 0 : index
    %c0_12 = arith.constant 0 : index
    %c0_13 = arith.constant 0 : index
    %11 = vector.load %arg3[%c1, %c0_10, %c0_11, %c0_12, %c0_13] : memref<4x1x9x9x64xbf16, #tpu.memory_space<vmem>>, vector<1x1x8x8x64xbf16>
    %12 = vector.shape_cast %11 : vector<1x1x8x8x64xbf16> to vector<1x8x8x64xbf16>
    %13 = vector.shape_cast %12 : vector<1x8x8x64xbf16> to vector<64x64xbf16>
    %c1_14 = arith.constant 1 : index
    %c0_15 = arith.constant 0 : index
    %c0_16 = arith.constant 0 : index
    %14 = vector.load %arg4[%c1_14, %c0_15, %c0_16] : memref<9x64x128xbf16, #tpu.memory_space<vmem>>, vector<1x64x128xbf16>
    %15 = vector.shape_cast %14 : vector<1x64x128xbf16> to vector<64x128xbf16>
    %cst_17 = arith.constant dense<0.000000e+00> : vector<64x128xf32>
    %16 = tpu.matmul %13, %15, %cst_17 {dimension_numbers = #tpu.dot_dimension_numbers<[1], [0], [0], [1], [0, 0, 1, 1], [], []>} : vector<64x64xbf16>, vector<64x128xbf16>, vector<64x128xf32> -> vector<64x128xf32>
    %17 = arith.addf %10, %16 : vector<64x128xf32>
    %c0_18 = arith.constant 0 : index
    %c0_19 = arith.constant 0 : index
    %c0_20 = arith.constant 0 : index
    %c1_21 = arith.constant 1 : index
    %c0_22 = arith.constant 0 : index
    %18 = vector.load %arg3[%c0_18, %c0_19, %c0_20, %c1_21, %c0_22] : memref<4x1x9x9x64xbf16, #tpu.memory_space<vmem>>, vector<1x1x8x8x64xbf16>
    %19 = vector.shape_cast %18 : vector<1x1x8x8x64xbf16> to vector<1x8x8x64xbf16>
    %20 = vector.shape_cast %19 : vector<1x8x8x64xbf16> to vector<64x64xbf16>
    %c2 = arith.constant 2 : index
    %c0_23 = arith.constant 0 : index
    %c0_24 = arith.constant 0 : index
    %21 = vector.load %arg4[%c2, %c0_23, %c0_24] : memref<9x64x128xbf16, #tpu.memory_space<vmem>>, vector<1x64x128xbf16>
    %22 = vector.shape_cast %21 : vector<1x64x128xbf16> to vector<64x128xbf16>
    %cst_25 = arith.constant dense<0.000000e+00> : vector<64x128xf32>
    %23 = tpu.matmul %20, %22, %cst_25 {dimension_numbers = #tpu.dot_dimension_numbers<[1], [0], [0], [1], [0, 0, 1, 1], [], []>} : vector<64x64xbf16>, vector<64x128xbf16>, vector<64x128xf32> -> vector<64x128xf32>
    %24 = arith.addf %17, %23 : vector<64x128xf32>
    %c2_26 = arith.constant 2 : index
    %c0_27 = arith.constant 0 : index
    %c0_28 = arith.constant 0 : index
    %c0_29 = arith.constant 0 : index
    %c0_30 = arith.constant 0 : index
    %25 = vector.load %arg3[%c2_26, %c0_27, %c0_28, %c0_29, %c0_30] : memref<4x1x9x9x64xbf16, #tpu.memory_space<vmem>>, vector<1x1x8x8x64xbf16>
    %26 = vector.shape_cast %25 : vector<1x1x8x8x64xbf16> to vector<1x8x8x64xbf16>
    %27 = vector.shape_cast %26 : vector<1x8x8x64xbf16> to vector<64x64xbf16>
    %c3 = arith.constant 3 : index
    %c0_31 = arith.constant 0 : index
    %c0_32 = arith.constant 0 : index
    %28 = vector.load %arg4[%c3, %c0_31, %c0_32] : memref<9x64x128xbf16, #tpu.memory_space<vmem>>, vector<1x64x128xbf16>
    %29 = vector.shape_cast %28 : vector<1x64x128xbf16> to vector<64x128xbf16>
    %cst_33 = arith.constant dense<0.000000e+00> : vector<64x128xf32>
    %30 = tpu.matmul %27, %29, %cst_33 {dimension_numbers = #tpu.dot_dimension_numbers<[1], [0], [0], [1], [0, 0, 1, 1], [], []>} : vector<64x64xbf16>, vector<64x128xbf16>, vector<64x128xf32> -> vector<64x128xf32>
    %31 = arith.addf %24, %30 : vector<64x128xf32>
    %c3_34 = arith.constant 3 : index
    %c0_35 = arith.constant 0 : index
    %c0_36 = arith.constant 0 : index
    %c0_37 = arith.constant 0 : index
    %c0_38 = arith.constant 0 : index
    %32 = vector.load %arg3[%c3_34, %c0_35, %c0_36, %c0_37, %c0_38] : memref<4x1x9x9x64xbf16, #tpu.memory_space<vmem>>, vector<1x1x8x8x64xbf16>
    %33 = vector.shape_cast %32 : vector<1x1x8x8x64xbf16> to vector<1x8x8x64xbf16>
    %34 = vector.shape_cast %33 : vector<1x8x8x64xbf16> to vector<64x64xbf16>
    %c4 = arith.constant 4 : index
    %c0_39 = arith.constant 0 : index
    %c0_40 = arith.constant 0 : index
    %35 = vector.load %arg4[%c4, %c0_39, %c0_40] : memref<9x64x128xbf16, #tpu.memory_space<vmem>>, vector<1x64x128xbf16>
    %36 = vector.shape_cast %35 : vector<1x64x128xbf16> to vector<64x128xbf16>
    %cst_41 = arith.constant dense<0.000000e+00> : vector<64x128xf32>
    %37 = tpu.matmul %34, %36, %cst_41 {dimension_numbers = #tpu.dot_dimension_numbers<[1], [0], [0], [1], [0, 0, 1, 1], [], []>} : vector<64x64xbf16>, vector<64x128xbf16>, vector<64x128xf32> -> vector<64x128xf32>
    %38 = arith.addf %31, %37 : vector<64x128xf32>
    %c2_42 = arith.constant 2 : index
    %c0_43 = arith.constant 0 : index
    %c0_44 = arith.constant 0 : index
    %c1_45 = arith.constant 1 : index
    %c0_46 = arith.constant 0 : index
    %39 = vector.load %arg3[%c2_42, %c0_43, %c0_44, %c1_45, %c0_46] : memref<4x1x9x9x64xbf16, #tpu.memory_space<vmem>>, vector<1x1x8x8x64xbf16>
    %40 = vector.shape_cast %39 : vector<1x1x8x8x64xbf16> to vector<1x8x8x64xbf16>
    %41 = vector.shape_cast %40 : vector<1x8x8x64xbf16> to vector<64x64xbf16>
    %c5 = arith.constant 5 : index
    %c0_47 = arith.constant 0 : index
    %c0_48 = arith.constant 0 : index
    %42 = vector.load %arg4[%c5, %c0_47, %c0_48] : memref<9x64x128xbf16, #tpu.memory_space<vmem>>, vector<1x64x128xbf16>
    %43 = vector.shape_cast %42 : vector<1x64x128xbf16> to vector<64x128xbf16>
    %cst_49 = arith.constant dense<0.000000e+00> : vector<64x128xf32>
    %44 = tpu.matmul %41, %43, %cst_49 {dimension_numbers = #tpu.dot_dimension_numbers<[1], [0], [0], [1], [0, 0, 1, 1], [], []>} : vector<64x64xbf16>, vector<64x128xbf16>, vector<64x128xf32> -> vector<64x128xf32>
    %45 = arith.addf %38, %44 : vector<64x128xf32>
    %c0_50 = arith.constant 0 : index
    %c0_51 = arith.constant 0 : index
    %c1_52 = arith.constant 1 : index
    %c0_53 = arith.constant 0 : index
    %c0_54 = arith.constant 0 : index
    %46 = vector.load %arg3[%c0_50, %c0_51, %c1_52, %c0_53, %c0_54] : memref<4x1x9x9x64xbf16, #tpu.memory_space<vmem>>, vector<1x1x8x8x64xbf16>
    %47 = vector.shape_cast %46 : vector<1x1x8x8x64xbf16> to vector<1x8x8x64xbf16>
    %48 = vector.shape_cast %47 : vector<1x8x8x64xbf16> to vector<64x64xbf16>
    %c6 = arith.constant 6 : index
    %c0_55 = arith.constant 0 : index
    %c0_56 = arith.constant 0 : index
    %49 = vector.load %arg4[%c6, %c0_55, %c0_56] : memref<9x64x128xbf16, #tpu.memory_space<vmem>>, vector<1x64x128xbf16>
    %50 = vector.shape_cast %49 : vector<1x64x128xbf16> to vector<64x128xbf16>
    %cst_57 = arith.constant dense<0.000000e+00> : vector<64x128xf32>
    %51 = tpu.matmul %48, %50, %cst_57 {dimension_numbers = #tpu.dot_dimension_numbers<[1], [0], [0], [1], [0, 0, 1, 1], [], []>} : vector<64x64xbf16>, vector<64x128xbf16>, vector<64x128xf32> -> vector<64x128xf32>
    %52 = arith.addf %45, %51 : vector<64x128xf32>
    %c1_58 = arith.constant 1 : index
    %c0_59 = arith.constant 0 : index
    %c1_60 = arith.constant 1 : index
    %c0_61 = arith.constant 0 : index
    %c0_62 = arith.constant 0 : index
    %53 = vector.load %arg3[%c1_58, %c0_59, %c1_60, %c0_61, %c0_62] : memref<4x1x9x9x64xbf16, #tpu.memory_space<vmem>>, vector<1x1x8x8x64xbf16>
    %54 = vector.shape_cast %53 : vector<1x1x8x8x64xbf16> to vector<1x8x8x64xbf16>
    %55 = vector.shape_cast %54 : vector<1x8x8x64xbf16> to vector<64x64xbf16>
    %c7 = arith.constant 7 : index
    %c0_63 = arith.constant 0 : index
    %c0_64 = arith.constant 0 : index
    %56 = vector.load %arg4[%c7, %c0_63, %c0_64] : memref<9x64x128xbf16, #tpu.memory_space<vmem>>, vector<1x64x128xbf16>
    %57 = vector.shape_cast %56 : vector<1x64x128xbf16> to vector<64x128xbf16>
    %cst_65 = arith.constant dense<0.000000e+00> : vector<64x128xf32>
    %58 = tpu.matmul %55, %57, %cst_65 {dimension_numbers = #tpu.dot_dimension_numbers<[1], [0], [0], [1], [0, 0, 1, 1], [], []>} : vector<64x64xbf16>, vector<64x128xbf16>, vector<64x128xf32> -> vector<64x128xf32>
    %59 = arith.addf %52, %58 : vector<64x128xf32>
    %c0_66 = arith.constant 0 : index
    %c0_67 = arith.constant 0 : index
    %c1_68 = arith.constant 1 : index
    %c1_69 = arith.constant 1 : index
    %c0_70 = arith.constant 0 : index
    %60 = vector.load %arg3[%c0_66, %c0_67, %c1_68, %c1_69, %c0_70] : memref<4x1x9x9x64xbf16, #tpu.memory_space<vmem>>, vector<1x1x8x8x64xbf16>
    %61 = vector.shape_cast %60 : vector<1x1x8x8x64xbf16> to vector<1x8x8x64xbf16>
    %62 = vector.shape_cast %61 : vector<1x8x8x64xbf16> to vector<64x64xbf16>
    %c8 = arith.constant 8 : index
    %c0_71 = arith.constant 0 : index
    %c0_72 = arith.constant 0 : index
    %63 = vector.load %arg4[%c8, %c0_71, %c0_72] : memref<9x64x128xbf16, #tpu.memory_space<vmem>>, vector<1x64x128xbf16>
    %64 = vector.shape_cast %63 : vector<1x64x128xbf16> to vector<64x128xbf16>
    %cst_73 = arith.constant dense<0.000000e+00> : vector<64x128xf32>
    %65 = tpu.matmul %62, %64, %cst_73 {dimension_numbers = #tpu.dot_dimension_numbers<[1], [0], [0], [1], [0, 0, 1, 1], [], []>} : vector<64x64xbf16>, vector<64x128xbf16>, vector<64x128xf32> -> vector<64x128xf32>
    %66 = arith.addf %59, %65 : vector<64x128xf32>
    %c0_74 = arith.constant 0 : index
    %c0_75 = arith.constant 0 : index
    %67 = vector.load %arg7[%c0_74, %c0_75] : memref<64x128xf32, #tpu.memory_space<vmem>>, vector<64x128xf32>
    tpu.vector_store %arg7[%c0_74, %c0_75], %66 {strides = array<i32>} : memref<64x128xf32, #tpu.memory_space<vmem>>, vector<64x128xf32>,
    %c0_i32_76 = arith.constant 0 : i32
    %68 = arith.cmpi eq, %arg2, %c0_i32_76 : i32
    %69 = arith.extui %68 : i1 to i32
    %c0_i32_77 = arith.constant 0 : i32
    %70 = arith.cmpi ne, %69, %c0_i32_77 : i32
    scf.if %70 {
      %c0_78 = arith.constant 0 : index
      %c0_79 = arith.constant 0 : index
      %71 = vector.load %arg5[%c0_78, %c0_79] : memref<1x128xf32, #tpu.memory_space<vmem>>, vector<1x128xf32>
      %72 = vector.broadcast %71 : vector<1x128xf32> to vector<64x128xf32>
      %73 = arith.addf %66, %72 : vector<64x128xf32>
      %cst_80 = arith.constant 0.000000e+00 : f32
      %74 = vector.broadcast %cst_80 : f32 to vector<64x128xf32>
      %75 = arith.maximumf %73, %74 : vector<64x128xf32>
      %76 = vector.shape_cast %75 : vector<64x128xf32> to vector<1x64x128xf32>
      %77 = arith.truncf %76 : vector<1x64x128xf32> to vector<1x64x128xbf16>
      %c0_81 = arith.constant 0 : index
      %c0_82 = arith.constant 0 : index
      %c0_83 = arith.constant 0 : index
      %78 = vector.load %arg6[%c0_81, %c0_82, %c0_83] : memref<1x64x128xbf16, #tpu.memory_space<vmem>>, vector<1x64x128xbf16>
      tpu.vector_store %arg6[%c0_81, %c0_82, %c0_83], %77 {strides = array<i32>} : memref<1x64x128xbf16, #tpu.memory_space<vmem>>, vector<1x64x128xbf16>,
    } else {
    }
    return
  }
  func.func @transform_0(%arg0: i32, %arg1: i32, %arg2: i32) -> (i32, i32, i32, i32, i32) {
    %c0_i32 = arith.constant 0 : i32
    %c0_i32_0 = arith.constant 0 : i32
    %c0_i32_1 = arith.constant 0 : i32
    %c0_i32_2 = arith.constant 0 : i32
    return %c0_i32, %arg0, %c0_i32_0, %c0_i32_1, %arg2 : i32, i32, i32, i32, i32
  }
  func.func @transform_1(%arg0: i32, %arg1: i32, %arg2: i32) -> (i32, i32, i32) {
    %c0_i32 = arith.constant 0 : i32
    %c0_i32_0 = arith.constant 0 : i32
    return %c0_i32, %arg2, %arg1 : i32, i32, i32
  }
  func.func @transform_2(%arg0: i32, %arg1: i32, %arg2: i32) -> (i32, i32) {
    %c0_i32 = arith.constant 0 : i32
    %c0_i32_0 = arith.constant 0 : i32
    return %c0_i32, %arg1 : i32, i32
  }
  func.func @transform_3(%arg0: i32, %arg1: i32, %arg2: i32) -> (i32, i32, i32) {
    %c0_i32 = arith.constant 0 : i32
    %c0_i32_0 = arith.constant 0 : i32
    return %arg0, %c0_i32, %arg1 : i32, i32, i32
  }
}

module attributes {stable_mosaic.version = 11 : i64} {
  func.func @kernel(%arg0: i32, %arg1: i32, %arg2: i32, %arg3: memref<1x1x10x10x128xbf16, #tpu.memory_space<vmem>>, %arg4: memref<9x128x128xbf16, #tpu.memory_space<vmem>>, %arg5: memref<1x64x128xbf16, #tpu.memory_space<vmem>>, %arg6: memref<1x64x128xf32, #tpu.memory_space<vmem>>, %arg7: memref<64x128xf32, #tpu.memory_space<vmem>>) attributes {dimension_semantics = [#tpu.dimension_semantics<parallel>, #tpu.dimension_semantics<parallel>, #tpu.dimension_semantics<arbitrary>], iteration_bounds = array<i64: 2, 1, 1>, scalar_prefetch = 0 : i64, scratch_operands = 1 : i64, tpu.core_type = #tpu.core_type<tc>, window_params = [{transform_indices = @transform_0, window_bounds = array<i64: 1, 1, 10, 10, 128>}, {transform_indices = @transform_1, window_bounds = array<i64: 9, 128, 128>}, {transform_indices = @transform_2, window_bounds = array<i64: 1, 64, 128>}, {transform_indices = @transform_3, window_bounds = array<i64: 1, 64, 128>}]} {
    %c0_i32 = arith.constant 0 : i32
    %0 = arith.cmpi eq, %arg2, %c0_i32 : i32
    %1 = arith.extui %0 : i1 to i32
    %c0_i32_0 = arith.constant 0 : i32
    %2 = arith.cmpi ne, %1, %c0_i32_0 : i32
    scf.if %2 {
      %cst_78 = arith.constant 0.000000e+00 : f32
      %71 = vector.broadcast %cst_78 : f32 to vector<64x128xf32>
      %c0_79 = arith.constant 0 : index
      %c0_80 = arith.constant 0 : index
      %72 = vector.load %arg7[%c0_79, %c0_80] : memref<64x128xf32, #tpu.memory_space<vmem>>, vector<64x128xf32>
      tpu.vector_store %arg7[%c0_79, %c0_80], %71 {strides = array<i32>} : memref<64x128xf32, #tpu.memory_space<vmem>>, vector<64x128xf32>,
    } else {
    }
    %c0 = arith.constant 0 : index
    %c0_1 = arith.constant 0 : index
    %3 = vector.load %arg7[%c0, %c0_1] : memref<64x128xf32, #tpu.memory_space<vmem>>, vector<64x128xf32>
    %c0_2 = arith.constant 0 : index
    %c0_3 = arith.constant 0 : index
    %c0_4 = arith.constant 0 : index
    %c0_5 = arith.constant 0 : index
    %c0_6 = arith.constant 0 : index
    %4 = vector.load %arg3[%c0_2, %c0_3, %c0_4, %c0_5, %c0_6] : memref<1x1x10x10x128xbf16, #tpu.memory_space<vmem>>, vector<1x1x8x8x128xbf16>
    %5 = vector.shape_cast %4 : vector<1x1x8x8x128xbf16> to vector<1x8x8x128xbf16>
    %6 = vector.shape_cast %5 : vector<1x8x8x128xbf16> to vector<64x128xbf16>
    %c0_7 = arith.constant 0 : index
    %c0_8 = arith.constant 0 : index
    %c0_9 = arith.constant 0 : index
    %7 = vector.load %arg4[%c0_7, %c0_8, %c0_9] : memref<9x128x128xbf16, #tpu.memory_space<vmem>>, vector<1x128x128xbf16>
    %8 = vector.shape_cast %7 : vector<1x128x128xbf16> to vector<128x128xbf16>
    %cst = arith.constant dense<0.000000e+00> : vector<64x128xf32>
    %9 = tpu.matmul %6, %8, %cst {dimension_numbers = #tpu.dot_dimension_numbers<[1], [0], [0], [1], [0, 0, 1, 1], [], []>} : vector<64x128xbf16>, vector<128x128xbf16>, vector<64x128xf32> -> vector<64x128xf32>
    %10 = arith.addf %3, %9 : vector<64x128xf32>
    %c0_10 = arith.constant 0 : index
    %c0_11 = arith.constant 0 : index
    %c0_12 = arith.constant 0 : index
    %c1 = arith.constant 1 : index
    %c0_13 = arith.constant 0 : index
    %11 = vector.load %arg3[%c0_10, %c0_11, %c0_12, %c1, %c0_13] : memref<1x1x10x10x128xbf16, #tpu.memory_space<vmem>>, vector<1x1x8x8x128xbf16>
    %12 = vector.shape_cast %11 : vector<1x1x8x8x128xbf16> to vector<1x8x8x128xbf16>
    %13 = vector.shape_cast %12 : vector<1x8x8x128xbf16> to vector<64x128xbf16>
    %c1_14 = arith.constant 1 : index
    %c0_15 = arith.constant 0 : index
    %c0_16 = arith.constant 0 : index
    %14 = vector.load %arg4[%c1_14, %c0_15, %c0_16] : memref<9x128x128xbf16, #tpu.memory_space<vmem>>, vector<1x128x128xbf16>
    %15 = vector.shape_cast %14 : vector<1x128x128xbf16> to vector<128x128xbf16>
    %cst_17 = arith.constant dense<0.000000e+00> : vector<64x128xf32>
    %16 = tpu.matmul %13, %15, %cst_17 {dimension_numbers = #tpu.dot_dimension_numbers<[1], [0], [0], [1], [0, 0, 1, 1], [], []>} : vector<64x128xbf16>, vector<128x128xbf16>, vector<64x128xf32> -> vector<64x128xf32>
    %17 = arith.addf %10, %16 : vector<64x128xf32>
    %c0_18 = arith.constant 0 : index
    %c0_19 = arith.constant 0 : index
    %c0_20 = arith.constant 0 : index
    %c2 = arith.constant 2 : index
    %c0_21 = arith.constant 0 : index
    %18 = vector.load %arg3[%c0_18, %c0_19, %c0_20, %c2, %c0_21] : memref<1x1x10x10x128xbf16, #tpu.memory_space<vmem>>, vector<1x1x8x8x128xbf16>
    %19 = vector.shape_cast %18 : vector<1x1x8x8x128xbf16> to vector<1x8x8x128xbf16>
    %20 = vector.shape_cast %19 : vector<1x8x8x128xbf16> to vector<64x128xbf16>
    %c2_22 = arith.constant 2 : index
    %c0_23 = arith.constant 0 : index
    %c0_24 = arith.constant 0 : index
    %21 = vector.load %arg4[%c2_22, %c0_23, %c0_24] : memref<9x128x128xbf16, #tpu.memory_space<vmem>>, vector<1x128x128xbf16>
    %22 = vector.shape_cast %21 : vector<1x128x128xbf16> to vector<128x128xbf16>
    %cst_25 = arith.constant dense<0.000000e+00> : vector<64x128xf32>
    %23 = tpu.matmul %20, %22, %cst_25 {dimension_numbers = #tpu.dot_dimension_numbers<[1], [0], [0], [1], [0, 0, 1, 1], [], []>} : vector<64x128xbf16>, vector<128x128xbf16>, vector<64x128xf32> -> vector<64x128xf32>
    %24 = arith.addf %17, %23 : vector<64x128xf32>
    %c0_26 = arith.constant 0 : index
    %c0_27 = arith.constant 0 : index
    %c1_28 = arith.constant 1 : index
    %c0_29 = arith.constant 0 : index
    %c0_30 = arith.constant 0 : index
    %25 = vector.load %arg3[%c0_26, %c0_27, %c1_28, %c0_29, %c0_30] : memref<1x1x10x10x128xbf16, #tpu.memory_space<vmem>>, vector<1x1x8x8x128xbf16>
    %26 = vector.shape_cast %25 : vector<1x1x8x8x128xbf16> to vector<1x8x8x128xbf16>
    %27 = vector.shape_cast %26 : vector<1x8x8x128xbf16> to vector<64x128xbf16>
    %c3 = arith.constant 3 : index
    %c0_31 = arith.constant 0 : index
    %c0_32 = arith.constant 0 : index
    %28 = vector.load %arg4[%c3, %c0_31, %c0_32] : memref<9x128x128xbf16, #tpu.memory_space<vmem>>, vector<1x128x128xbf16>
    %29 = vector.shape_cast %28 : vector<1x128x128xbf16> to vector<128x128xbf16>
    %cst_33 = arith.constant dense<0.000000e+00> : vector<64x128xf32>
    %30 = tpu.matmul %27, %29, %cst_33 {dimension_numbers = #tpu.dot_dimension_numbers<[1], [0], [0], [1], [0, 0, 1, 1], [], []>} : vector<64x128xbf16>, vector<128x128xbf16>, vector<64x128xf32> -> vector<64x128xf32>
    %31 = arith.addf %24, %30 : vector<64x128xf32>
    %c0_34 = arith.constant 0 : index
    %c0_35 = arith.constant 0 : index
    %c1_36 = arith.constant 1 : index
    %c1_37 = arith.constant 1 : index
    %c0_38 = arith.constant 0 : index
    %32 = vector.load %arg3[%c0_34, %c0_35, %c1_36, %c1_37, %c0_38] : memref<1x1x10x10x128xbf16, #tpu.memory_space<vmem>>, vector<1x1x8x8x128xbf16>
    %33 = vector.shape_cast %32 : vector<1x1x8x8x128xbf16> to vector<1x8x8x128xbf16>
    %34 = vector.shape_cast %33 : vector<1x8x8x128xbf16> to vector<64x128xbf16>
    %c4 = arith.constant 4 : index
    %c0_39 = arith.constant 0 : index
    %c0_40 = arith.constant 0 : index
    %35 = vector.load %arg4[%c4, %c0_39, %c0_40] : memref<9x128x128xbf16, #tpu.memory_space<vmem>>, vector<1x128x128xbf16>
    %36 = vector.shape_cast %35 : vector<1x128x128xbf16> to vector<128x128xbf16>
    %cst_41 = arith.constant dense<0.000000e+00> : vector<64x128xf32>
    %37 = tpu.matmul %34, %36, %cst_41 {dimension_numbers = #tpu.dot_dimension_numbers<[1], [0], [0], [1], [0, 0, 1, 1], [], []>} : vector<64x128xbf16>, vector<128x128xbf16>, vector<64x128xf32> -> vector<64x128xf32>
    %38 = arith.addf %31, %37 : vector<64x128xf32>
    %c0_42 = arith.constant 0 : index
    %c0_43 = arith.constant 0 : index
    %c1_44 = arith.constant 1 : index
    %c2_45 = arith.constant 2 : index
    %c0_46 = arith.constant 0 : index
    %39 = vector.load %arg3[%c0_42, %c0_43, %c1_44, %c2_45, %c0_46] : memref<1x1x10x10x128xbf16, #tpu.memory_space<vmem>>, vector<1x1x8x8x128xbf16>
    %40 = vector.shape_cast %39 : vector<1x1x8x8x128xbf16> to vector<1x8x8x128xbf16>
    %41 = vector.shape_cast %40 : vector<1x8x8x128xbf16> to vector<64x128xbf16>
    %c5 = arith.constant 5 : index
    %c0_47 = arith.constant 0 : index
    %c0_48 = arith.constant 0 : index
    %42 = vector.load %arg4[%c5, %c0_47, %c0_48] : memref<9x128x128xbf16, #tpu.memory_space<vmem>>, vector<1x128x128xbf16>
    %43 = vector.shape_cast %42 : vector<1x128x128xbf16> to vector<128x128xbf16>
    %cst_49 = arith.constant dense<0.000000e+00> : vector<64x128xf32>
    %44 = tpu.matmul %41, %43, %cst_49 {dimension_numbers = #tpu.dot_dimension_numbers<[1], [0], [0], [1], [0, 0, 1, 1], [], []>} : vector<64x128xbf16>, vector<128x128xbf16>, vector<64x128xf32> -> vector<64x128xf32>
    %45 = arith.addf %38, %44 : vector<64x128xf32>
    %c0_50 = arith.constant 0 : index
    %c0_51 = arith.constant 0 : index
    %c2_52 = arith.constant 2 : index
    %c0_53 = arith.constant 0 : index
    %c0_54 = arith.constant 0 : index
    %46 = vector.load %arg3[%c0_50, %c0_51, %c2_52, %c0_53, %c0_54] : memref<1x1x10x10x128xbf16, #tpu.memory_space<vmem>>, vector<1x1x8x8x128xbf16>
    %47 = vector.shape_cast %46 : vector<1x1x8x8x128xbf16> to vector<1x8x8x128xbf16>
    %48 = vector.shape_cast %47 : vector<1x8x8x128xbf16> to vector<64x128xbf16>
    %c6 = arith.constant 6 : index
    %c0_55 = arith.constant 0 : index
    %c0_56 = arith.constant 0 : index
    %49 = vector.load %arg4[%c6, %c0_55, %c0_56] : memref<9x128x128xbf16, #tpu.memory_space<vmem>>, vector<1x128x128xbf16>
    %50 = vector.shape_cast %49 : vector<1x128x128xbf16> to vector<128x128xbf16>
    %cst_57 = arith.constant dense<0.000000e+00> : vector<64x128xf32>
    %51 = tpu.matmul %48, %50, %cst_57 {dimension_numbers = #tpu.dot_dimension_numbers<[1], [0], [0], [1], [0, 0, 1, 1], [], []>} : vector<64x128xbf16>, vector<128x128xbf16>, vector<64x128xf32> -> vector<64x128xf32>
    %52 = arith.addf %45, %51 : vector<64x128xf32>
    %c0_58 = arith.constant 0 : index
    %c0_59 = arith.constant 0 : index
    %c2_60 = arith.constant 2 : index
    %c1_61 = arith.constant 1 : index
    %c0_62 = arith.constant 0 : index
    %53 = vector.load %arg3[%c0_58, %c0_59, %c2_60, %c1_61, %c0_62] : memref<1x1x10x10x128xbf16, #tpu.memory_space<vmem>>, vector<1x1x8x8x128xbf16>
    %54 = vector.shape_cast %53 : vector<1x1x8x8x128xbf16> to vector<1x8x8x128xbf16>
    %55 = vector.shape_cast %54 : vector<1x8x8x128xbf16> to vector<64x128xbf16>
    %c7 = arith.constant 7 : index
    %c0_63 = arith.constant 0 : index
    %c0_64 = arith.constant 0 : index
    %56 = vector.load %arg4[%c7, %c0_63, %c0_64] : memref<9x128x128xbf16, #tpu.memory_space<vmem>>, vector<1x128x128xbf16>
    %57 = vector.shape_cast %56 : vector<1x128x128xbf16> to vector<128x128xbf16>
    %cst_65 = arith.constant dense<0.000000e+00> : vector<64x128xf32>
    %58 = tpu.matmul %55, %57, %cst_65 {dimension_numbers = #tpu.dot_dimension_numbers<[1], [0], [0], [1], [0, 0, 1, 1], [], []>} : vector<64x128xbf16>, vector<128x128xbf16>, vector<64x128xf32> -> vector<64x128xf32>
    %59 = arith.addf %52, %58 : vector<64x128xf32>
    %c0_66 = arith.constant 0 : index
    %c0_67 = arith.constant 0 : index
    %c2_68 = arith.constant 2 : index
    %c2_69 = arith.constant 2 : index
    %c0_70 = arith.constant 0 : index
    %60 = vector.load %arg3[%c0_66, %c0_67, %c2_68, %c2_69, %c0_70] : memref<1x1x10x10x128xbf16, #tpu.memory_space<vmem>>, vector<1x1x8x8x128xbf16>
    %61 = vector.shape_cast %60 : vector<1x1x8x8x128xbf16> to vector<1x8x8x128xbf16>
    %62 = vector.shape_cast %61 : vector<1x8x8x128xbf16> to vector<64x128xbf16>
    %c8 = arith.constant 8 : index
    %c0_71 = arith.constant 0 : index
    %c0_72 = arith.constant 0 : index
    %63 = vector.load %arg4[%c8, %c0_71, %c0_72] : memref<9x128x128xbf16, #tpu.memory_space<vmem>>, vector<1x128x128xbf16>
    %64 = vector.shape_cast %63 : vector<1x128x128xbf16> to vector<128x128xbf16>
    %cst_73 = arith.constant dense<0.000000e+00> : vector<64x128xf32>
    %65 = tpu.matmul %62, %64, %cst_73 {dimension_numbers = #tpu.dot_dimension_numbers<[1], [0], [0], [1], [0, 0, 1, 1], [], []>} : vector<64x128xbf16>, vector<128x128xbf16>, vector<64x128xf32> -> vector<64x128xf32>
    %66 = arith.addf %59, %65 : vector<64x128xf32>
    %c0_74 = arith.constant 0 : index
    %c0_75 = arith.constant 0 : index
    %67 = vector.load %arg7[%c0_74, %c0_75] : memref<64x128xf32, #tpu.memory_space<vmem>>, vector<64x128xf32>
    tpu.vector_store %arg7[%c0_74, %c0_75], %66 {strides = array<i32>} : memref<64x128xf32, #tpu.memory_space<vmem>>, vector<64x128xf32>,
    %c0_i32_76 = arith.constant 0 : i32
    %68 = arith.cmpi eq, %arg2, %c0_i32_76 : i32
    %69 = arith.extui %68 : i1 to i32
    %c0_i32_77 = arith.constant 0 : i32
    %70 = arith.cmpi ne, %69, %c0_i32_77 : i32
    scf.if %70 {
      %c0_78 = arith.constant 0 : index
      %c0_79 = arith.constant 0 : index
      %c0_80 = arith.constant 0 : index
      %71 = vector.load %arg5[%c0_78, %c0_79, %c0_80] : memref<1x64x128xbf16, #tpu.memory_space<vmem>>, vector<1x64x128xbf16>
      %72 = vector.shape_cast %71 : vector<1x64x128xbf16> to vector<64x128xbf16>
      %73 = arith.extf %72 : vector<64x128xbf16> to vector<64x128xf32>
      %74 = arith.addf %66, %73 : vector<64x128xf32>
      %75 = vector.shape_cast %74 : vector<64x128xf32> to vector<1x64x128xf32>
      %c0_81 = arith.constant 0 : index
      %c0_82 = arith.constant 0 : index
      %c0_83 = arith.constant 0 : index
      %76 = vector.load %arg6[%c0_81, %c0_82, %c0_83] : memref<1x64x128xf32, #tpu.memory_space<vmem>>, vector<1x64x128xf32>
      tpu.vector_store %arg6[%c0_81, %c0_82, %c0_83], %75 {strides = array<i32>} : memref<1x64x128xf32, #tpu.memory_space<vmem>>, vector<1x64x128xf32>,
    } else {
    }
    return
  }
  func.func @transform_0(%arg0: i32, %arg1: i32, %arg2: i32) -> (i32, i32, i32, i32, i32) {
    %c0_i32 = arith.constant 0 : i32
    %c0_i32_0 = arith.constant 0 : i32
    %c0_i32_1 = arith.constant 0 : i32
    %c0_i32_2 = arith.constant 0 : i32
    return %c0_i32, %arg0, %c0_i32_0, %c0_i32_1, %arg2 : i32, i32, i32, i32, i32
  }
  func.func @transform_1(%arg0: i32, %arg1: i32, %arg2: i32) -> (i32, i32, i32) {
    %c0_i32 = arith.constant 0 : i32
    %c0_i32_0 = arith.constant 0 : i32
    return %c0_i32, %arg2, %arg1 : i32, i32, i32
  }
  func.func @transform_2(%arg0: i32, %arg1: i32, %arg2: i32) -> (i32, i32, i32) {
    %c0_i32 = arith.constant 0 : i32
    %c0_i32_0 = arith.constant 0 : i32
    return %arg0, %c0_i32, %arg1 : i32, i32, i32
  }
  func.func @transform_3(%arg0: i32, %arg1: i32, %arg2: i32) -> (i32, i32, i32) {
    %c0_i32 = arith.constant 0 : i32
    %c0_i32_0 = arith.constant 0 : i32
    return %arg0, %c0_i32, %arg1 : i32, i32, i32
  }
}

</mosaic_0001>

<bundles_post_ra>
// kernel: tile.10
= control target key start
LH: loop header
LB: loop body
LE: loop exit
PB: predicated region body
PF: predicated region fallthrough
CT: control target
= control target key end

     0   :  { %s28_s0 = inlined_call_operand.vmem [shape: f32[64], index: 0, kind: input, shape index: {}]   ;;  %s29_s1 = inlined_call_operand.vmem [shape: f32[16,64], index: 1, kind: output, shape index: {}]  }
   0x1   :  { %v4_v0 = vld [vmem:[%s28_s0] ss:$0 sm:$0xff] }
   0x2   :  { %5 = vst [vmem:[%s29_s1] sm:$0xff] %v4_v0  ;;  %8 = vst [vmem:[%s29_s1 + $0x8] sm:$0xff] %v4_v0 }

// kernel: tile.11
= control target key start
LH: loop header
LB: loop body
LE: loop exit
PB: predicated region body
PF: predicated region fallthrough
CT: control target
= control target key end

     0   :  { %vm3_vm0 = vcmask 523264   ;;  %vm10_vm1 = vcmask 1048064   ;;  %s116_s0 = inlined_call_operand.vmem [shape: f32[16,64], index: 0, kind: input, shape index: {}]   ;;  %s117_s1 = inlined_call_operand.vmem [shape: f32[1,1024], index: 1, kind: output, shape index: {}]  }
   0x1   :  { %v66_v0 = vld [vmem:[%s116_s0 + $0x1] ss:$2 sm:$0xff]   ;;  %v2_v1 = vld [vmem:[%s116_s0] ss:$2 sm:$0xff]   ;;  %s75_s0 = smov 64  }
   0x2   :  { %8 = vrot.lane.b32.xlu0 %v66_v0, %s75_s0  ;;  %4 = vst.msk [vmem:[#allocation0] ss:$8 sm:$0xf] %vm3_vm0, %v2_v1   ;;  %5 = vst.msk [vmem:[#allocation0] ss:$8 sm:$0xf0] %vm3_vm0, %v2_v1  }
  0x74   :  { %v9_v2 = vpop.permute.xlu0 %8  }
  0x75   :  { %11 = vst.msk [vmem:[#allocation0] ss:$8 sm:$0xf] %vm10_vm1, %v9_v2   ;;  %12 = vst.msk [vmem:[#allocation0] ss:$8 sm:$0xf0] %vm10_vm1, %v9_v2  }
  0x7c   :  { %v16_v3 = vld [vmem:[#allocation0] sm:$0x1]  ;;  %v20_v4 = vld [vmem:[#allocation0 + $0x8] sm:$0x1]  ;;  %v25_v5 = vld [vmem:[#allocation0 + $0x10] sm:$0x1] }
  0x7d   :  { %18 = vst [vmem:[%s117_s1] sm:$0x1] %v16_v3  ;;  %67 = vst [vmem:[%s117_s1 + $0x1] sm:$0x1] %v20_v4  ;;  %v31_v6 = vld [vmem:[#allocation0 + $0x18] sm:$0x1] }
  0x7e   :  { %68 = vst [vmem:[%s117_s1 + $0x2] sm:$0x1] %v25_v5  ;;  %v37_v7 = vld [vmem:[#allocation0 + $0x20] sm:$0x1]  ;;  %v43_v8 = vld [vmem:[#allocation0 + $0x28] sm:$0x1] }
  0x7f   :  { %69 = vst [vmem:[%s117_s1 + $0x3] sm:$0x1] %v31_v6  ;;  %70 = vst [vmem:[%s117_s1 + $0x4] sm:$0x1] %v37_v7  ;;  %v49_v9 = vld [vmem:[#allocation0 + $0x30] sm:$0x1] }
  0x80   :  { %71 = vst [vmem:[%s117_s1 + $0x5] sm:$0x1] %v43_v8  ;;  %v55_v10 = vld [vmem:[#allocation0 + $0x38] sm:$0x1]  ;;  %72 = vst [vmem:[%s117_s1 + $0x6] sm:$0x1] %v49_v9 }
  0x81   :  { %73 = vst [vmem:[%s117_s1 + $0x7] sm:$0x1] %v55_v10 }

// kernel: preact_block_forward.4
= control target key start
LH: loop header
LB: loop body
LE: loop exit
PB: predicated region body
PF: predicated region fallthrough
CT: control target
= control target key end

     0   :  { %v64_v0 = vlaneseq  ;;  %s608_s0 = inlined_call_operand.vmem [shape: bf16[32,1024], index: 0, kind: input, shape index: {}]   ;;  %s609_s1 = inlined_call_operand.vmem [shape: f32[1,1024], index: 1, kind: input, shape index: {}]   ;;  %s610_s2 = inlined_call_operand.vmem [shape: f32[1,1024], index: 2, kind: input, shape index: {}]   ;;  %s611_s3 = inlined_call_operand.vmem [shape: bf16[32,1024], index: 3, kind: output, shape index: {}]  }
   0x1   :  { %v14_v1 = vld [vmem:[%s608_s0] sm:$0xff]  ;;  %v15_v5 = vld [vmem:[%s608_s0 + $0x8] sm:$0xff]  ;;  %v16_v6 = vld [vmem:[%s608_s0 + $0x10] sm:$0xff] }
   0x2   :  { %v30_v2 = vunpack.c.l.bf16 %v14_v1  ;;  %v31_v3 = vunpack.c.h.bf16 %v14_v1  ;;  %v65_v4 = vshrl.u32 %v64_v0, 7  ;;  %v17_v7 = vld [vmem:[%s608_s0 + $0x18] sm:$0xff]  ;;  %v62_v8 = vld [vmem:[%s609_s1] sm:$0xff]  ;;  %v32_v10 = vunpack.c.l.bf16 %v15_v5  ;;  %v19_v55 = vld [vmem:[%s608_s0 + $0x28] sm:$0xff] }
   0x3   :  { %v136_v9 = vld [vmem:[%s610_s2] sm:$0xff]  ;;  %v33_v11 = vunpack.c.h.bf16 %v15_v5  ;;  %v34_v12 = vunpack.c.l.bf16 %v16_v6  ;;  %v35_v13 = vunpack.c.h.bf16 %v16_v6  ;;  %v36_v20 = vunpack.c.l.bf16 %v17_v7  ;;  %v20_v60 = vld [vmem:[%s608_s0 + $0x30] sm:$0xff] }
   0x4   :  { %v66_v14 = vsub.s32 0, %v65_v4  ;;  %v70_v15 = vsub.s32 1, %v65_v4  ;;  %v74_v16 = vsub.s32 2, %v65_v4  ;;  %v78_v17 = vsub.s32 3, %v65_v4  ;;  %v18_v54 = vld [vmem:[%s608_s0 + $0x20] sm:$0xff] }
   0x5   :  { %v82_v18 = vsub.s32 4, %v65_v4  ;;  %v86_v19 = vsub.s32 5, %v65_v4  ;;  %v37_v21 = vunpack.c.h.bf16 %v17_v7  ;;  %v90_v44 = vsub.s32 6, %v65_v4 }
   0x6   :  { %v428_v22 = vrot.slane %v62_v8, %v66_v14  ;;  %v430_v23 = vrot.slane %v62_v8, %v70_v15  ;;  %v432_v24 = vrot.slane %v136_v9, %v66_v14  ;;  %v434_v25 = vrot.slane %v136_v9, %v70_v15 }
   0x7   :  { %v436_v26 = vrot.slane %v62_v8, %v74_v16  ;;  %v438_v27 = vrot.slane %v62_v8, %v78_v17  ;;  %v440_v28 = vrot.slane %v136_v9, %v74_v16  ;;  %v442_v29 = vrot.slane %v136_v9, %v78_v17 }
   0x8   :  { %v104_v30 = vmul.f32 %v428_v22, %v30_v2  ;;  %v105_v31 = vmul.f32 %v430_v23, %v31_v3  ;;  %v446_v32 = vrot.slane %v62_v8, %v82_v18  ;;  %v448_v33 = vrot.slane %v62_v8, %v86_v19 }
   0x9   :  { %v106_v34 = vmul.f32 %v436_v26, %v32_v10  ;;  %v107_v35 = vmul.f32 %v438_v27, %v33_v11  ;;  %v452_v36 = vrot.slane %v136_v9, %v82_v18  ;;  %v454_v37 = vrot.slane %v136_v9, %v86_v19 }
   0xa   :  { %v178_v38 = vadd.f32 %v432_v24, %v104_v30  ;;  %v179_v39 = vadd.f32 %v434_v25, %v105_v31  ;;  %v108_v40 = vmul.f32 %v446_v32, %v34_v12  ;;  %v109_v41 = vmul.f32 %v448_v33, %v35_v13  ;;  %v21_v13 = vld [vmem:[%s608_s0 + $0x38] sm:$0xff] }
   0xb   :  { %v180_v42 = vadd.f32 %v440_v28, %v106_v34  ;;  %v181_v43 = vadd.f32 %v442_v29, %v107_v35  ;;  %v94_v45 = vsub.s32 7, %v65_v4  ;;  %v464_v52 = vrot.slane %v62_v8, %v90_v44 }
   0xc   :  { %v210_v46 = vmax.f32 %v178_v38, 0.0  ;;  %v211_v47 = vmax.f32 %v179_v39, 0.0  ;;  %v182_v48 = vadd.f32 %v452_v36, %v108_v40  ;;  %v183_v49 = vadd.f32 %v454_v37, %v109_v41  ;;  %v22_v38 = vld [vmem:[%s608_s0 + $0x40] sm:$0xff] }
   0xd   :  { %v212_v50 = vmax.f32 %v180_v42, 0.0  ;;  %v213_v51 = vmax.f32 %v181_v43, 0.0  ;;  %v466_v53 = vrot.slane %v62_v8, %v94_v45  ;;  %v474_v59 = vrot.slane %v136_v9, %v90_v44  ;;  %v23_v43 = vld [vmem:[%s608_s0 + $0x48] sm:$0xff] }
   0xe   :  { %v374_v56 = vpack.c.bf16 %v211_v47, %v210_v46  ;;  %v214_v57 = vmax.f32 %v182_v48, 0.0  ;;  %v215_v58 = vmax.f32 %v183_v49, 0.0  ;;  %v110_v62 = vmul.f32 %v464_v52, %v36_v20 }
   0xf   :  { %v375_v61 = vpack.c.bf16 %v213_v51, %v212_v50  ;;  %v111_v63 = vmul.f32 %v466_v53, %v37_v21  ;;  %v481_v0 = vrot.slane %v136_v9, %v94_v45  ;;  %v38_v2 = vunpack.c.l.bf16 %v18_v54 }
  0x10   :  { %338 = vst [vmem:[%s611_s3] sm:$0xff] %v374_v56  ;;  %v376_v1 = vpack.c.bf16 %v215_v58, %v214_v57  ;;  %v39_v3 = vunpack.c.h.bf16 %v18_v54  ;;  %v40_v4 = vunpack.c.l.bf16 %v19_v55  ;;  %v184_v5 = vadd.f32 %v474_v59, %v110_v62  ;;  %v24_v54 = vld [vmem:[%s608_s0 + $0x50] sm:$0xff] }
  0x11   :  { %339 = vst [vmem:[%s611_s3 + $0x8] sm:$0xff] %v375_v61  ;;  %v185_v6 = vadd.f32 %v481_v0, %v111_v63  ;;  %v41_v7 = vunpack.c.h.bf16 %v19_v55  ;;  %v42_v8 = vunpack.c.l.bf16 %v20_v60  ;;  %v112_v9 = vmul.f32 %v428_v22, %v38_v2 }
  0x12   :  { %340 = vst [vmem:[%s611_s3 + $0x10] sm:$0xff] %v376_v1  ;;  %v113_v10 = vmul.f32 %v430_v23, %v39_v3  ;;  %v114_v11 = vmul.f32 %v436_v26, %v40_v4  ;;  %v43_v12 = vunpack.c.h.bf16 %v20_v60  ;;  %v216_v14 = vmax.f32 %v184_v5, 0.0  ;;  %v25_v1 = vld [vmem:[%s608_s0 + $0x58] sm:$0xff] }
  0x13   :  { %v217_v15 = vmax.f32 %v185_v6, 0.0  ;;  %v115_v16 = vmul.f32 %v438_v27, %v41_v7  ;;  %v116_v17 = vmul.f32 %v446_v32, %v42_v8  ;;  %v186_v18 = vadd.f32 %v432_v24, %v112_v9 }
  0x14   :  { %v187_v19 = vadd.f32 %v434_v25, %v113_v10  ;;  %v188_v20 = vadd.f32 %v440_v28, %v114_v11  ;;  %v117_v21 = vmul.f32 %v448_v33, %v43_v12  ;;  %v44_v35 = vunpack.c.l.bf16 %v21_v13 }
  0x15   :  { %v377_v30 = vpack.c.bf16 %v217_v15, %v216_v14  ;;  %v189_v31 = vadd.f32 %v442_v29, %v115_v16  ;;  %v190_v34 = vadd.f32 %v452_v36, %v116_v17  ;;  %v218_v39 = vmax.f32 %v186_v18, 0.0  ;;  %v26_v18 = vld [vmem:[%s608_s0 + $0x60] sm:$0xff] }
  0x16   :  { %v219_v40 = vmax.f32 %v187_v19, 0.0  ;;  %v220_v41 = vmax.f32 %v188_v20, 0.0  ;;  %v191_v42 = vadd.f32 %v454_v37, %v117_v21  ;;  %v45_v46 = vunpack.c.h.bf16 %v21_v13 }
  0x17   :  { %341 = vst [vmem:[%s611_s3 + $0x18] sm:$0xff] %v377_v30  ;;  %v221_v44 = vmax.f32 %v189_v31, 0.0  ;;  %v222_v45 = vmax.f32 %v190_v34, 0.0  ;;  %v118_v47 = vmul.f32 %v464_v52, %v44_v35  ;;  %v46_v50 = vunpack.c.l.bf16 %v22_v38  ;;  %v27_v31 = vld [vmem:[%s608_s0 + $0x68] sm:$0xff] }
  0x18   :  { %v378_v48 = vpack.c.bf16 %v219_v40, %v218_v39  ;;  %v223_v49 = vmax.f32 %v191_v42, 0.0  ;;  %v47_v51 = vunpack.c.h.bf16 %v22_v38  ;;  %v119_v56 = vmul.f32 %v466_v53, %v45_v46 }
  0x19   :  { %v379_v55 = vpack.c.bf16 %v221_v44, %v220_v41  ;;  %v192_v57 = vadd.f32 %v474_v59, %v118_v47  ;;  %v48_v58 = vunpack.c.l.bf16 %v23_v43  ;;  %v120_v61 = vmul.f32 %v428_v22, %v46_v50  ;;  %v28_v44 = vld [vmem:[%s608_s0 + $0x70] sm:$0xff] }
  0x1a   :  { %342 = vst [vmem:[%s611_s3 + $0x20] sm:$0xff] %v378_v48  ;;  %v380_v60 = vpack.c.bf16 %v223_v49, %v222_v45  ;;  %v121_v62 = vmul.f32 %v430_v23, %v47_v51  ;;  %v49_v63 = vunpack.c.h.bf16 %v23_v43  ;;  %v193_v2 = vadd.f32 %v481_v0, %v119_v56 }
  0x1b   :  { %343 = vst [vmem:[%s611_s3 + $0x28] sm:$0xff] %v379_v55  ;;  %v224_v3 = vmax.f32 %v192_v57, 0.0  ;;  %v122_v4 = vmul.f32 %v436_v26, %v48_v58  ;;  %v50_v5 = vunpack.c.l.bf16 %v24_v54  ;;  %v194_v6 = vadd.f32 %v432_v24, %v120_v61  ;;  %v29_v55 = vld [vmem:[%s608_s0 + $0x78] sm:$0xff] }
  0x1c   :  { %344 = vst [vmem:[%s611_s3 + $0x30] sm:$0xff] %v380_v60  ;;  %v195_v7 = vadd.f32 %v434_v25, %v121_v62  ;;  %v123_v8 = vmul.f32 %v438_v27, %v49_v63  ;;  %v51_v9 = vunpack.c.h.bf16 %v24_v54  ;;  %v225_v10 = vmax.f32 %v193_v2, 0.0 }
  0x1d   :  { %v196_v11 = vadd.f32 %v440_v28, %v122_v4  ;;  %v124_v12 = vmul.f32 %v446_v32, %v50_v5  ;;  %v52_v13 = vunpack.c.l.bf16 %v25_v1  ;;  %v226_v14 = vmax.f32 %v194_v6, 0.0 }
  0x1e   :  { %v227_v15 = vmax.f32 %v195_v7, 0.0  ;;  %v197_v16 = vadd.f32 %v442_v29, %v123_v8  ;;  %v125_v17 = vmul.f32 %v448_v33, %v51_v9  ;;  %v381_v19 = vpack.c.bf16 %v225_v10, %v224_v3 }
  0x1f   :  { %v228_v20 = vmax.f32 %v196_v11, 0.0  ;;  %v198_v21 = vadd.f32 %v452_v36, %v124_v12  ;;  %v53_v30 = vunpack.c.h.bf16 %v25_v1  ;;  %v126_v39 = vmul.f32 %v464_v52, %v52_v13 }
  0x20   :  { %v382_v34 = vpack.c.bf16 %v227_v15, %v226_v14  ;;  %v229_v35 = vmax.f32 %v197_v16, 0.0  ;;  %v199_v38 = vadd.f32 %v454_v37, %v125_v17  ;;  %345 = vst [vmem:[%s611_s3 + $0x38] sm:$0xff] %v381_v19  ;;  %v54_v42 = vunpack.c.l.bf16 %v26_v18 }
  0x21   :  { %v230_v40 = vmax.f32 %v198_v21, 0.0  ;;  %v127_v41 = vmul.f32 %v466_v53, %v53_v30  ;;  %v55_v43 = vunpack.c.h.bf16 %v26_v18  ;;  %v200_v47 = vadd.f32 %v474_v59, %v126_v39 }
  0x22   :  { %346 = vst [vmem:[%s611_s3 + $0x40] sm:$0xff] %v382_v34  ;;  %v383_v45 = vpack.c.bf16 %v229_v35, %v228_v20  ;;  %v231_v46 = vmax.f32 %v199_v38, 0.0  ;;  %v56_v48 = vunpack.c.l.bf16 %v27_v31  ;;  %v128_v50 = vmul.f32 %v428_v22, %v54_v42 }
  0x23   :  { %v201_v49 = vadd.f32 %v481_v0, %v127_v41  ;;  %v129_v51 = vmul.f32 %v430_v23, %v55_v43  ;;  %v57_v54 = vunpack.c.h.bf16 %v27_v31  ;;  %v232_v57 = vmax.f32 %v200_v47, 0.0 }
  0x24   :  { %347 = vst [vmem:[%s611_s3 + $0x48] sm:$0xff] %v383_v45  ;;  %v384_v56 = vpack.c.bf16 %v231_v46, %v230_v40  ;;  %v130_v58 = vmul.f32 %v436_v26, %v56_v48  ;;  %v58_v60 = vunpack.c.l.bf16 %v28_v44  ;;  %v202_v62 = vadd.f32 %v432_v24, %v128_v50 }
  0x25   :  { %v233_v61 = vmax.f32 %v201_v49, 0.0  ;;  %v203_v22 = vadd.f32 %v434_v25, %v129_v51  ;;  %v131_v23 = vmul.f32 %v438_v27, %v57_v54  ;;  %v59_v1 = vunpack.c.h.bf16 %v28_v44 }
  0x26   :  { %348 = vst [vmem:[%s611_s3 + $0x50] sm:$0xff] %v384_v56  ;;  %v204_v63 = vadd.f32 %v440_v28, %v130_v58  ;;  %v132_v2 = vmul.f32 %v446_v32, %v58_v60  ;;  %v60_v3 = vunpack.c.l.bf16 %v29_v55  ;;  %v234_v26 = vmax.f32 %v202_v62, 0.0 }
  0x27   :  { %v385_v4 = vpack.c.bf16 %v233_v61, %v232_v57  ;;  %v235_v5 = vmax.f32 %v203_v22, 0.0  ;;  %v205_v6 = vadd.f32 %v442_v29, %v131_v23  ;;  %v133_v25 = vmul.f32 %v448_v33, %v59_v1 }
  0x28   :  { %v236_v24 = vmax.f32 %v204_v63, 0.0  ;;  %v206_v27 = vadd.f32 %v452_v36, %v132_v2  ;;  %v61_v7 = vunpack.c.h.bf16 %v29_v55  ;;  %v134_v32 = vmul.f32 %v464_v52, %v60_v3 }
  0x29   :  { %349 = vst [vmem:[%s611_s3 + $0x58] sm:$0xff] %v385_v4  ;;  %v386_v28 = vpack.c.bf16 %v235_v5, %v234_v26  ;;  %v237_v8 = vmax.f32 %v205_v6, 0.0  ;;  %v207_v9 = vadd.f32 %v454_v37, %v133_v25 }
  0x2a   :  { %v238_v10 = vmax.f32 %v206_v27, 0.0  ;;  %v135_v11 = vmul.f32 %v466_v53, %v61_v7  ;;  %v208_v33 = vadd.f32 %v474_v59, %v134_v32 }
  0x2b   :  { %350 = vst [vmem:[%s611_s3 + $0x60] sm:$0xff] %v386_v28  ;;  %v387_v29 = vpack.c.bf16 %v237_v8, %v236_v24  ;;  %v239_v36 = vmax.f32 %v207_v9, 0.0 }
  0x2c   :  { %v209_v12 = vadd.f32 %v481_v0, %v135_v11  ;;  %v240_v52 = vmax.f32 %v208_v33, 0.0 }
  0x2d   :  { %351 = vst [vmem:[%s611_s3 + $0x68] sm:$0xff] %v387_v29  ;;  %v388_v13 = vpack.c.bf16 %v239_v36, %v238_v10 }
  0x2e   :  { %v241_v37 = vmax.f32 %v209_v12, 0.0 }
  0x2f   :  { %352 = vst [vmem:[%s611_s3 + $0x70] sm:$0xff] %v388_v13 }
  0x30   :  { %v389_v53 = vpack.c.bf16 %v241_v37, %v240_v52 }
  0x32   :  { %353 = vst [vmem:[%s611_s3 + $0x78] sm:$0xff] %v389_v53 }

// kernel: preact_block_forward.5
= control target key start
LH: loop header
LB: loop body
LE: loop exit
PB: predicated region body
PF: predicated region fallthrough
CT: control target
= control target key end

     0   :  { %s718_s9 = smov 0   ;;  %s720_s10 = smov 0   ;;  %s771_s0 = inlined_call_operand.vmem [shape: bf16[4,2,9,9,64], index: 0, kind: input, shape index: {}]   ;;  %s772_s1 = inlined_call_operand.vmem [shape: bf16[1,64,128], index: 1, kind: input, shape index: {}]   ;;  %s773_s2 = inlined_call_operand.vmem [shape: bf16[2,64,128], index: 2, kind: output, shape index: {}]  }
   0x1   :  { %s722_s11 = smov 0  }
   0x2 LB: > { %s31_s12 = sadd.s32 1, %s697_s10  ;;  %p549_p0 = scmp.ge.s32.totalorder %s701_s11, 1  ;;  %s701_s11 = sphi %s722_s11, %s12_s11   ;;  %s697_s10 = sphi %s720_s10, %s775_s10   ;;  %s693_s9 = sphi %s718_s9, %s774_s9  }
   0x3   : > { %p33_p1 = scmp.ge.s32.totalorder %s31_s12, 2  ;;  %p155_p2 = scmp.lt.s32.totalorder %s701_s11, 3 }
   0x5   : > { %s777_s12 = smov (%p33_p1, %s31_s12), 0  ;;  %p156_p3 = pnand %p549_p0, %p155_p2 }
   0x6   : > { %v671_v0 = vld [vmem:[%s772_s1] sm:$0xff] (!%p156_p3)   ;;  %p192_p4 = scmp.lt.s32.totalorder (!%p156_p3), %s693_s9, 1  ;;  %v672_v1 = vld [vmem:[%s772_s1 + $0x8] sm:$0xff] (!%p156_p3)   ;;  %v673_v2 = vld [vmem:[%s772_s1 + $0x10] sm:$0xff] (!%p156_p3)   ;;  %vm299_vm0 = vcmask (!%p156_p3), 523264  }
   0x7   : > { %159 = sbr.rel (%p156_p3) target bundleno = 242 (0xf2), region = 28  ;;  %623 = vmatprep.subr.bf16.mxu0 (!%p156_p3), %v671_v0  ;;  %639 = vmatprep.subr.bf16.mxu1 (!%p156_p3), %v671_v0  ;;  %v674_v3 = vld [vmem:[%s772_s1 + $0x18] sm:$0xff] (!%p156_p3)  }
   0x8   : > { %624 = vmatpush3.bf16.msra.mxu0 (!%p156_p3), %v671_v0  ;;  %643 = vmatpush3.bf16.msra.mxu1 (!%p156_p3), %v671_v0 }
   0x9   : > { %625 = vmatprep.subr.bf16.mxu0 (!%p156_p3), %v672_v1  ;;  %640 = vmatprep.subr.bf16.mxu1 (!%p156_p3), %v672_v1 }
   0xc   : > { %626 = vmatpush3.bf16.msra.mxu0 (!%p156_p3), %v672_v1  ;;  %644 = vmatpush3.bf16.msra.mxu1 (!%p156_p3), %v672_v1 }
   0xd   : > { %627 = vmatprep.subr.bf16.mxu0 (!%p156_p3), %v673_v2  ;;  %641 = vmatprep.subr.bf16.mxu1 (!%p156_p3), %v673_v2 }
   0xe   : > { %s779_s9 = smov (!%p192_p4, %s693_s9), 1 }
   0xf   : > { %s550_s19 = smul.u32 72, %s779_s9  ;;  %s583_s25 = sshll.u32 %s779_s9, 5 }
  0x10   : > { %628 = vmatpush3.bf16.msra.mxu0 %v673_v2  ;;  %645 = vmatpush3.bf16.msra.mxu1 %v673_v2  ;;  %s217_s28 = scalar_lea.vmem %s773_s2, %s583_s25 }
  0x11   : > { %s486_s24 = scalar_lea.vmem %s771_s0, %s550_s19  ;;  %629 = vmatprep.subr.bf16.mxu0 %v674_v3  ;;  %642 = vmatprep.subr.bf16.mxu1 %v674_v3 }
  0x12   : > { %v675_v4 = vld [vmem:[%s486_s24 + $0x1b0] ss:$8 sps:$4 sm:$0xff]   ;;  %v677_v6 = vld [vmem:[%s486_s24 + $0x1c0] ss:$8 sps:$4 sm:$0xff]  }
  0x13   : > { %v676_v5 = vld [vmem:[%s486_s24 + $0x1d0] ss:$8 sps:$4 sm:$0xff]   ;;  %631 = vmatprep.mubr.msk.bf16.mxu0 %vm299_vm0, %v675_v4  ;;  %v678_v7 = vld [vmem:[%s486_s24 + $0x1e0] ss:$8 sps:$4 sm:$0xff]  }
  0x14   : > { %635 = vmatprep.mubr.msk.bf16.mxu1 %vm299_vm0, %v676_v5  ;;  %630 = vmatpush3.bf16.msra.mxu0 %v674_v3 }
  0x15   : > { %646 = vmatpush3.bf16.msra.mxu1 %v674_v3 }
  0x17   : > { %632 = vmatmul.mubr.msk.bf16.vlgmr.msra.gmra.mrb[0].mxu0 %vm299_vm0, %v677_v6 }
  0x18   : > { %636 = vmatmul.mubr.msk.bf16.vlgmr.msra.gmra.mrb[0].mxu1 %vm299_vm0, %v678_v7 }
  0xea   : > { %v633_v8 = vpop.f32.mrb[0].mxu0 }
  0xeb   : > { %v637_v9 = vpop.f32.mrb[0].mxu1  ;;  %v346_v10 = vpop.f32.mrb[1].mxu0 }
  0xec   : > { %v362_v11 = vpop.f32.mrb[1].mxu1  ;;  %v634_v12 = vpop.f32.mrb[2].mxu0 }
  0xed   : > { %v638_v13 = vpop.f32.mrb[2].mxu1  ;;  %v600_v14 = vpack.c.bf16 %v634_v12, %v633_v8  ;;  %v349_v16 = vpop.f32.mrb[3].mxu0 }
  0xee   : > { %v610_v15 = vpack.c.bf16 %v638_v13, %v637_v9  ;;  %v365_v17 = vpop.f32.mrb[3].mxu1  ;;  %v595_v18 = vpack.c.bf16 %v349_v16, %v346_v10 }
  0xef   : > { %v605_v19 = vpack.c.bf16 %v365_v17, %v362_v11  ;;  %612 = vst [vmem:[%s217_s28 + $0x8] sm:$0xff] %v600_v14  }
  0xf0   : > { %614 = vst [vmem:[%s217_s28 + $0x18] sm:$0xff] %v610_v15   ;;  %596 = vst [vmem:[%s217_s28] sm:$0xff] %v595_v18  }
  0xf1   : > { %613 = vst [vmem:[%s217_s28 + $0x10] sm:$0xff] %v605_v19  }
  0xf2 PF: > { %s12_s11 = sadd.s32 1, %s701_s11   ;;  %s774_s9 = smov %s697_s10 }
  0xf3   : > { %p9_p5 = scmp.ge.s32.totalorder %s12_s11, 4   ;;  %s775_s10 = smov %s777_s12 }
  0xf5   :  { %11 = sbr.rel (!%p9_p5) target bundleno = 2 (0x2), region = 69 }

// kernel: preact_block_forward.6
= control target key start
LH: loop header
LB: loop body
LE: loop exit
PB: predicated region body
PF: predicated region fallthrough
CT: control target
= control target key end

     0   :  { %s3194_s12 = smov 0   ;;  %s3196_s13 = smov 0   ;;  %s3631_s0 = inlined_call_operand.vmem [shape: bf16[4,2,9,9,64], index: 0, kind: input, shape index: {}]   ;;  %s3632_s1 = inlined_call_operand.vmem [shape: bf16[9,64,128], index: 1, kind: input, shape index: {}]   ;;  %s3633_s2 = inlined_call_operand.vmem [shape: f32[1,128], index: 2, kind: input, shape index: {}]   ;;  %s3634_s3 = inlined_call_operand.vmem [shape: bf16[2,64,128], index: 3, kind: output, shape index: {}]  }
   0x1   :  { %s3198_s14 = smov 0   ;;  %s3200_s15 = smov 0  }
   0x2   :  { %s3202_s16 = smov 0  }
   0x3 LB: > { %s32_s17 = sadd.s32 1, %s3168_s15  ;;  %p48_p1 = scmp.ne.s32.totalorder %s3160_s13, %s3156_s12  ;;  %s3172_s16 = sphi %s3202_s16, %s13_s16   ;;  %s3168_s15 = sphi %s3200_s15, %s3640_s15   ;;  %s3164_s14 = sphi %s3198_s14, %s3639_s14   ;;  %s3160_s13 = sphi %s3196_s13, %s3638_s13   ;;  %s3156_s12 = sphi %s3194_s12, %s3637_s12  }
   0x4   : > { %p34_p0 = scmp.ge.s32.totalorder %s32_s17, 2  ;;  %p49_p2 = scmp.eq.s32.totalorder %s3172_s16, 0 }
   0x5   : > { %s41_s19 = sadd.s32 1, %s3160_s13  ;;  %p2451_p5 = scmp.ge.s32.totalorder %s3172_s16, 2 }
   0x6   : > { %s3642_s17 = smov (%p34_p0, %s32_s17), 0  ;;  %p50_p3 = por %p49_p2, %p48_p1 }
   0x7   : > { %s36_s18 = ssub.s32 %s3168_s15, %s3642_s17  ;;  %174 = sbr.rel (%p2451_p5) target bundleno = 37 (0x25), region = 24 }
   0x8   : > { %p39_p4 = scmp.eq.s32.totalorder %s36_s18, 0 }
   0xa   : > { %s3229_s20 = scalar_select %p39_p4, %s3160_s13, %s41_s19  }
   0xe   : > { %177 = sbr.rel (!%p50_p3) target bundleno = 37 (0x25), region = 28  ;;  %s179_s21 = sand.u32 (%p50_p3), 1, %s3160_s13  }
   0xf   : > { %s3032_s22 = smul.u32 (%p50_p3), 72, %s3168_s15 }
  0x10   : > { %s3031_s23 = smul.u32 (%p50_p3), 288, %s179_s21 }
  0x11   : > { %s3237_s26 = scalar_lea.vmem (%p50_p3), %s3631_s0, %s3032_s22 }
  0x12   : > { %v201_v0 = vld [vmem:[%s3237_s26] sm:$0xff] (%p50_p3)   ;;  %v205_v1 = vld [vmem:[%s3237_s26 + $0x8] sm:$0xff] (%p50_p3)   ;;  %v209_v2 = vld [vmem:[%s3237_s26 + $0x10] sm:$0xff] (%p50_p3)   ;;  %s3242_s27 = scalar_lea.vmem (%p50_p3), [#allocation3], %s3031_s23 }
  0x13   : > { %202 = vst [vmem:[%s3242_s27] sm:$0xff] (%p50_p3), %v201_v0   ;;  %206 = vst [vmem:[%s3242_s27 + $0x8] sm:$0xff] (%p50_p3), %v205_v1   ;;  %v213_v3 = vld [vmem:[%s3237_s26 + $0x18] sm:$0xff] (%p50_p3)   ;;  %v217_v4 = vld [vmem:[%s3237_s26 + $0x20] sm:$0xff] (%p50_p3)  }
  0x14   : > { %210 = vst [vmem:[%s3242_s27 + $0x10] sm:$0xff] (%p50_p3), %v209_v2   ;;  %v221_v5 = vld [vmem:[%s3237_s26 + $0x28] sm:$0xff] (%p50_p3)   ;;  %214 = vst [vmem:[%s3242_s27 + $0x18] sm:$0xff] (%p50_p3), %v213_v3   ;;  %v225_v6 = vld [vmem:[%s3237_s26 + $0x30] sm:$0xff] (%p50_p3)  }
  0x15   : > { %218 = vst [vmem:[%s3242_s27 + $0x20] sm:$0xff] %v217_v4   ;;  %222 = vst [vmem:[%s3242_s27 + $0x28] sm:$0xff] %v221_v5   ;;  %v229_v7 = vld [vmem:[%s3237_s26 + $0x38] sm:$0xff]   ;;  %v233_v8 = vld [vmem:[%s3237_s26 + $0x40] sm:$0xff]  }
  0x16   : > { %226 = vst [vmem:[%s3242_s27 + $0x30] sm:$0xff] %v225_v6   ;;  %230 = vst [vmem:[%s3242_s27 + $0x38] sm:$0xff] %v229_v7   ;;  %v237_v9 = vld [vmem:[%s3237_s26 + $0x90] sm:$0xff]   ;;  %v241_v10 = vld [vmem:[%s3237_s26 + $0x98] sm:$0xff]  }
  0x17   : > { %234 = vst [vmem:[%s3242_s27 + $0x40] sm:$0xff] %v233_v8   ;;  %v245_v11 = vld [vmem:[%s3237_s26 + $0xa0] sm:$0xff]   ;;  %238 = vst [vmem:[%s3242_s27 + $0x48] sm:$0xff] %v237_v9   ;;  %v249_v12 = vld [vmem:[%s3237_s26 + $0xa8] sm:$0xff]  }
  0x18   : > { %242 = vst [vmem:[%s3242_s27 + $0x50] sm:$0xff] %v241_v10   ;;  %246 = vst [vmem:[%s3242_s27 + $0x58] sm:$0xff] %v245_v11   ;;  %v253_v13 = vld [vmem:[%s3237_s26 + $0xb0] sm:$0xff]   ;;  %v257_v14 = vld [vmem:[%s3237_s26 + $0xb8] sm:$0xff]  }
  0x19   : > { %250 = vst [vmem:[%s3242_s27 + $0x60] sm:$0xff] %v249_v12   ;;  %254 = vst [vmem:[%s3242_s27 + $0x68] sm:$0xff] %v253_v13   ;;  %v261_v15 = vld [vmem:[%s3237_s26 + $0xc0] sm:$0xff]   ;;  %v265_v16 = vld [vmem:[%s3237_s26 + $0xc8] sm:$0xff]  }
  0x1a   : > { %258 = vst [vmem:[%s3242_s27 + $0x70] sm:$0xff] %v257_v14   ;;  %v269_v17 = vld [vmem:[%s3237_s26 + $0xd0] sm:$0xff]   ;;  %262 = vst [vmem:[%s3242_s27 + $0x78] sm:$0xff] %v261_v15   ;;  %v273_v18 = vld [vmem:[%s3237_s26 + $0x120] sm:$0xff]  }
  0x1b   : > { %266 = vst [vmem:[%s3242_s27 + $0x80] sm:$0xff] %v265_v16   ;;  %270 = vst [vmem:[%s3242_s27 + $0x88] sm:$0xff] %v269_v17   ;;  %v277_v19 = vld [vmem:[%s3237_s26 + $0x128] sm:$0xff]   ;;  %v281_v20 = vld [vmem:[%s3237_s26 + $0x130] sm:$0xff]  }
  0x1c   : > { %274 = vst [vmem:[%s3242_s27 + $0x90] sm:$0xff] %v273_v18   ;;  %278 = vst [vmem:[%s3242_s27 + $0x98] sm:$0xff] %v277_v19   ;;  %v285_v21 = vld [vmem:[%s3237_s26 + $0x138] sm:$0xff]   ;;  %v289_v22 = vld [vmem:[%s3237_s26 + $0x140] sm:$0xff]  }
  0x1d   : > { %282 = vst [vmem:[%s3242_s27 + $0xa0] sm:$0xff] %v281_v20   ;;  %v293_v23 = vld [vmem:[%s3237_s26 + $0x148] sm:$0xff]   ;;  %286 = vst [vmem:[%s3242_s27 + $0xa8] sm:$0xff] %v285_v21   ;;  %v297_v24 = vld [vmem:[%s3237_s26 + $0x150] sm:$0xff]  }
  0x1e   : > { %290 = vst [vmem:[%s3242_s27 + $0xb0] sm:$0xff] %v289_v22   ;;  %294 = vst [vmem:[%s3242_s27 + $0xb8] sm:$0xff] %v293_v23   ;;  %v301_v25 = vld [vmem:[%s3237_s26 + $0x158] sm:$0xff]   ;;  %v305_v26 = vld [vmem:[%s3237_s26 + $0x160] sm:$0xff]  }
  0x1f   : > { %298 = vst [vmem:[%s3242_s27 + $0xc0] sm:$0xff] %v297_v24   ;;  %302 = vst [vmem:[%s3242_s27 + $0xc8] sm:$0xff] %v301_v25   ;;  %v309_v27 = vld [vmem:[%s3237_s26 + $0x1b0] sm:$0xff]   ;;  %v313_v28 = vld [vmem:[%s3237_s26 + $0x1b8] sm:$0xff]  }
  0x20   : > { %306 = vst [vmem:[%s3242_s27 + $0xd0] sm:$0xff] %v305_v26   ;;  %v317_v29 = vld [vmem:[%s3237_s26 + $0x1c0] sm:$0xff]   ;;  %310 = vst [vmem:[%s3242_s27 + $0xd8] sm:$0xff] %v309_v27   ;;  %v321_v30 = vld [vmem:[%s3237_s26 + $0x1c8] sm:$0xff]  }
  0x21   : > { %314 = vst [vmem:[%s3242_s27 + $0xe0] sm:$0xff] %v313_v28   ;;  %318 = vst [vmem:[%s3242_s27 + $0xe8] sm:$0xff] %v317_v29   ;;  %v325_v31 = vld [vmem:[%s3237_s26 + $0x1d0] sm:$0xff]   ;;  %v329_v32 = vld [vmem:[%s3237_s26 + $0x1d8] sm:$0xff]  }
  0x22   : > { %322 = vst [vmem:[%s3242_s27 + $0xf0] sm:$0xff] %v321_v30   ;;  %326 = vst [vmem:[%s3242_s27 + $0xf8] sm:$0xff] %v325_v31   ;;  %v333_v33 = vld [vmem:[%s3237_s26 + $0x1e0] sm:$0xff]   ;;  %v337_v34 = vld [vmem:[%s3237_s26 + $0x1e8] sm:$0xff]  }
  0x23   : > { %330 = vst [vmem:[%s3242_s27 + $0x100] sm:$0xff] %v329_v32   ;;  %v341_v35 = vld [vmem:[%s3237_s26 + $0x1f0] sm:$0xff]   ;;  %334 = vst [vmem:[%s3242_s27 + $0x108] sm:$0xff] %v333_v33  }
  0x24   : > { %338 = vst [vmem:[%s3242_s27 + $0x110] sm:$0xff] %v337_v34   ;;  %342 = vst [vmem:[%s3242_s27 + $0x118] sm:$0xff] %v341_v35  }
  0x25 PF: > { %p2453_p6 = scmp.ge.s32.totalorder %s3172_s16, 1  ;;  %p510_p7 = scmp.lt.s32.totalorder %s3172_s16, 3 }
  0x27   : > { %p511_p8 = pnand %p2453_p6, %p510_p7 }
  0x28   : > { %v3074_v36 = vld [vmem:[%s3632_s1] sm:$0xff] (!%p511_p8)   ;;  %s517_s30 = sand.u32 (!%p511_p8), 1, %s3156_s12   ;;  %v3076_v38 = vld [vmem:[%s3632_s1 + $0x8] sm:$0xff] (!%p511_p8)   ;;  %v3078_v40 = vld [vmem:[%s3632_s1 + $0x10] sm:$0xff] (!%p511_p8)   ;;  %vm655_vm0 = vcmask (!%p511_p8), 523264   ;;  %p566_p9 = scmp.lt.s32.totalorder (!%p511_p8), %s3164_s14, 1 }
  0x29   : > { %514 = sbr.rel (%p511_p8) target bundleno = 358 (0x166), region = 69  ;;  %v3075_v37 = vld [vmem:[%s3632_s1 + $0x80] sm:$0xff] (!%p511_p8)   ;;  %2815 = vmatprep.subr.bf16.mxu1 (!%p511_p8), %v3074_v36  ;;  %v3077_v39 = vld [vmem:[%s3632_s1 + $0x88] sm:$0xff] (!%p511_p8)   ;;  %v3079_v41 = vld [vmem:[%s3632_s1 + $0x90] sm:$0xff] (!%p511_p8)   ;;  %vm904_vm1 = vsmask.f32 (!%p511_p8), 3328 }
  0x2a   : > { %s3033_s6 = smul.u32 (!%p511_p8), 288, %s517_s30  ;;  %2879 = vmatprep.subr.bf16.mxu0 (!%p511_p8), %v3075_v37  ;;  %2816 = vmatpush3.bf16.msra.mxu1 (!%p511_p8), %v3074_v36  ;;  %v3080_v42 = vld [vmem:[%s3632_s1 + $0x18] sm:$0xff] (!%p511_p8)   ;;  %v3085_v47 = vld [vmem:[%s3632_s1 + $0x20] sm:$0xff] (!%p511_p8)   ;;  %v3088_v50 = vld [vmem:[%s3632_s1 + $0x28] sm:$0xff] (!%p511_p8)   ;;  %vm905_vm2 = vsmask.f32 (!%p511_p8), 7440 }
  0x2b   : > { %2880 = vmatpush3.bf16.msra.mxu0 (!%p511_p8), %v3075_v37  ;;  %2817 = vmatprep.subr.bf16.mxu1 (!%p511_p8), %v3076_v38  ;;  %v3081_v43 = vld [vmem:[%s3632_s1 + $0x98] sm:$0xff] (!%p511_p8)   ;;  %v3087_v48 = vld [vmem:[%s3632_s1 + $0xa0] sm:$0xff] (!%p511_p8)   ;;  %v3089_v51 = vld [vmem:[%s3632_s1 + $0xa8] sm:$0xff] (!%p511_p8)  }
  0x2c   : > { %2881 = vmatprep.subr.bf16.mxu0 (!%p511_p8), %v3077_v39  ;;  %s3340_s25 = scalar_lea.vmem (!%p511_p8), [#allocation3], %s3033_s6  ;;  %v3093_v55 = vld [vmem:[%s3632_s1 + $0x30] sm:$0xff] (!%p511_p8)   ;;  %v3096_v58 = vld [vmem:[%s3632_s1 + $0x38] sm:$0xff] (!%p511_p8)   ;;  %v3100_v9 = vld [vmem:[%s3632_s1 + $0x40] sm:$0xff] (!%p511_p8)  }
  0x2d   : > { %v3082_v44 = vld [vmem:[%s3340_s25] ss:$8 sps:$4 sm:$0xff] (!%p511_p8)   ;;  %v3084_v46 = vld [vmem:[%s3340_s25 + $0x10] ss:$8 sps:$4 sm:$0xff] (!%p511_p8)   ;;  %v2573_v62 = vld [vmem:[%s3340_s25 + $0x94] sm:$0x1] (!%p511_p8) }
  0x2e   : > { %2818 = vmatpush3.bf16.msra.mxu1 (!%p511_p8), %v3076_v38  ;;  %v3083_v45 = vld [vmem:[%s3340_s25 + $0xd8] ss:$8 sps:$4 sm:$0xff] (!%p511_p8)   ;;  %2823 = vmatprep.mubr.msk.bf16.mxu1 (!%p511_p8), %vm655_vm0, %v3082_v44  ;;  %v3086_v49 = vld [vmem:[%s3340_s25 + $0xe8] ss:$8 sps:$4 sm:$0xff] (!%p511_p8)   ;;  %v2575_v2 = vld [vmem:[%s3340_s25 + $0x9c] sm:$0x1] (!%p511_p8) }
  0x2f   : > { %2882 = vmatpush3.bf16.msra.mxu0 (!%p511_p8), %v3077_v39  ;;  %2819 = vmatprep.subr.bf16.mxu1 (!%p511_p8), %v3078_v40  ;;  %v3090_v52 = vld [vmem:[%s3340_s25 + $0x20] ss:$8 sps:$4 sm:$0xff] (!%p511_p8)   ;;  %v3092_v54 = vld [vmem:[%s3340_s25 + $0x30] ss:$8 sps:$4 sm:$0xff] (!%p511_p8)   ;;  %v1469_v3 = vshll.u32 (!%p511_p8), %v2573_v62, 16  ;;  %v1483_v8 = vshll.u32 (!%p511_p8), %v2575_v2, 16  ;;  %vm3393_vm3 = vmor (!%p511_p8), %vm904_vm1, %vm905_vm2 }
  0x30   : > { %2883 = vmatprep.subr.bf16.mxu0 %v3079_v41  ;;  %2887 = vmatprep.mubr.msk.bf16.mxu0 %vm655_vm0, %v3083_v45  ;;  %v3091_v53 = vld [vmem:[%s3340_s25 + $0xf8] ss:$8 sps:$4 sm:$0xff]   ;;  %v3094_v56 = vld [vmem:[%s3340_s25 + $0x108] ss:$8 sps:$4 sm:$0xff]   ;;  %v2577_v21 = vld [vmem:[%s3340_s25 + $0xa4] sm:$0x1] }
  0x31   : > { %v3095_v57 = vld [vmem:[%s3632_s1 + $0xb0] sm:$0xff]   ;;  %v3097_v59 = vld [vmem:[%s3632_s1 + $0xb8] sm:$0xff]   ;;  %v1471_v11 = vrot.slane %v1469_v3, 5  ;;  %v3400_v14 = vld [vmem:[%s3632_s1 + $0xc0] sm:$0xff]   ;;  %v1485_v16 = vrot.slane %v1483_v8, 5  ;;  %v1497_v28 = vshll.u32 %v2577_v21, 16 }
  0x32   : > { %2820 = vmatpush3.bf16.msra.mxu1 %v3078_v40  ;;  %v3098_v60 = vld [vmem:[%s3340_s25 + $0x48] ss:$8 sps:$4 sm:$0xff]   ;;  %v2574_v63 = vld [vmem:[%s3340_s25 + $0x98] sm:$0xf]  ;;  %v2576_v20 = vld [vmem:[%s3340_s25 + $0xa0] sm:$0xf] }
  0x33   : > { %2884 = vmatpush3.bf16.msra.mxu0 %v3079_v41  ;;  %2821 = vmatprep.subr.bf16.mxu1 %v3080_v42  ;;  %v2572_v61 = vld [vmem:[%s3340_s25 + $0x90] sm:$0xf]  ;;  %v1474_v4 = vshrl.u32 %v2574_v63, 16  ;;  %v1477_v5 = vshll.u32 %v2574_v63, 16  ;;  %v3099_v17 = vld [vmem:[%s3340_s25 + $0x58] ss:$8 sps:$4 sm:$0xff]  }
  0x34   : > { %2885 = vmatprep.subr.bf16.mxu0 %v3081_v43  ;;  %v1460_v0 = vshrl.u32 %v2572_v61, 16  ;;  %v1463_v1 = vshll.u32 %v2572_v61, 16  ;;  %v3102_v18 = vld [vmem:[%s3632_s1 + $0x48] sm:$0xff]   ;;  %v1488_v25 = vshrl.u32 %v2576_v20, 16  ;;  %v1491_v27 = vshll.u32 %v2576_v20, 16  ;;  %v3106_v38 = vld [vmem:[%s3632_s1 + $0x50] sm:$0xff]  }
  0x35   : > { %v1476_v12 = vrot.slane %v1474_v4, 4  ;;  %v1479_v13 = vrot.slane %v1477_v5, 5  ;;  %v2578_v23 = vld [vmem:[%s3340_s25 + $0xa8] sm:$0xf]  ;;  %v2579_v24 = vld [vmem:[%s3340_s25 + $0xac] sm:$0x1] }
  0x36   : > { %2822 = vmatpush3.bf16.msra.mxu1 %v3080_v42  ;;  %v1462_v6 = vrot.slane %v1460_v0, 4  ;;  %v1465_v7 = vrot.slane %v1463_v1, 5  ;;  %v1502_v29 = vshrl.u32 %v2578_v23, 16  ;;  %v1490_v31 = vrot.slane %v1488_v25, 4  ;;  %v3104_v44 = vld [vmem:[%s3340_s25 + $0x68] ss:$8 sps:$4 sm:$0xff]  }
  0x37   : > { %2886 = vmatpush3.bf16.msra.mxu0 %v3081_v43  ;;  %2831 = vmatprep.subr.bf16.mxu1 %v3085_v47  ;;  %v1480_v19 = vor.u32 %v1479_v13, %v1476_v12  ;;  %v1505_v32 = vshll.u32 %v2578_v23, 16  ;;  %v1511_v33 = vshll.u32 %v2579_v24, 16  ;;  %v1493_v35 = vrot.slane %v1491_v27, 5  ;;  %v2580_v45 = vld [vmem:[%s3340_s25 + $0xb0] sm:$0xf]  ;;  %v3103_v61 = vld [vmem:[%s3632_s1 + $0xc8] sm:$0xff]  }
  0x38   : > { %2895 = vmatprep.subr.bf16.mxu0 %v3087_v48  ;;  %v1466_v15 = vor.u32 %v1465_v7, %v1462_v6  ;;  %v1499_v36 = vrot.slane %v1497_v28, 5  ;;  %v1504_v37 = vrot.slane %v1502_v29, 4  ;;  %v3105_v1 = vld [vmem:[%s3340_s25 + $0x78] ss:$8 sps:$4 sm:$0xff]   ;;  %v2585_v7 = vld [vmem:[%s3340_s25 + $0xc4] sm:$0x1] }
  0x39   : > { %2824 = vmatmul.mubr.msk.bf16.vlgmr.msra.gmra.mrb[0].mxu1 %vm655_vm0, %v3084_v46  ;;  %v1481_v26 = vrot.slane %v1480_v19, 4  ;;  %v1507_v40 = vrot.slane %v1505_v32, 5  ;;  %v1513_v41 = vrot.slane %v1511_v33, 5  ;;  %v1494_v42 = vor.u32 %v1493_v35, %v1490_v31  ;;  %v2581_v46 = vld [vmem:[%s3340_s25 + $0xb4] sm:$0x1]  ;;  %v3109_v31 = vld [vmem:[%s3632_s1 + $0xd8] sm:$0xff]  }
  0x3a   : > { %2888 = vmatmul.mubr.msk.bf16.vlgmr.msra.gmra.mrb[0].mxu0 %vm655_vm0, %v3086_v49  ;;  %2832 = vmatpush3.bf16.msra.mxu1 %v3085_v47  ;;  %v1467_v22 = vrot.slane %v1466_v15, 4  ;;  %v2583_v49 = vld [vmem:[%s3340_s25 + $0xbc] sm:$0x1]  ;;  %v2584_v6 = vld [vmem:[%s3340_s25 + $0xc0] sm:$0xf]  ;;  %v1553_v15 = vshll.u32 %v2585_v7, 16 }
  0x3b   : > { %2896 = vmatpush3.bf16.msra.mxu0 %v3087_v48  ;;  %2833 = vmatprep.subr.bf16.mxu1 %v3088_v50  ;;  %v1486_v34 = vsel %vm3393_vm3, %v1481_v26, %v1485_v16  ;;  %v1508_v43 = vor.u32 %v1507_v40, %v1504_v37  ;;  %v1495_v47 = vrot.slane %v1494_v42, 4  ;;  %v2582_v48 = vld [vmem:[%s3340_s25 + $0xb8] sm:$0xf]  ;;  %v2586_v8 = vld [vmem:[%s3340_s25 + $0xc8] sm:$0xf]  ;;  %v1544_v12 = vshrl.u32 %v2584_v6, 16 }
  0x3c   : > { %2897 = vmatprep.subr.bf16.mxu0 %v3089_v51  ;;  %2827 = vmatprep.mubr.msk.bf16.mxu1 %vm655_vm0, %v3090_v52  ;;  %v1472_v30 = vsel %vm3393_vm3, %v1467_v22, %v1471_v11  ;;  %v1519_v52 = vshll.u32 %v2580_v45, 16  ;;  %v2587_v11 = vld [vmem:[%s3340_s25 + $0xcc] sm:$0x1]  ;;  %v1547_v13 = vshll.u32 %v2584_v6, 16  ;;  %v3107_v16 = vld [vmem:[%s3632_s1 + $0xd0] sm:$0xff]   ;;  %v1558_v19 = vshrl.u32 %v2586_v8, 16 }
  0x3d   : > { %2891 = vmatprep.mubr.msk.bf16.mxu0 %vm655_vm0, %v3091_v53  ;;  %v2596_v39 = vcombine.low %v1472_v30, %v1486_v34  ;;  %v1525_v53 = vshll.u32 %v2581_v46, 16  ;;  %v1561_v20 = vshll.u32 %v2586_v8, 16  ;;  %v1567_v21 = vshll.u32 %v2587_v11, 16  ;;  %v888_v34 = vld [vmem:[%s3340_s25] sm:$0xf]  ;;  %s3644_s14 = smov (!%p566_p9, %s3164_s14), 1 }
  0x3e   : > { %2834 = vmatpush3.bf16.msra.mxu1 %v3088_v50  ;;  %v1516_v50 = vshrl.u32 %v2580_v45, 16  ;;  %v1521_v62 = vrot.slane %v1519_v52, 5  ;;  %v1546_v23 = vrot.slane %v1544_v12, 4  ;;  %v1549_v24 = vrot.slane %v1547_v13, 5  ;;  %v889_v35 = vld [vmem:[%s3340_s25 + $0x4] sm:$0x1] }
  0x3f   : > { %2898 = vmatpush3.bf16.msra.mxu0 %v3089_v51  ;;  %2835 = vmatprep.subr.bf16.mxu1 %v3093_v55  ;;  %v1509_v51 = vrot.slane %v1508_v43, 4  ;;  %v1527_v63 = vrot.slane %v1525_v53, 5  ;;  %v1555_v25 = vrot.slane %v1553_v15, 5  ;;  %v1560_v27 = vrot.slane %v1558_v19, 4  ;;  %v3112_v19 = vld [vmem:[%s3340_s25 + $0x18] ss:$8 sps:$4 sm:$0xff]  }
  0x40   : > { %2899 = vmatprep.subr.bf16.mxu0 %v3095_v57  ;;  %v1563_v28 = vrot.slane %v1561_v20, 5  ;;  %v1550_v30 = vor.u32 %v1549_v24, %v1546_v23  ;;  %v911_v40 = vshll.u32 %v888_v34, 16  ;;  %v3115_v24 = vld [vmem:[%s3632_s1 + $0xe8] sm:$0xff]   ;;  %s2711_s22 = sshll.u32 %s3644_s14, 5 }
  0x41   : > { %2828 = vmatmul.mubr.msk.bf16.gmra.mrb[4].mxu1 %vm655_vm0, %v3092_v54  ;;  %v1530_v54 = vshrl.u32 %v2582_v48, 16  ;;  %s573_s26 = scalar_lea.vmem %s3634_s3, %s2711_s22 }
  0x42   : > { %2892 = vmatmul.mubr.msk.bf16.gmra.mrb[4].mxu0 %vm655_vm0, %v3094_v56  ;;  %2836 = vmatpush3.bf16.msra.mxu1 %v3093_v55  ;;  %v1500_v55 = vsel %vm3393_vm3, %v1495_v47, %v1499_v36  ;;  %v1518_v56 = vrot.slane %v1516_v50, 4  ;;  %v1564_v33 = vor.u32 %v1563_v28, %v1560_v27  ;;  %v890_v36 = vld [vmem:[%s3340_s25 + $0x8] sm:$0xf]  ;;  %v1551_v37 = vrot.slane %v1550_v30, 4 }
  0x43   : > { %2900 = vmatpush3.bf16.msra.mxu0 %v3095_v57  ;;  %2837 = vmatprep.subr.bf16.mxu1 %v3096_v58  ;;  %v1533_v57 = vshll.u32 %v2582_v48, 16  ;;  %v1532_v0 = vrot.slane %v1530_v54, 4  ;;  %v922_v43 = vshrl.u32 %v890_v36, 16  ;;  %v913_v48 = vrot.slane %v911_v40, 5  ;;  %v3110_v54 = vld [vmem:[%s3340_s25 + $0x8] ss:$8 sps:$4 sm:$0xff]  }
  0x44   : > { %2901 = vmatprep.subr.bf16.mxu0 %v3097_v59  ;;  %2839 = vmatprep.mubr.msk.bf16.mxu1 %vm655_vm0, %v3098_v60  ;;  %v1514_v60 = vsel %vm3393_vm3, %v1509_v51, %v1513_v41  ;;  %v1522_v5 = vor.u32 %v1521_v62, %v1518_v56  ;;  %v917_v41 = vshll.u32 %v889_v35, 16  ;;  %v1565_v42 = vrot.slane %v1564_v33, 4  ;;  %v895_v62 = vld [vmem:[%s3340_s25 + $0x1c] sm:$0x1]  ;;  %v898_v28 = vld [vmem:[%s3340_s25 + $0x28] sm:$0xf] }
  0x45   : > { %2903 = vmatprep.mubr.msk.bf16.mxu0 %vm655_vm0, %v2596_v39  ;;  %v2597_v2 = vcombine.low %v1500_v55, %v1514_v60  ;;  %v1535_v3 = vrot.slane %v1533_v57, 5  ;;  %v908_v39 = vshrl.u32 %v888_v34, 16  ;;  %v1556_v46 = vsel %vm3393_vm3, %v1551_v37, %v1555_v25  ;;  %v3113_v55 = vld [vmem:[%s3632_s1 + $0xe0] sm:$0xff]   ;;  %v894_v60 = vld [vmem:[%s3340_s25 + $0x18] sm:$0xf] }
  0x46   : > { %2838 = vmatpush3.bf16.msra.mxu1 %v3096_v58  ;;  %v1539_v58 = vshll.u32 %v2583_v49, 16  ;;  %v919_v49 = vrot.slane %v917_v41, 5  ;;  %v924_v51 = vrot.slane %v922_v43, 4  ;;  %v896_v25 = vld [vmem:[%s3340_s25 + $0x20] sm:$0xf]  ;;  %v978_v33 = vshrl.u32 %v898_v28, 16 }
  0x47   : > { %2902 = vmatpush3.bf16.msra.mxu0 %v3097_v59  ;;  %2847 = vmatprep.subr.bf16.mxu1 %v3100_v9  ;;  %v3108_v59 = vld [vmem:[%s3632_s1 + $0x58] sm:$0xff]   ;;  %v910_v47 = vrot.slane %v908_v39, 4  ;;  %v967_v30 = vshll.u32 %v896_v25, 16  ;;  %v981_v34 = vshll.u32 %v898_v28, 16  ;;  %v3119_v43 = vld [vmem:[%s3632_s1 + $0xf0] sm:$0xff]  }
  0x48   : > { %2911 = vmatprep.subr.bf16.mxu0 %v3400_v14  ;;  %v1541_v4 = vrot.slane %v1539_v58, 5  ;;  %v892_v58 = vld [vmem:[%s3340_s25 + $0x10] sm:$0xf]  ;;  %v980_v40 = vrot.slane %v978_v33, 4  ;;  %v3557_v28 = vld [vmem:[%s3632_s1 + $0x118] sm:$0xff]  }
  0x49   : > { %2840 = vmatmul.mubr.msk.bf16.vlgmr.msra.gmra.mrb[0].mxu1 %vm655_vm0, %v3099_v17  ;;  %v3449_v17 = vld [vmem:[%s3632_s1 + $0x60] sm:$0xff]   ;;  %v914_v57 = vor.u32 %v913_v48, %v910_v47  ;;  %v983_v41 = vrot.slane %v981_v34, 5  ;;  %v900_v47 = vld [vmem:[%s3340_s25 + $0x30] sm:$0xf]  ;;  %v901_v48 = vld [vmem:[%s3340_s25 + $0x34] sm:$0x1] }
  0x4a   : > { %2848 = vmatpush3.bf16.msra.mxu1 %v3100_v9  ;;  %2843 = vmatprep.mubr.msk.bf16.mxu1 %vm655_vm0, %v3104_v44  ;;  %v1536_v9 = vor.u32 %v1535_v3, %v1532_v0  ;;  %v925_v44 = vshll.u32 %v890_v36, 16  ;;  %v939_v0 = vshll.u32 %v892_v58, 16  ;;  %v950_v3 = vshrl.u32 %v894_v60, 16  ;;  %v3114_v36 = vld [vmem:[%s3632_s1 + $0x68] sm:$0xff]  }
  0x4b   : > { %2849 = vmatprep.subr.bf16.mxu1 %v3102_v18  ;;  %2904 = vmatmul.mubr.msk.bf16.vlgmr.msra.gmra.mrb[0].mxu0 %vm655_vm0, %v2597_v2  ;;  %v915_v2 = vrot.slane %v914_v57, 4  ;;  %v1001_v57 = vshll.u32 %v901_v48, 16  ;;  %v2675_v48 = vld [vmem:[%s3340_s25 + $0x34] sm:$0x1] }
  0x4c   : > { %2912 = vmatpush3.bf16.msra.mxu0 %v3400_v14  ;;  %v1537_v22 = vrot.slane %v1536_v9, 4  ;;  %v1569_v14 = vrot.slane %v1567_v21, 5  ;;  %v927_v52 = vrot.slane %v925_v44, 5  ;;  %v941_v8 = vrot.slane %v939_v0, 5 }
  0x4d   : > { %2913 = vmatprep.subr.bf16.mxu0 %v3103_v61  ;;  %v920_v11 = vsel %vm3393_vm3, %v915_v2, %v919_v49  ;;  %v952_v12 = vrot.slane %v950_v3, 4  ;;  %v3117_v49 = vld [vmem:[%s3632_s1 + $0x70] sm:$0xff]   ;;  %v3120_v2 = vld [vmem:[%s3632_s1 + $0x78] sm:$0xff]  }
  0x4e   : > { %2850 = vmatpush3.bf16.msra.mxu1 %v3102_v18  ;;  %v1523_v18 = vrot.slane %v1522_v5, 4  ;;  %v1542_v29 = vsel %vm3393_vm3, %v1537_v22, %v1541_v4  ;;  %v1570_v50 = vsel %vm3393_vm3, %v1565_v42, %v1569_v14  ;;  %v953_v4 = vshll.u32 %v894_v60, 16  ;;  %v899_v14 = vld [vmem:[%s3340_s25 + $0x2c] sm:$0x1]  ;;  %v3116_v42 = vld [vmem:[%s3340_s25 + $0x28] ss:$8 sps:$4 sm:$0xff]  }
  0x4f   : > { %2851 = vmatprep.subr.bf16.mxu1 %v3106_v38  ;;  %v2599_v56 = vcombine.low %v1556_v46, %v1570_v50  ;;  %v959_v5 = vshll.u32 %v895_v62, 16  ;;  %v987_v39 = vshll.u32 %v899_v14, 16  ;;  %v984_v50 = vor.u32 %v983_v41, %v980_v40  ;;  %v2664_v14 = vld [vmem:[%s3340_s25 + $0x8] sm:$0xf]  ;;  %v2673_v41 = vld [vmem:[%s3340_s25 + $0x2c] sm:$0x1] }
  0x50   : > { %v1528_v26 = vsel %vm3393_vm3, %v1523_v18, %v1527_v63  ;;  %2914 = vmatpush3.bf16.msra.mxu0 %v3103_v61  ;;  %v928_v61 = vor.u32 %v927_v52, %v924_v51  ;;  %v936_v63 = vshrl.u32 %v892_v58, 16  ;;  %v955_v13 = vrot.slane %v953_v4, 5  ;;  %v902_v51 = vld [vmem:[%s3340_s25 + $0x38] sm:$0xf]  ;;  %v903_v52 = vld [vmem:[%s3340_s25 + $0x3c] sm:$0x1] }
  0x51   : > { %2844 = vmatmul.mubr.msk.bf16.gmra.mrb[4].mxu1 %vm655_vm0, %v3105_v1  ;;  %v2598_v32 = vcombine.low %v1528_v26, %v1542_v29  ;;  %2915 = vmatprep.subr.bf16.mxu0 %v3107_v16  ;;  %v961_v15 = vrot.slane %v959_v5, 5  ;;  %v897_v26 = vld [vmem:[%s3340_s25 + $0x24] sm:$0x1]  ;;  %v964_v29 = vshrl.u32 %v896_v25, 16  ;;  %v989_v46 = vrot.slane %v987_v39, 5  ;;  %v3549_v25 = vld [vmem:[%s3632_s1 + $0x110] sm:$0xff]  }
  0x52   : > { %2852 = vmatpush3.bf16.msra.mxu1 %v3106_v38  ;;  %v891_v38 = vld [vmem:[%s3340_s25 + $0xc] sm:$0x1]  ;;  %v929_v6 = vrot.slane %v928_v61, 4  ;;  %v938_v7 = vrot.slane %v936_v63, 4  ;;  %v956_v21 = vor.u32 %v955_v13, %v952_v12  ;;  %v1006_v58 = vshrl.u32 %v902_v51, 16  ;;  %v3126_v12 = vld [vmem:[%s3632_s1 + $0x100] sm:$0xff]  }
  0x53   : > { %2853 = vmatprep.subr.bf16.mxu1 %v3108_v59  ;;  %2907 = vmatprep.mubr.msk.bf16.mxu0 %vm655_vm0, %v2598_v32  ;;  %v931_v45 = vshll.u32 %v891_v38, 16  ;;  %v973_v32 = vshll.u32 %v897_v26, 16  ;;  %v966_v37 = vrot.slane %v964_v29, 4  ;;  %v969_v38 = vrot.slane %v967_v30, 5  ;;  %v3128_v26 = vld [vmem:[%s3340_s25 + $0xb0] ss:$8 sps:$4 sm:$0xff]  }
  0x54   : > { %2916 = vmatpush3.bf16.msra.mxu0 %v3107_v16  ;;  %v942_v18 = vor.u32 %v941_v8, %v938_v7  ;;  %v957_v23 = vrot.slane %v956_v21, 4  ;;  %v985_v60 = vrot.slane %v984_v50, 4  ;;  %v1015_v62 = vshll.u32 %v903_v52, 16  ;;  %v3118_v7 = vld [vmem:[%s3340_s25 + $0x38] ss:$8 sps:$4 sm:$0xff]   ;;  %v3127_v21 = vld [vmem:[%s3632_s1 + $0x108] sm:$0xff]  }
  0x55   : > { %v933_v53 = vrot.slane %v931_v45, 5  ;;  %2917 = vmatprep.subr.bf16.mxu0 %v3109_v31  ;;  %2908 = vmatmul.mubr.msk.bf16.gmra.mrb[4].mxu0 %vm655_vm0, %v2599_v56  ;;  %v970_v44 = vor.u32 %v969_v38, %v966_v37  ;;  %v975_v45 = vrot.slane %v973_v32, 5  ;;  %v1008_v0 = vrot.slane %v1006_v58, 4  ;;  %v2665_v29 = vld [vmem:[%s3340_s25 + $0xc] sm:$0x1] }
  0x56   : > { %2854 = vmatpush3.bf16.msra.mxu1 %v3108_v59  ;;  %v893_v59 = vld [vmem:[%s3340_s25 + $0x14] sm:$0x1]  ;;  %2919 = vmatprep.mubr.msk.bf16.mxu0 %vm655_vm0, %v3110_v54  ;;  %v943_v22 = vrot.slane %v942_v18, 4  ;;  %v995_v54 = vshll.u32 %v900_v47, 16  ;;  %v990_v3 = vsel %vm3393_vm3, %v985_v60, %v989_v46  ;;  %v1003_v5 = vrot.slane %v1001_v57, 5 }
  0x57   : > { %2863 = vmatprep.subr.bf16.mxu1 %v3449_v17  ;;  %v945_v1 = vshll.u32 %v893_v59, 16  ;;  %v934_v16 = vsel %vm3393_vm3, %v929_v6, %v933_v53  ;;  %v992_v53 = vshrl.u32 %v900_v47, 16  ;;  %v971_v56 = vrot.slane %v970_v44, 4  ;;  %v2666_v30 = vld [vmem:[%s3340_s25 + $0x10] sm:$0xf] }
  0x58   : > { %2918 = vmatpush3.bf16.msra.mxu0 %v3109_v31  ;;  %v2504_v20 = vcombine.low %v920_v11, %v934_v16  ;;  %v962_v31 = vsel %vm3393_vm3, %v957_v23, %v961_v15  ;;  %v1009_v59 = vshll.u32 %v902_v51, 16  ;;  %v997_v61 = vrot.slane %v995_v54, 5  ;;  %v3122_v16 = vld [vmem:[%s3340_s25 + $0x90] ss:$8 sps:$4 sm:$0xff]   ;;  %v3124_v23 = vld [vmem:[%s3340_s25 + $0xa0] ss:$8 sps:$4 sm:$0xff]  }
  0x59   : > { %v947_v9 = vrot.slane %v945_v1, 5  ;;  %2927 = vmatprep.subr.bf16.mxu0 %v3113_v55  ;;  %v976_v63 = vsel %vm3393_vm3, %v971_v56, %v975_v45  ;;  %v1017_v6 = vrot.slane %v1015_v62, 5  ;;  %v2012_v32 = vshrl.u32 %v2664_v14, 16  ;;  %v2672_v38 = vld [vmem:[%s3340_s25 + $0x28] sm:$0xf] }
  0x5a   : > { %2855 = vmatprep.mubr.msk.bf16.mxu1 %vm655_vm0, %v2504_v20  ;;  %v1011_v1 = vrot.slane %v1009_v59, 5  ;;  %v2506_v8 = vcombine.low %v976_v63, %v990_v3  ;;  %v2015_v33 = vshll.u32 %v2664_v14, 16  ;;  %v2021_v34 = vshll.u32 %v2665_v29, 16  ;;  %v2669_v58 = vld [vmem:[%s3340_s25 + $0x1c] sm:$0x1] }
  0x5b   : > { %v948_v27 = vsel %vm3393_vm3, %v943_v22, %v947_v9  ;;  %v3125_v22 = vld [vmem:[%s3340_s25 + $0x60] ss:$8 sps:$4 sm:$0xff]   ;;  %v2014_v39 = vrot.slane %v2012_v32, 4  ;;  %v2068_v50 = vshrl.u32 %v2672_v38, 16  ;;  %v2071_v51 = vshll.u32 %v2672_v38, 16 }
  0x5c   : > { %v2505_v35 = vcombine.low %v948_v27, %v962_v31  ;;  %v1012_v9 = vor.u32 %v1011_v1, %v1008_v0  ;;  %v3131_v27 = vld [vmem:[%s3340_s25 + $0x80] ss:$8 sps:$4 sm:$0xff]   ;;  %v2667_v31 = vld [vmem:[%s3340_s25 + $0x14] sm:$0x1]  ;;  %v2017_v40 = vrot.slane %v2015_v33, 5  ;;  %v2023_v44 = vrot.slane %v2021_v34, 5 }
  0x5d   : > { %2920 = vmatmul.mubr.msk.bf16.vlgmr.msra.gmra.mrb[0].mxu0 %vm655_vm0, %v3112_v19  ;;  %v3123_v19 = vld [vmem:[%s3340_s25 + $0x50] ss:$8 sps:$4 sm:$0xff]   ;;  %v2035_v37 = vshll.u32 %v2667_v31, 16  ;;  %v2077_v52 = vshll.u32 %v2673_v41, 16  ;;  %v2091_v57 = vshll.u32 %v2675_v48, 16  ;;  %v2070_v60 = vrot.slane %v2068_v50, 4 }
  0x5e   : > { %2928 = vmatpush3.bf16.msra.mxu0 %v3113_v55  ;;  %2856 = vmatmul.mubr.msk.bf16.vlgmr.msra.gmra.mrb[0].mxu1 %vm655_vm0, %v2505_v35  ;;  %v3121_v55 = vld [vmem:[%s3632_s1 + $0xf8] sm:$0xff]   ;;  %v1013_v13 = vrot.slane %v1012_v9, 4  ;;  %v2026_v35 = vshrl.u32 %v2666_v30, 16  ;;  %v2670_v62 = vld [vmem:[%s3340_s25 + $0x20] sm:$0xf] }
  0x5f   : > { %2929 = vmatprep.subr.bf16.mxu0 %v3115_v24  ;;  %2864 = vmatpush3.bf16.msra.mxu1 %v3449_v17  ;;  %v994_v17 = vrot.slane %v992_v53, 4  ;;  %v2037_v47 = vrot.slane %v2035_v37, 5  ;;  %v2668_v53 = vld [vmem:[%s3340_s25 + $0x18] sm:$0xf]  ;;  %v2671_v9 = vld [vmem:[%s3340_s25 + $0x24] sm:$0x1] }
  0x60   : > { %2923 = vmatprep.mubr.msk.bf16.mxu0 %vm655_vm0, %v3116_v42  ;;  %2865 = vmatprep.subr.bf16.mxu1 %v3114_v36  ;;  %v1018_v18 = vsel %vm3393_vm3, %v1013_v13, %v1017_v6  ;;  %v2674_v42 = vld [vmem:[%s3340_s25 + $0x30] sm:$0xf]  ;;  %v2028_v45 = vrot.slane %v2026_v35, 4  ;;  %v2043_v6 = vshll.u32 %v2668_v53, 16  ;;  %v2676_v13 = vld [vmem:[%s3340_s25 + $0x38] sm:$0xf] }
  0x61   : > { %v998_v4 = vor.u32 %v997_v61, %v994_v17  ;;  %2859 = vmatprep.mubr.msk.bf16.mxu1 %vm655_vm0, %v2506_v8  ;;  %v2085_v56 = vshll.u32 %v2674_v42, 16  ;;  %v2073_v17 = vrot.slane %v2071_v51, 5  ;;  %v2079_v61 = vrot.slane %v2077_v52, 5  ;;  %v2678_v14 = vld [vmem:[%s3340_s25 + $0x40] sm:$0xf] }
  0x62   : > { %2930 = vmatpush3.bf16.msra.mxu0 %v3115_v24  ;;  %v3129_v24 = vld [vmem:[%s3340_s25 + $0x70] ss:$8 sps:$4 sm:$0xff]   ;;  %v2679_v32 = vld [vmem:[%s3340_s25 + $0x44] sm:$0x1]  ;;  %v2099_v33 = vshll.u32 %v2676_v13, 16  ;;  %v2110_v41 = vshrl.u32 %v2678_v14, 16 }
  0x63   : > { %2931 = vmatprep.subr.bf16.mxu0 %v3119_v43  ;;  %2866 = vmatpush3.bf16.msra.mxu1 %v3114_v36  ;;  %v999_v11 = vrot.slane %v998_v4, 4  ;;  %v2029_v36 = vshll.u32 %v2666_v30, 16  ;;  %v2087_v1 = vrot.slane %v2085_v56, 5  ;;  %v2074_v4 = vor.u32 %v2073_v17, %v2070_v60 }
  0x64   : > { %2867 = vmatprep.subr.bf16.mxu1 %v3117_v49 }
  0x65   : > { %2924 = vmatmul.mubr.msk.bf16.gmra.mrb[4].mxu0 %vm655_vm0, %v3118_v7  ;;  %v1004_v15 = vsel %vm3393_vm3, %v999_v11, %v1003_v5  ;;  %v2031_v46 = vrot.slane %v2029_v36, 5  ;;  %v2040_v5 = vshrl.u32 %v2668_v53, 16  ;;  %v2049_v11 = vshll.u32 %v2669_v58, 16 }
  0x66   : > { %2932 = vmatpush3.bf16.msra.mxu0 %v3119_v43  ;;  %v2507_v20 = vcombine.low %v1004_v15, %v1018_v18  ;;  %2935 = vmatprep.mubr.msk.bf16.mxu0 %vm655_vm0, %v3123_v19  ;;  %v3130_v43 = vld [vmem:[%s3340_s25 + $0xc0] ss:$8 sps:$4 sm:$0xff]   ;;  %v2045_v19 = vrot.slane %v2043_v6, 5 }
  0x67   : > { %2933 = vmatprep.subr.bf16.mxu0 %v3121_v55  ;;  %2868 = vmatpush3.bf16.msra.mxu1 %v3117_v49  ;;  %v2018_v49 = vor.u32 %v2017_v40, %v2014_v39  ;;  %v2032_v54 = vor.u32 %v2031_v46, %v2028_v45  ;;  %v2042_v18 = vrot.slane %v2040_v5, 4  ;;  %v2051_v30 = vrot.slane %v2049_v11, 5 }
  0x68   : > { %2869 = vmatprep.subr.bf16.mxu1 %v3120_v2  ;;  %2860 = vmatmul.mubr.msk.bf16.gmra.mrb[4].mxu1 %vm655_vm0, %v2507_v20  ;;  %v2101_v40 = vrot.slane %v2099_v33, 5 }
  0x69   : > { %2871 = vmatprep.mubr.msk.bf16.mxu1 %vm655_vm0, %v3122_v16  ;;  %v2019_v59 = vrot.slane %v2018_v49, 4  ;;  %v2033_v63 = vrot.slane %v2032_v54, 4  ;;  %v2075_v16 = vrot.slane %v2074_v4, 4 }
  0x6a   : > { %2934 = vmatpush3.bf16.msra.mxu0 %v3121_v55  ;;  %v2082_v55 = vshrl.u32 %v2674_v42, 16  ;;  %v2113_v42 = vshll.u32 %v2678_v14, 16 }
  0x6b   : > { %2943 = vmatprep.subr.bf16.mxu0 %v3126_v12  ;;  %2870 = vmatpush3.bf16.msra.mxu1 %v3120_v2  ;;  %v2093_v2 = vrot.slane %v2091_v57, 5  ;;  %v2024_v3 = vsel %vm3393_vm3, %v2019_v59, %v2023_v44  ;;  %v2038_v7 = vsel %vm3393_vm3, %v2033_v63, %v2037_v47  ;;  %v2112_v47 = vrot.slane %v2110_v41, 4 }
  0x6c   : > { %2959 = vmatprep.subr.bf16.mxu1 %v3126_v12  ;;  %v2084_v0 = vrot.slane %v2082_v55, 4  ;;  %v2688_v15 = vcombine.low %v2024_v3, %v2038_v7 }
  0x6d   : > { %2936 = vmatmul.mubr.msk.bf16.vlgmr.msra.gmra.mrb[0].mxu0 %vm655_vm0, %v3125_v22  ;;  %v2057_v22 = vshll.u32 %v2670_v62, 16 }
  0x6e   : > { %2944 = vmatpush3.bf16.msra.mxu0 %v3126_v12  ;;  %2939 = vmatprep.mubr.msk.bf16.mxu0 %vm655_vm0, %v3129_v24  ;;  %v2088_v8 = vor.u32 %v2087_v1, %v2084_v0  ;;  %v2080_v24 = vsel %vm3393_vm3, %v2075_v16, %v2079_v61 }
  0x6f   : > { %2945 = vmatprep.subr.bf16.mxu0 %v3127_v21  ;;  %v2059_v31 = vrot.slane %v2057_v22, 5 }
  0x70   : > { %2872 = vmatmul.mubr.msk.bf16.vlgmr.msra.gmra.mrb[0].mxu1 %vm655_vm0, %v3124_v23  ;;  %v2089_v20 = vrot.slane %v2088_v8, 4  ;;  %v2677_v23 = vld [vmem:[%s3340_s25 + $0x3c] sm:$0x1] }
  0x71   : > { %2963 = vmatpush3.bf16.msra.mxu1 %v3126_v12  ;;  %2875 = vmatprep.mubr.msk.bf16.mxu1 %vm655_vm0, %v3128_v26  ;;  %v2054_v12 = vshrl.u32 %v2670_v62, 16  ;;  %v2046_v26 = vor.u32 %v2045_v19, %v2042_v18  ;;  %v2105_v37 = vshll.u32 %v2677_v23, 16 }
  0x72   : > { %2946 = vmatpush3.bf16.msra.mxu0 %v3127_v21  ;;  %2960 = vmatprep.subr.bf16.mxu1 %v3127_v21  ;;  %v2094_v29 = vsel %vm3393_vm3, %v2089_v20, %v2093_v2 }
  0x73   : > { %2947 = vmatprep.subr.bf16.mxu0 %v3549_v25  ;;  %v2690_v34 = vcombine.low %v2080_v24, %v2094_v29  ;;  %v2047_v35 = vrot.slane %v2046_v26, 4  ;;  %v2107_v48 = vrot.slane %v2105_v37, 5 }
  0x75   : > { %2940 = vmatmul.mubr.msk.bf16.gmra.mrb[4].mxu0 %vm655_vm0, %v3131_v27  ;;  %2964 = vmatpush3.bf16.msra.mxu1 %v3127_v21  ;;  %v2056_v21 = vrot.slane %v2054_v12, 4  ;;  %v2063_v27 = vshll.u32 %v2671_v9, 16  ;;  %v2052_v44 = vsel %vm3393_vm3, %v2047_v35, %v2051_v30  ;;  %v2700_v9 = vld [vmem:[%s3633_s2] ss:$0 sm:$0xff] }
  0x76   : > { %2948 = vmatpush3.bf16.msra.mxu0 %v3549_v25  ;;  %2961 = vmatprep.subr.bf16.mxu1 %v3549_v25 }
  0x77   : > { %2949 = vmatprep.subr.bf16.mxu0 %v3557_v28  ;;  %2951 = vmatprep.mubr.msk.bf16.mxu0 %vm655_vm0, %v2688_v15  ;;  %v2060_v38 = vor.u32 %v2059_v31, %v2056_v21  ;;  %v2065_v39 = vrot.slane %v2063_v27, 5 }
  0x78   : > { %2876 = vmatmul.mubr.msk.bf16.gmra.mrb[4].mxu1 %vm655_vm0, %v3130_v43  ;;  %v2119_v43 = vshll.u32 %v2679_v32, 16 }
  0x79   : > { %2965 = vmatpush3.bf16.msra.mxu1 %v3549_v25  ;;  %v2096_v25 = vshrl.u32 %v2676_v13, 16  ;;  %2955 = vmatprep.mubr.msk.bf16.mxu1 %vm655_vm0, %v2690_v34  ;;  %v2061_v45 = vrot.slane %v2060_v38, 4 }
  0x7a   : > { %2950 = vmatpush3.bf16.msra.mxu0 %v3557_v28  ;;  %2962 = vmatprep.subr.bf16.mxu1 %v3557_v28  ;;  %v2121_v53 = vrot.slane %v2119_v43, 5 }
  0x7b   : > { %v2098_v36 = vrot.slane %v2096_v25, 4  ;;  %v2066_v49 = vsel %vm3393_vm3, %v2061_v45, %v2065_v39 }
  0x7c   : > { %v2689_v51 = vcombine.low %v2052_v44, %v2066_v49 }
  0x7d   : > { %2966 = vmatpush3.bf16.msra.mxu1 %v3557_v28  ;;  %v2102_v46 = vor.u32 %v2101_v40, %v2098_v36  ;;  %v2115_v28 = vrot.slane %v2113_v42, 5 }
  0x7e   : > { %2952 = vmatmul.mubr.msk.bf16.vlgmr.msra.gmra.mrb[0].mxu0 %vm655_vm0, %v2689_v51 }
  0x7f   : > { %v2103_v50 = vrot.slane %v2102_v46, 4  ;;  %v2116_v52 = vor.u32 %v2115_v28, %v2112_v47 }
  0x81   : > { %v2108_v54 = vsel %vm3393_vm3, %v2103_v50, %v2107_v48  ;;  %v2117_v55 = vrot.slane %v2116_v52, 4 }
  0x83   : > { %v2122_v56 = vsel %vm3393_vm3, %v2117_v55, %v2121_v53 }
  0x84   : > { %v2691_v57 = vcombine.low %v2108_v54, %v2122_v56 }
  0x86   : > { %2956 = vmatmul.mubr.msk.bf16.vlgmr.msra.gmra.mrb[8].mxu1 %vm655_vm0, %v2691_v57 }
 0x143   : > { %v2873_v58 = vpop.f32.mrb[0].mxu1 }
 0x144   : > { %v1257_v59 = vpop.f32.mrb[1].mxu1 }
 0x145   : > { %v2874_v60 = vpop.f32.mrb[2].mxu1 }
 0x146   : > { %v1260_v61 = vpop.f32.mrb[3].mxu1 }
 0x148   : > { %v2941_v17 = vpop.f32.mrb[4].mxu0 }
 0x149   : > { %v1972_v62 = vpop.f32.mrb[5].mxu0 }
 0x14a   : > { %v2942_v63 = vpop.f32.mrb[6].mxu0 }
 0x14b   : > { %v1975_v0 = vpop.f32.mrb[7].mxu0  ;;  %v2877_v1 = vpop.f32.mrb[4].mxu1 }
 0x14c   : > { %v2971_v2 = vadd.f32 %v2941_v17, %v2877_v1  ;;  %v1273_v3 = vpop.f32.mrb[5].mxu1 }
 0x14d   : > { %v2973_v4 = vadd.f32 %v1972_v62, %v1273_v3  ;;  %v2878_v5 = vpop.f32.mrb[6].mxu1 }
 0x14e   : > { %v2975_v10 = vadd.f32 %v2942_v63, %v2878_v5  ;;  %v1276_v6 = vpop.f32.mrb[7].mxu1 }
 0x14f   : > { %v2977_v7 = vadd.f32 %v1975_v0, %v1276_v6 }
 0x151   : > { %v2953_v8 = vpop.f32.mrb[0].mxu0 }
 0x152   : > { %v2967_v11 = vadd.f32 %v2953_v8, %v2873_v58  ;;  %v2214_v12 = vpop.f32.mrb[1].mxu0 }
 0x153   : > { %v2968_v13 = vadd.f32 %v2214_v12, %v1257_v59  ;;  %v2954_v15 = vpop.f32.mrb[2].mxu0 }
 0x154   : > { %v2273_v16 = vadd.f32 %v2967_v11, %v2700_v9  ;;  %v2969_v18 = vadd.f32 %v2954_v15, %v2874_v60  ;;  %v2217_v19 = vpop.f32.mrb[3].mxu0 }
 0x155   : > { %v2271_v20 = vadd.f32 %v2968_v13, %v2700_v9  ;;  %v2970_v21 = vadd.f32 %v2217_v19, %v1260_v61 }
 0x156   : > { %v2274_v23 = vadd.f32 %v2969_v18, %v2700_v9  ;;  %v2281_v14 = vmax.f32 %v2273_v16, 0.0 }
 0x157   : > { %v2272_v27 = vadd.f32 %v2970_v21, %v2700_v9  ;;  %v2279_v32 = vmax.f32 %v2271_v20, 0.0 }
 0x158   : > { %v2282_v29 = vmax.f32 %v2274_v23, 0.0 }
 0x159   : > { %v2957_v22 = vpop.f32.mrb[8].mxu1  ;;  %v2280_v34 = vmax.f32 %v2272_v27, 0.0 }
 0x15a   : > { %v2972_v24 = vadd.f32 %v2971_v2, %v2957_v22  ;;  %v2230_v26 = vpop.f32.mrb[9].mxu1  ;;  %v2728_v37 = vpack.c.bf16 %v2282_v29, %v2281_v14 }
 0x15b   : > { %v2974_v25 = vadd.f32 %v2973_v4, %v2230_v26  ;;  %v2958_v30 = vpop.f32.mrb[10].mxu1  ;;  %v2723_v40 = vpack.c.bf16 %v2280_v34, %v2279_v32 }
 0x15c   : > { %v2277_v31 = vadd.f32 %v2972_v24, %v2700_v9  ;;  %v2976_v33 = vadd.f32 %v2975_v10, %v2958_v30  ;;  %v2233_v35 = vpop.f32.mrb[11].mxu1  ;;  %2740 = vst [vmem:[%s573_s26 + $0x8] sm:$0xff] %v2728_v37  }
 0x15d   : > { %v2275_v36 = vadd.f32 %v2974_v25, %v2700_v9  ;;  %v2978_v38 = vadd.f32 %v2977_v7, %v2233_v35  ;;  %2724 = vst [vmem:[%s573_s26] sm:$0xff] %v2723_v40  }
 0x15e   : > { %v2278_v39 = vadd.f32 %v2976_v33, %v2700_v9  ;;  %v2285_v42 = vmax.f32 %v2277_v31, 0.0 }
 0x15f   : > { %v2276_v41 = vadd.f32 %v2978_v38, %v2700_v9  ;;  %v2283_v44 = vmax.f32 %v2275_v36, 0.0 }
 0x160   : > { %v2286_v43 = vmax.f32 %v2278_v39, 0.0 }
 0x161   : > { %v2284_v45 = vmax.f32 %v2276_v41, 0.0 }
 0x162   : > { %v2738_v46 = vpack.c.bf16 %v2286_v43, %v2285_v42 }
 0x163   : > { %v2733_v47 = vpack.c.bf16 %v2284_v45, %v2283_v44 }
 0x164   : > { %2742 = vst [vmem:[%s573_s26 + $0x18] sm:$0xff] %v2738_v46  }
 0x165   : > { %2741 = vst [vmem:[%s573_s26 + $0x10] sm:$0xff] %v2733_v47  }
 0x166 PF: > { %s13_s16 = sadd.s32 1, %s3172_s16   ;;  %s3637_s12 = smov %s3160_s13 }
 0x167   : > { %p10_p10 = scmp.ge.s32.totalorder %s13_s16, 4   ;;  %s3638_s13 = smov %s3229_s20 }
 0x168   : > { %s3639_s14 = smov %s3168_s15  ;;  %s3640_s15 = smov %s3642_s17 }
 0x169   :  { %12 = sbr.rel (!%p10_p10) target bundleno = 3 (0x3), region = 135 }

// kernel: preact_block_forward.7
= control target key start
LH: loop header
LB: loop body
LE: loop exit
PB: predicated region body
PF: predicated region fallthrough
CT: control target
= control target key end

     0   :  { %8 = vsyncpa [#allocation4], 0  ;;  %s4103_s0 = inlined_call_operand.vmem [shape: bf16[1,2,10,10,128], index: 0, kind: input, shape index: {}]   ;;  %s4104_s1 = inlined_call_operand.vmem [shape: bf16[9,128,128], index: 1, kind: input, shape index: {}]   ;;  %s4105_s2 = inlined_call_operand.vmem [shape: bf16[2,64,128], index: 2, kind: input, shape index: {}]   ;;  %s4106_s3 = inlined_call_operand.hbm [shape: f32[2,64,128], index: 3, kind: output, shape index: {}]  }
   0x1   :  { %10 = vsyncpa [#allocation4 + $0x1], 0  ;;  %s3463_s12 = smov 0   ;;  %s3465_s13 = smov 0  }
   0x2   :  { %s3467_s14 = smov 0   ;;  %s3469_s15 = smov 0  }
   0x3   :  { %s3471_s16 = smov 0   ;;  %s3473_s17 = smov 0  }
   0x4 LB: > { %s2454_s18 = sadd.s32 4294967295, %s3438_s17   ;;  %s2455_s19 = sadd.s32 4294967294, %s3438_s17   ;;  %s3438_s17 = sphi %s3473_s17, %s16_s17   ;;  %s3434_s16 = sphi %s3471_s16, %s4117_s16   ;;  %s3430_s15 = sphi %s3469_s15, %s4116_s15   ;;  %s3426_s14 = sphi %s3467_s14, %s4115_s14   ;;  %s3422_s13 = sphi %s3465_s13, %s4114_s13   ;;  %s3418_s12 = sphi %s3463_s12, %s4113_s12  }
   0x5   : > { %s35_s20 = sadd.s32 1, %s3434_s16  ;;  %s128_s21 = sadd.s32 1, %s3426_s14 }
   0x6   : > { %p37_p0 = scmp.ge.s32.totalorder %s35_s20, 2  ;;  %p138_p1 = scmp.ne.s32.totalorder %s3426_s14, %s3422_s13 }
   0x7   : > { %p139_p2 = scmp.eq.s32.totalorder %s2454_s18, 1  ;;  %p144_p3 = scmp.ne.s32.totalorder %s3422_s13, %s3418_s12 }
   0x8   : > { %s4119_s20 = smov (%p37_p0, %s35_s20), 0  ;;  %p145_p5 = scmp.eq.s32.totalorder %s2455_s19, 1 }
   0x9   : > { %p3503_p4 = por %p139_p2, %p138_p1  ;;  %s123_s23 = ssub.s32 %s3434_s16, %s4119_s20 }
   0xa   : > { %p2459_p6 = scmp.ge.s32.totalorder %s3438_s17, 1  ;;  %p126_p7 = scmp.eq.s32.totalorder %s123_s23, 0 }
   0xb   : > { %p3510_p8 = por %p145_p5, %p144_p3  ;;  %p197_p9 = scmp.lt.s32.totalorder %s3438_s17, 3 }
   0xc   : > { %s3516_s25 = scalar_select %p126_p7, %s3426_s14, %s128_s21  }
   0xd   : > { %p198_p10 = pnand %p2459_p6, %p197_p9 }
   0xe   : > { %v3276_v0 = vld [vmem:[%s4104_s1] sm:$0xff] (!%p198_p10)   ;;  %v3278_v2 = vld [vmem:[%s4104_s1 + $0x8] sm:$0xff] (!%p198_p10)   ;;  %p240_p11 = scmp.lt.s32.totalorder (!%p198_p10), %s3430_s15, 1  ;;  %v3280_v4 = vld [vmem:[%s4104_s1 + $0x10] sm:$0xff] (!%p198_p10)   ;;  %vm471_vm0 = vsmask.f32 (!%p198_p10), 3328 }
   0xf   : > { %201 = sbr.rel (%p198_p10) target bundleno = 410 (0x19a), region = 32  ;;  %v3277_v1 = vld [vmem:[%s4104_s1 + $0x100] sm:$0xff] (!%p198_p10)   ;;  %2922 = vmatprep.subr.bf16.mxu1 (!%p198_p10), %v3276_v0  ;;  %v3279_v3 = vld [vmem:[%s4104_s1 + $0x108] sm:$0xff] (!%p198_p10)   ;;  %v3281_v5 = vld [vmem:[%s4104_s1 + $0x110] sm:$0xff] (!%p198_p10)   ;;  %vm472_vm1 = vsmask.f32 (!%p198_p10), 7440 }
  0x10   : > { %3018 = vmatprep.subr.bf16.mxu0 (!%p198_p10), %v3277_v1  ;;  %2923 = vmatpush3.bf16.msra.mxu1 (!%p198_p10), %v3276_v0  ;;  %v3282_v6 = vld [vmem:[%s4104_s1 + $0x18] sm:$0xff] (!%p198_p10)   ;;  %v3284_v8 = vld [vmem:[%s4104_s1 + $0x20] sm:$0xff] (!%p198_p10)   ;;  %v3286_v10 = vld [vmem:[%s4104_s1 + $0x28] sm:$0xff] (!%p198_p10)   ;;  %vm764_vm3 = vcmask (!%p198_p10), 1042432   ;;  %vm765_vm4 = vcmask (!%p198_p10), 1046532   ;;  %s237_s23 = sand.u32 (!%p198_p10), 1, %s3422_s13  }
  0x11   : > { %3019 = vmatpush3.bf16.msra.mxu0 (!%p198_p10), %v3277_v1  ;;  %2924 = vmatprep.subr.bf16.mxu1 (!%p198_p10), %v3278_v2  ;;  %v3283_v7 = vld [vmem:[%s4104_s1 + $0x118] sm:$0xff] (!%p198_p10)   ;;  %v3285_v9 = vld [vmem:[%s4104_s1 + $0x120] sm:$0xff] (!%p198_p10)   ;;  %v3287_v12 = vld [vmem:[%s4104_s1 + $0x128] sm:$0xff] (!%p198_p10)   ;;  %s4057_s4 = scalar_lea.sflag (!%p198_p10), [#allocation4], %s237_s23  ;;  %s3440_s6 = smov (!%p198_p10), [#allocation3]  }
  0x12   : > { %3020 = vmatprep.subr.bf16.mxu0 (!%p198_p10), %v3279_v3  ;;  %v3288_v18 = vld [vmem:[%s4104_s1 + $0x30] sm:$0xff] (!%p198_p10)   ;;  %v3290_v27 = vld [vmem:[%s4104_s1 + $0x38] sm:$0xff] (!%p198_p10)   ;;  %vm3589_vm2 = vmor (!%p198_p10), %vm471_vm0, %vm472_vm1  ;;  %s3364_s7 = sshll.u32 (!%p198_p10), %s3440_s6, 4  ;;  %s3365_s7 = int_to_ptr.vmem [resolvable:$false] %s3364_s7 }
  0x13   : > { %v3289_v23 = vld [vmem:[%s4104_s1 + $0x130] sm:$0xff] (!%p198_p10)   ;;  %v3291_v30 = vld [vmem:[%s4104_s1 + $0x138] sm:$0xff] (!%p198_p10)   ;;  %v3293_v50 = vld [vmem:[%s4104_s1 + $0x40] sm:$0xff] (!%p198_p10)   ;;  %s3366_s9 = scalar_lea.vmem (!%p198_p10), %s3365_s7, 2048 }
  0x14   : > { %2925 = vmatpush3.bf16.msra.mxu1 (!%p198_p10), %v3278_v2  ;;  %v3294_v55 = vld [vmem:[%s4104_s1 + $0x140] sm:$0xff] (!%p198_p10)   ;;  %v3296_v63 = vld [vmem:[%s4104_s1 + $0x48] sm:$0xff] (!%p198_p10)   ;;  %vm3693_vm5 = vmor (!%p198_p10), %vm764_vm3, %vm765_vm4 }
  0x15   : > { %3021 = vmatpush3.bf16.msra.mxu0 (!%p198_p10), %v3279_v3  ;;  %2926 = vmatprep.subr.bf16.mxu1 (!%p198_p10), %v3280_v4  ;;  %v3297_v3 = vld [vmem:[%s4104_s1 + $0x148] sm:$0xff] (!%p198_p10)   ;;  %v3354_v33 = vld [vmem:[%s4104_s1 + $0x210] sm:$0xff] (!%p198_p10)  }
  0x16   : > { %s3538_s11 = scalar_select %p240_p11, %s3430_s15, 1  ;;  %3022 = vmatprep.subr.bf16.mxu0 %v3281_v5 }
  0x18   : > { %2927 = vmatpush3.bf16.msra.mxu1 %v3280_v4  ;;  %s3218_s26 = smul.u32 80, %s3538_s11 }
  0x19   : > { %3023 = vmatpush3.bf16.msra.mxu0 %v3281_v5  ;;  %2928 = vmatprep.subr.bf16.mxu1 %v3282_v6  ;;  %v3298_v5 = vld [vmem:[%s4104_s1 + $0x50] sm:$0xff]  }
  0x1a   : > { %3024 = vmatprep.subr.bf16.mxu0 %v3283_v7  ;;  %s3559_s8 = scalar_lea.vmem %s4103_s0, %s3218_s26  ;;  %s2460_s26 = sshll.u32 %s237_s23, 6 }
  0x1b   : > { %v3292_v11 = vld [vmem:[%s3559_s8] ss:$8 sps:$4 sm:$0xff]   ;;  %v3567_v14 = vld [vmem:[%s3559_s8 + $0xc] sm:$0x1]  ;;  %v2578_v15 = vld [vmem:[%s3559_s8 + $0x10] sm:$0xf] }
  0x1c   : > { %2929 = vmatpush3.bf16.msra.mxu1 %v3282_v6  ;;  %2938 = vmatprep.mubr.bf16.mxu1 %v3292_v11  ;;  %v2576_v13 = vld [vmem:[%s3559_s8 + $0x8] sm:$0xf]  ;;  %v3574_v19 = vld [vmem:[%s3559_s8 + $0x14] sm:$0x1]  ;;  %v1150_v20 = vshll.u32 %v3567_v14, 16  ;;  %v1155_v21 = vshrl.u32 %v2578_v15, 16 }
  0x1d   : > { %3025 = vmatpush3.bf16.msra.mxu0 %v3283_v7  ;;  %2930 = vmatprep.subr.bf16.mxu1 %v3284_v8  ;;  %v1141_v16 = vshrl.u32 %v2576_v13, 16  ;;  %v1144_v17 = vshll.u32 %v2576_v13, 16  ;;  %v1158_v22 = vshll.u32 %v2578_v15, 16  ;;  %v1164_v26 = vshll.u32 %v3574_v19, 16  ;;  %v2580_v36 = vld [vmem:[%s3559_s8 + $0x18] sm:$0xf] }
  0x1e   : > { %3026 = vmatprep.subr.bf16.mxu0 %v3285_v9  ;;  %v1157_v28 = vrot.slane %v1155_v21, 4  ;;  %v1152_v32 = vrot.slane %v1150_v20, 5  ;;  %v3595_v37 = vld [vmem:[%s3559_s8 + $0x1c] sm:$0x1]  ;;  %v2582_v39 = vld [vmem:[%s3559_s8 + $0x20] sm:$0xf] }
  0x1f   : > { %v1143_v24 = vrot.slane %v1141_v16, 4  ;;  %v1146_v25 = vrot.slane %v1144_v17, 5  ;;  %v1160_v29 = vrot.slane %v1158_v22, 5  ;;  %v1166_v35 = vrot.slane %v1164_v26, 5  ;;  %v3599_v40 = vld [vmem:[%s3559_s8 + $0x24] sm:$0x1] }
  0x20   : > { %2931 = vmatpush3.bf16.msra.mxu1 %v3284_v8  ;;  %v1169_v41 = vshrl.u32 %v2580_v36, 16  ;;  %v1172_v43 = vshll.u32 %v2580_v36, 16  ;;  %v1178_v44 = vshll.u32 %v3595_v37, 16  ;;  %v1183_v45 = vshrl.u32 %v2582_v39, 16  ;;  %v3295_v56 = vld [vmem:[%s3559_s8 + $0x10] ss:$8 sps:$4 sm:$0xff]  }
  0x21   : > { %3027 = vmatpush3.bf16.msra.mxu0 %v3285_v9  ;;  %2932 = vmatprep.subr.bf16.mxu1 %v3286_v10  ;;  %v1147_v31 = vor.u32 %v1146_v25, %v1143_v24  ;;  %v1161_v34 = vor.u32 %v1160_v29, %v1157_v28  ;;  %v1186_v48 = vshll.u32 %v2582_v39, 16  ;;  %v1192_v49 = vshll.u32 %v3599_v40, 16  ;;  %v3299_v8 = vld [vmem:[%s4104_s1 + $0x150] sm:$0xff]   ;;  %v3306_v9 = vld [vmem:[%s3559_s8 + $0x20] ss:$8 sps:$4 sm:$0xff]   ;;  %v3300_v11 = vld [vmem:[%s4104_s1 + $0x58] sm:$0xff]  }
  0x22   : > { %3028 = vmatprep.subr.bf16.mxu0 %v3287_v12  ;;  %v1171_v47 = vrot.slane %v1169_v41, 4  ;;  %v1174_v52 = vrot.slane %v1172_v43, 5  ;;  %v1185_v53 = vrot.slane %v1183_v45, 4  ;;  %v1180_v59 = vrot.slane %v1178_v44, 5  ;;  %v3639_v13 = vld [vmem:[%s3559_s8 + $0x2c] sm:$0x1] }
  0x23   : > { %v1148_v38 = vrot.slane %v1147_v31, 4  ;;  %v1162_v42 = vrot.slane %v1161_v34, 4  ;;  %v1188_v57 = vrot.slane %v1186_v48, 5  ;;  %v1194_v60 = vrot.slane %v1192_v49, 5  ;;  %v2586_v15 = vld [vmem:[%s3559_s8 + $0x30] sm:$0xf] }
  0x24   : > { %2933 = vmatpush3.bf16.msra.mxu1 %v3286_v10  ;;  %v1175_v58 = vor.u32 %v1174_v52, %v1171_v47  ;;  %v1432_v6 = vrot.slane %v3567_v14, 5  ;;  %v1436_v7 = vrot.slane %v3574_v19, 5  ;;  %v1440_v10 = vrot.slane %v3595_v37, 5  ;;  %v3643_v16 = vld [vmem:[%s3559_s8 + $0x34] sm:$0x1]  ;;  %v3301_v24 = vld [vmem:[%s4104_s1 + $0x158] sm:$0xff]  }
  0x25   : > { %3029 = vmatpush3.bf16.msra.mxu0 %v3287_v12  ;;  %2934 = vmatprep.subr.bf16.mxu1 %v3288_v18  ;;  %v1153_v46 = vsel %vm3589_vm2, %v1148_v38, %v1152_v32  ;;  %v1167_v51 = vsel %vm3589_vm2, %v1162_v42, %v1166_v35  ;;  %v1189_v61 = vor.u32 %v1188_v57, %v1185_v53  ;;  %v2584_v12 = vld [vmem:[%s3559_s8 + $0x28] sm:$0xf]  ;;  %v1206_v20 = vshll.u32 %v3639_v13, 16  ;;  %v3302_v25 = vld [vmem:[%s4104_s1 + $0x60] sm:$0xff]   ;;  %v3309_v34 = vld [vmem:[%s3559_s8 + $0x30] ss:$8 sps:$4 sm:$0xff]  }
  0x26   : > { %3030 = vmatprep.subr.bf16.mxu0 %v3289_v23  ;;  %v2608_v54 = vcombine.low %v1153_v46, %v1167_v51  ;;  %v1176_v62 = vrot.slane %v1175_v58, 4  ;;  %v1197_v17 = vshrl.u32 %v2584_v12, 16  ;;  %v1211_v21 = vshrl.u32 %v2586_v15, 16  ;;  %v2588_v35 = vld [vmem:[%s3559_s8 + $0x38] sm:$0xf]  ;;  %v3303_v42 = vld [vmem:[%s4104_s1 + $0x160] sm:$0xff]  }
  0x27   : > { %v1190_v0 = vrot.slane %v1189_v61, 4  ;;  %v1214_v22 = vshll.u32 %v2586_v15, 16  ;;  %v1208_v28 = vrot.slane %v1206_v20, 5  ;;  %v3656_v38 = vld [vmem:[%s3559_s8 + $0x3c] sm:$0x1]  ;;  %v1225_v44 = vshrl.u32 %v2588_v35, 16 }
  0x28   : > { %2935 = vmatpush3.bf16.msra.mxu1 %v3288_v18  ;;  %3034 = vmatprep.mubr.bf16.mxu0 %v2608_v54  ;;  %v1181_v1 = vsel %vm3589_vm2, %v1176_v62, %v1180_v59  ;;  %v1200_v18 = vshll.u32 %v2584_v12, 16  ;;  %v1199_v26 = vrot.slane %v1197_v17, 4  ;;  %v1213_v29 = vrot.slane %v1211_v21, 4  ;;  %v2590_v39 = vld [vmem:[%s3559_s8 + $0x40] sm:$0xf]  ;;  %v3304_v51 = vld [vmem:[%s4104_s1 + $0x68] sm:$0xff]  }
  0x29   : > { %3031 = vmatpush3.bf16.msra.mxu0 %v3289_v23  ;;  %2936 = vmatprep.subr.bf16.mxu1 %v3290_v27  ;;  %v1195_v2 = vsel %vm3589_vm2, %v1190_v0, %v1194_v60  ;;  %v1220_v23 = vshll.u32 %v3643_v16, 16  ;;  %v3660_v41 = vld [vmem:[%s3559_s8 + $0x44] sm:$0x1]  ;;  %v1228_v45 = vshll.u32 %v2588_v35, 16  ;;  %v1234_v46 = vshll.u32 %v3656_v38, 16  ;;  %v3305_v60 = vld [vmem:[%s4104_s1 + $0x168] sm:$0xff]  }
  0x2a   : > { %3032 = vmatprep.subr.bf16.mxu0 %v3291_v30  ;;  %v2609_v4 = vcombine.low %v1181_v1, %v1195_v2  ;;  %v1239_v48 = vshrl.u32 %v2590_v39, 16  ;;  %v1242_v49 = vshll.u32 %v2590_v39, 16  ;;  %v1227_v53 = vrot.slane %v1225_v44, 4  ;;  %v3679_v0 = vld [vmem:[%s3559_s8 + $0x4] sm:$0x1]  ;;  %v3307_v2 = vld [vmem:[%s4104_s1 + $0x70] sm:$0xff]  }
  0x2b   : > { %v1222_v31 = vrot.slane %v1220_v23, 5  ;;  %v1230_v54 = vrot.slane %v1228_v45, 5  ;;  %v457_v1 = vld [vmem:[%s3559_s8 + $0x8] sm:$0xf]  ;;  %v459_v45 = vld [vmem:[%s3559_s8 + $0x10] sm:$0xf] }
  0x2c   : > { %2937 = vmatpush3.bf16.msra.mxu1 %v3290_v27  ;;  %v1202_v27 = vrot.slane %v1200_v18, 5  ;;  %v1241_v57 = vrot.slane %v1239_v48, 4  ;;  %v1244_v58 = vrot.slane %v1242_v49, 5  ;;  %v489_v12 = vshrl.u32 %v457_v1, 16  ;;  %v461_v48 = vld [vmem:[%s3559_s8 + $0x18] sm:$0xf] }
  0x2d   : > { %3033 = vmatpush3.bf16.msra.mxu0 %v3291_v30  ;;  %2946 = vmatprep.subr.bf16.mxu1 %v3293_v50  ;;  %v1216_v30 = vrot.slane %v1214_v22, 5  ;;  %v1231_v62 = vor.u32 %v1230_v54, %v1227_v53  ;;  %v492_v15 = vshll.u32 %v457_v1, 16  ;;  %v1444_v18 = vrot.slane %v3599_v40, 5  ;;  %v3311_v19 = vld [vmem:[%s4104_s1 + $0x178] sm:$0xff]   ;;  %s239_s27 = scalar_lea.vmem [#allocation3], %s2460_s26 }
  0x2e   : > { %3042 = vmatprep.subr.bf16.mxu0 %v3294_v55  ;;  %v1203_v32 = vor.u32 %v1202_v27, %v1199_v26  ;;  %v3310_v26 = vld [vmem:[%s4104_s1 + $0x78] sm:$0xff]   ;;  %v491_v27 = vrot.slane %v489_v12, 4  ;;  %v503_v49 = vshrl.u32 %v459_v45, 16  ;;  %v506_v53 = vshll.u32 %v459_v45, 16  ;;  %s2337_s28 = sshll.u32 %s239_s27, 4  ;;  %s4053_s28 = int_to_ptr.vmem [resolvable:$true] %s2337_s28 }
  0x2f   : > { %2939 = vmatmul.mubr.bf16.vlgmr.msra.gmra.mrb[0].mxu1 %v3295_v56  ;;  %v1217_v36 = vor.u32 %v1216_v30, %v1213_v29  ;;  %v2620_v29 = vld [vmem:[%s3559_s8 + $0x8] sm:$0xe]  ;;  %s3360_s5 = scalar_lea.vmem %s4053_s28, 1024  ;;  %p3367_p1 = scmp.lt.s32.totalorder %s4053_s28, %s3365_s7 }
  0x30   : > { %2947 = vmatpush3.bf16.msra.mxu1 %v3293_v50  ;;  %3035 = vmatmul.mubr.bf16.vlgmr.msra.gmra.mrb[0].mxu0 %v2609_v4  ;;  %v1204_v43 = vrot.slane %v1203_v32, 4  ;;  %v1248_v50 = vshll.u32 %v3660_v41, 16  ;;  %v3686_v4 = vld [vmem:[%s3559_s8 + $0xc] sm:$0x1]  ;;  %v2628_v35 = vrot.slane %v2620_v29, 9  ;;  %p3361_p12 = scmp.ne.s32.totalorder %s4053_s28, %s3360_s5  ;;  %p3368_p2 = scmp.lt.s32.totalorder %s3366_s9, %s3360_s5 }
  0x31   : > { %2948 = vmatprep.subr.bf16.mxu1 %v3296_v63  ;;  %3043 = vmatpush3.bf16.msra.mxu0 %v3294_v55  ;;  %v1218_v47 = vrot.slane %v1217_v36, 4  ;;  %v1236_v55 = vrot.slane %v1234_v46, 5  ;;  %v498_v17 = vshll.u32 %v3686_v4, 16  ;;  %v3766_v29 = vld [vmem:[%s3559_s8 + $0x2c] sm:$0x1] }
  0x32   : > { %3044 = vmatprep.subr.bf16.mxu0 %v3297_v3  ;;  %2942 = vmatprep.mubr.bf16.mxu1 %v3306_v9  ;;  %v1209_v52 = vsel %vm3589_vm2, %v1204_v43, %v1208_v28  ;;  %v1250_v59 = vrot.slane %v1248_v50, 5  ;;  %v484_v9 = vshll.u32 %v3679_v0, 16  ;;  %v494_v28 = vrot.slane %v492_v15, 5  ;;  %p3362_p13 = pnand %p3361_p12, %p3503_p4  ;;  %p3369_p3 = por %p3368_p2, %p3367_p1 }
  0x33   : > { %v1223_v56 = vsel %vm3589_vm2, %v1218_v47, %v1222_v31  ;;  %v500_v43 = vrot.slane %v498_v17, 5  ;;  %v3715_v47 = vld [vmem:[%s3559_s8 + $0x14] sm:$0x1] }
  0x34   : > { %2949 = vmatpush3.bf16.msra.mxu1 %v3296_v63  ;;  %v2610_v61 = vcombine.low %v1209_v52, %v1223_v56  ;;  %v455_v63 = vld [vmem:[%s3559_s8] sm:$0xf]  ;;  %v486_v32 = vrot.slane %v484_v9, 5  ;;  %v495_v39 = vor.u32 %v494_v28, %v491_v27  ;;  %v3723_v52 = vld [vmem:[%s3559_s8 + $0x1c] sm:$0x1]  ;;  %v512_v14 = vshll.u32 %v3715_v47, 16  ;;  %p3363_p0 = pneg %p3362_p13 }
  0x35   : > { %2950 = vmatprep.subr.bf16.mxu1 %v3298_v5  ;;  %3045 = vmatpush3.bf16.msra.mxu0 %v3297_v3  ;;  %v1245_v3 = vor.u32 %v1244_v58, %v1241_v57  ;;  %v517_v56 = vshrl.u32 %v461_v48, 16  ;;  %v2622_v57 = vld [vmem:[%s3559_s8 + $0x18] sm:$0xe]  ;;  %v2623_v58 = vld [vmem:[%s3559_s8 + $0x20] sm:$0xe] }
  0x36   : > { %3046 = vmatprep.subr.bf16.mxu0 %v3299_v8  ;;  %3038 = vmatprep.mubr.bf16.mxu0 %v2610_v61  ;;  %v496_v50 = vrot.slane %v495_v39, 4  ;;  %v520_v61 = vshll.u32 %v461_v48, 16  ;;  %v2631_v9 = vrot.slane %v2623_v58, 9  ;;  %v3762_v27 = vld [vmem:[%s3559_s8 + $0x24] sm:$0x1]  ;;  %p3370_p5 = pnand %p3369_p3, %p3363_p0 }
  0x37   : > { %2943 = vmatmul.mubr.bf16.gmra.mrb[4].mxu1 %v3309_v34  ;;  %v1246_v20 = vrot.slane %v1245_v3, 4  ;;  %v2621_v34 = vld [vmem:[%s3559_s8 + $0x10] sm:$0xe]  ;;  %v519_v1 = vrot.slane %v517_v56, 4  ;;  %v2630_v3 = vrot.slane %v2622_v57, 9  ;;  %v1456_v56 = vrot.slane %v3656_v38, 5 }
  0x38   : > { %2951 = vmatpush3.bf16.msra.mxu1 %v3298_v5  ;;  %v475_v5 = vshrl.u32 %v455_v63, 16  ;;  %v2629_v44 = vrot.slane %v2621_v34, 9  ;;  %v465_v28 = vld [vmem:[%s3559_s8 + $0x28] sm:$0xf]  ;;  %v540_v34 = vshll.u32 %v3762_v27, 16 }
  0x39   : > { %2952 = vmatprep.subr.bf16.mxu1 %v3300_v11  ;;  %3047 = vmatpush3.bf16.msra.mxu0 %v3299_v8  ;;  %v478_v8 = vshll.u32 %v455_v63, 16  ;;  %v1251_v30 = vsel %vm3589_vm2, %v1246_v20, %v1250_v59  ;;  %v508_v59 = vrot.slane %v506_v53, 5  ;;  %v3312_v63 = vld [vmem:[%s4104_s1 + $0x80] sm:$0xff]   ;;  %v1441_v12 = vsel %vm3693_vm5, %v2630_v3, %v1440_v10  ;;  %v2624_v48 = vld [vmem:[%s3559_s8 + $0x28] sm:$0xe] }
  0x3a   : > { %3048 = vmatprep.subr.bf16.mxu0 %v3301_v24  ;;  %v477_v21 = vrot.slane %v475_v5, 4  ;;  %v548_v39 = vshll.u32 %v465_v28, 16  ;;  %v467_v58 = vld [vmem:[%s3559_s8 + $0x30] sm:$0xf] }
  0x3b   : > { %v480_v22 = vrot.slane %v478_v8, 5  ;;  %v522_v8 = vrot.slane %v520_v61, 5  ;;  %v3797_v61 = vld [vmem:[%s3559_s8 + $0x3c] sm:$0x1] }
  0x3c   : > { %2953 = vmatpush3.bf16.msra.mxu1 %v3300_v11  ;;  %v1232_v11 = vrot.slane %v1231_v62, 4  ;;  %v550_v53 = vrot.slane %v548_v39, 5 }
  0x3d   : > { %2954 = vmatprep.subr.bf16.mxu1 %v3302_v25  ;;  %3049 = vmatpush3.bf16.msra.mxu0 %v3301_v24  ;;  %v3308_v24 = vld [vmem:[%s4104_s1 + $0x170] sm:$0xff]   ;;  %v481_v31 = vor.u32 %v480_v22, %v477_v21  ;;  %v523_v17 = vor.u32 %v522_v8, %v519_v1  ;;  %v1445_v21 = vsel %vm3693_vm5, %v2631_v9, %v1444_v18  ;;  %v3314_v18 = vld [vmem:[%s4104_s1 + $0x88] sm:$0xff]   ;;  %v2626_v8 = vld [vmem:[%s3559_s8 + $0x38] sm:$0xe] }
  0x3e   : > { %3050 = vmatprep.subr.bf16.mxu0 %v3303_v42  ;;  %v2653_v10 = vcombine.low %v1441_v12, %v1445_v21  ;;  %v3320_v9 = vld [vmem:[%s4104_s1 + $0xa0] sm:$0xff]  }
  0x3f   : > { %v482_v46 = vrot.slane %v481_v31, 4  ;;  %v524_v22 = vrot.slane %v523_v17, 4  ;;  %v3321_v21 = vld [vmem:[%s4104_s1 + $0x1a0] sm:$0xff]  }
  0x40   : > { %2955 = vmatpush3.bf16.msra.mxu1 %v3302_v25  ;;  %v1237_v25 = vsel %vm3589_vm2, %v1232_v11, %v1236_v55  ;;  %v505_v55 = vrot.slane %v503_v49, 4  ;;  %v3313_v11 = vld [vmem:[%s4104_s1 + $0x180] sm:$0xff]   ;;  %v1452_v49 = vrot.slane %v3643_v16, 5 }
  0x41   : > { %2956 = vmatprep.subr.bf16.mxu1 %v3304_v51  ;;  %3051 = vmatpush3.bf16.msra.mxu0 %v3303_v42  ;;  %v2611_v36 = vcombine.low %v1237_v25, %v1251_v30  ;;  %v1433_v42 = vsel %vm3693_vm5, %v2628_v35, %v1432_v6  ;;  %v487_v6 = vsel %vm3589_vm2, %v482_v46, %v486_v32  ;;  %v3316_v30 = vld [vmem:[%s4104_s1 + $0x90] sm:$0xff]   ;;  %v545_v35 = vshrl.u32 %v465_v28, 16  ;;  %v3323_v28 = vld [vmem:[%s4104_s1 + $0x1a8] sm:$0xff]  }
  0x42   : > { %3052 = vmatprep.subr.bf16.mxu0 %v3305_v60  ;;  %v509_v5 = vor.u32 %v508_v59, %v505_v55  ;;  %v3318_v59 = vld [vmem:[%s4104_s1 + $0x98] sm:$0xff]  }
  0x43   : > { %3039 = vmatmul.mubr.bf16.gmra.mrb[4].mxu0 %v2611_v36  ;;  %v3317_v36 = vld [vmem:[%s4104_s1 + $0x190] sm:$0xff]  }
  0x44   : > { %2957 = vmatpush3.bf16.msra.mxu1 %v3304_v51  ;;  %v1437_v51 = vsel %vm3693_vm5, %v2629_v44, %v1436_v7  ;;  %v501_v7 = vsel %vm3589_vm2, %v496_v50, %v500_v43  ;;  %v510_v15 = vrot.slane %v509_v5, 4  ;;  %v554_v43 = vshll.u32 %v3766_v29, 16  ;;  %v3319_v50 = vld [vmem:[%s4104_s1 + $0x198] sm:$0xff]  }
  0x45   : > { %2958 = vmatprep.subr.bf16.mxu1 %v3307_v2  ;;  %3053 = vmatpush3.bf16.msra.mxu0 %v3305_v60  ;;  %v2652_v54 = vcombine.low %v1433_v42, %v1437_v51  ;;  %v514_v60 = vrot.slane %v512_v14, 5  ;;  %v2492_v62 = vcombine.low %v487_v6, %v501_v7  ;;  %v1448_v44 = vrot.slane %v3639_v13, 5  ;;  %v2625_v6 = vld [vmem:[%s3559_s8 + $0x30] sm:$0xe]  ;;  %v469_v7 = vld [vmem:[%s3559_s8 + $0x38] sm:$0xf] }
  0x46   : > { %3054 = vmatprep.subr.bf16.mxu0 %v3308_v24  ;;  %v547_v42 = vrot.slane %v545_v35, 4  ;;  %v542_v51 = vrot.slane %v540_v34, 5  ;;  %v556_v14 = vrot.slane %v554_v43, 5  ;;  %v2633_v55 = vrot.slane %v2625_v6, 9  ;;  %v740_v43 = vld [vmem:[%s3559_s8] sm:$0xe] }
  0x47   : > { %3058 = vmatprep.mubr.bf16.mxu0 %v2652_v54  ;;  %2962 = vmatprep.mubr.bf16.mxu1 %v2492_v62  ;;  %v515_v37 = vsel %vm3589_vm2, %v510_v15, %v514_v60  ;;  %v2632_v54 = vrot.slane %v2624_v48, 9  ;;  %v559_v62 = vshrl.u32 %v467_v58, 16  ;;  %v573_v5 = vshrl.u32 %v469_v7, 16  ;;  %v3325_v6 = vld [vmem:[%s4104_s1 + $0x1b0] sm:$0xff]  }
  0x48   : > { %2959 = vmatpush3.bf16.msra.mxu1 %v3307_v2  ;;  %v526_v2 = vshll.u32 %v3723_v52, 16  ;;  %v551_v16 = vor.u32 %v550_v53, %v547_v42  ;;  %v1453_v38 = vsel %vm3693_vm5, %v2633_v55, %v1452_v49  ;;  %v576_v17 = vshll.u32 %v469_v7, 16  ;;  %v3329_v53 = vld [vmem:[%s3559_s8 + $0x10] ss:$8 sps:$4 sm:$0xff]  }
  0x49   : > { %2960 = vmatprep.subr.bf16.mxu1 %v3310_v26  ;;  %3055 = vmatpush3.bf16.msra.mxu0 %v3308_v24  ;;  %v3315_v24 = vld [vmem:[%s4104_s1 + $0x188] sm:$0xff]   ;;  %v1449_v57 = vsel %vm3693_vm5, %v2632_v54, %v1448_v44  ;;  %v561_v12 = vrot.slane %v559_v62, 4  ;;  %v769_v34 = vrot.slane %v3679_v0, 5  ;;  %v781_v7 = vrot.slane %v3723_v52, 5  ;;  %v3328_v62 = vld [vmem:[%s4104_s1 + $0xc0] sm:$0xff]  }
  0x4a   : > { %3056 = vmatprep.subr.bf16.mxu0 %v3311_v19  ;;  %v528_v20 = vrot.slane %v526_v2, 5  ;;  %v552_v1 = vrot.slane %v551_v16, 4  ;;  %v2654_v2 = vcombine.low %v1449_v57, %v1453_v38  ;;  %v741_v44 = vld [vmem:[%s3559_s8 + $0x8] sm:$0xe]  ;;  %v743_v16 = vld [vmem:[%s3559_s8 + $0x18] sm:$0xe] }
  0x4b   : > { %v2505_v42 = vrot.slane %v741_v44, 9  ;;  %v3322_v0 = vld [vmem:[%s4104_s1 + $0xa8] sm:$0xff]   ;;  %v3327_v57 = vld [vmem:[%s4104_s1 + $0x1b8] sm:$0xff]  }
  0x4c   : > { %2961 = vmatpush3.bf16.msra.mxu1 %v3310_v26  ;;  %v529_v25 = vsel %vm3589_vm2, %v524_v22, %v528_v20  ;;  %v463_v26 = vld [vmem:[%s3559_s8 + $0x20] sm:$0xf]  ;;  %v3326_v38 = vld [vmem:[%s4104_s1 + $0xb8] sm:$0xff]  }
  0x4d   : > { %2970 = vmatprep.subr.bf16.mxu1 %v3312_v63  ;;  %3057 = vmatpush3.bf16.msra.mxu0 %v3311_v19  ;;  %v2493_v40 = vcombine.low %v515_v37, %v529_v25  ;;  %v531_v31 = vshrl.u32 %v463_v26, 16  ;;  %v534_v32 = vshll.u32 %v463_v26, 16  ;;  %v3788_v19 = vld [vmem:[%s3559_s8 + $0x34] sm:$0x1]  ;;  %v2627_v20 = vld [vmem:[%s3559_s8 + $0x40] sm:$0xe]  ;;  %v557_v37 = vsel %vm3589_vm2, %v552_v1, %v556_v14 }
  0x4e   : > { %3066 = vmatprep.subr.bf16.mxu0 %v3313_v11  ;;  %v568_v3 = vshll.u32 %v3788_v19, 16  ;;  %v2634_v26 = vrot.slane %v2626_v8, 9  ;;  %v3324_v14 = vld [vmem:[%s4104_s1 + $0xb0] sm:$0xff]   ;;  %v3331_v1 = vld [vmem:[%s3559_s8 + $0x20] ss:$8 sps:$4 sm:$0xff]  }
  0x4f   : > { %2963 = vmatmul.mubr.bf16.vlgmr.msra.gmra.mrb[0].mxu1 %v2493_v40  ;;  %v533_v45 = vrot.slane %v531_v31, 4  ;;  %v536_v46 = vrot.slane %v534_v32, 5  ;;  %v2635_v31 = vrot.slane %v2627_v20, 9  ;;  %v1460_v32 = vrot.slane %v3660_v41, 5 }
  0x50   : > { %3059 = vmatmul.mubr.bf16.vlgmr.msra.gmra.mrb[0].mxu0 %v2653_v10  ;;  %2971 = vmatpush3.bf16.msra.mxu1 %v3312_v63  ;;  %v562_v63 = vshll.u32 %v467_v58, 16  ;;  %v570_v22 = vrot.slane %v568_v3, 5  ;;  %v575_v10 = vrot.slane %v573_v5, 4  ;;  %v1457_v39 = vsel %vm3693_vm5, %v2634_v26, %v1456_v56  ;;  %v742_v56 = vld [vmem:[%s3559_s8 + $0x10] sm:$0xe] }
  0x51   : > { %3067 = vmatpush3.bf16.msra.mxu0 %v3313_v11  ;;  %2972 = vmatprep.subr.bf16.mxu1 %v3314_v18  ;;  %v537_v13 = vor.u32 %v536_v46, %v533_v45  ;;  %v773_v45 = vrot.slane %v3686_v4, 5  ;;  %v1461_v46 = vsel %vm3693_vm5, %v2635_v31, %v1460_v32  ;;  %v2504_v41 = vrot.slane %v740_v43, 9  ;;  %v3334_v26 = vld [vmem:[%s4104_s1 + $0xd0] sm:$0xff]   ;;  %v3336_v31 = vld [vmem:[%s4104_s1 + $0xd8] sm:$0xff]  }
  0x52   : > { %3068 = vmatprep.subr.bf16.mxu0 %v3315_v24  ;;  %v564_v15 = vrot.slane %v562_v63, 5  ;;  %3062 = vmatprep.mubr.bf16.mxu0 %v2654_v2  ;;  %v777_v58 = vrot.slane %v3715_v47, 5  ;;  %v3330_v47 = vld [vmem:[%s4104_s1 + $0x1c0] sm:$0xff]   ;;  %v3333_v2 = vld [vmem:[%s4104_s1 + $0x1c8] sm:$0xff]   ;;  %v785_v3 = vrot.slane %v3762_v27, 5  ;;  %v789_v5 = vrot.slane %v3766_v29, 5 }
  0x53   : > { %v538_v60 = vrot.slane %v537_v13, 4  ;;  %v770_v4 = vsel %vm3693_vm5, %v2504_v41, %v769_v34  ;;  %v793_v20 = vrot.slane %v3788_v19, 5  ;;  %v746_v27 = vld [vmem:[%s3559_s8 + $0x30] sm:$0xe]  ;;  %v747_v29 = vld [vmem:[%s3559_s8 + $0x38] sm:$0xe] }
  0x54   : > { %2973 = vmatpush3.bf16.msra.mxu1 %v3314_v18  ;;  %v565_v40 = vor.u32 %v564_v15, %v561_v12  ;;  %v578_v18 = vrot.slane %v576_v17, 5  ;;  %v745_v12 = vld [vmem:[%s3559_s8 + $0x28] sm:$0xe]  ;;  %v3335_v19 = vld [vmem:[%s4104_s1 + $0x1d0] sm:$0xff]   ;;  %v3907_v43 = vld [vmem:[%s3559_s8 + $0x1c] sm:$0x1] }
  0x55   : > { %3069 = vmatpush3.bf16.msra.mxu0 %v3315_v24  ;;  %2974 = vmatprep.subr.bf16.mxu1 %v3316_v30  ;;  %v543_v11 = vsel %vm3589_vm2, %v538_v60, %v542_v51  ;;  %v582_v24 = vshll.u32 %v3797_v61, 16  ;;  %v774_v51 = vsel %vm3693_vm5, %v2505_v42, %v773_v45  ;;  %v2507_v60 = vrot.slane %v743_v16, 9  ;;  %v3348_v34 = vld [vmem:[%s3559_s8 + $0x8] ss:$8 sps:$4 sm:$0xff]  }
  0x56   : > { %3070 = vmatprep.subr.bf16.mxu0 %v3317_v36  ;;  %v2494_v25 = vcombine.low %v543_v11, %v557_v37  ;;  %v566_v35 = vrot.slane %v565_v40, 4  ;;  %v2528_v13 = vcombine.low %v770_v4, %v774_v51  ;;  %v744_v11 = vld [vmem:[%s3559_s8 + $0x20] sm:$0xe]  ;;  %v2509_v17 = vrot.slane %v745_v12, 9  ;;  %v3345_v12 = vld [vmem:[%s4104_s1 + $0x1f0] sm:$0xff]  }
  0x57   : > { %v782_v63 = vsel %vm3693_vm5, %v2507_v60, %v781_v7  ;;  %v2508_v15 = vrot.slane %v744_v11, 9  ;;  %v2704_v4 = vld [vmem:[%s3559_s8 + $0x20] sm:$0xf] }
  0x58   : > { %2975 = vmatpush3.bf16.msra.mxu1 %v3316_v30  ;;  %v584_v30 = vrot.slane %v582_v24, 5  ;;  %2966 = vmatprep.mubr.bf16.mxu1 %v2494_v25  ;;  %v571_v48 = vsel %vm3589_vm2, %v566_v35, %v570_v22  ;;  %v790_v22 = vsel %vm3693_vm5, %v2509_v17, %v789_v5  ;;  %v2510_v24 = vrot.slane %v746_v27, 9  ;;  %v2700_v35 = vld [vmem:[%s3559_s8 + $0x10] sm:$0xf]  ;;  %v3339_v51 = vld [vmem:[%s4104_s1 + $0x1e0] sm:$0xff]  }
  0x59   : > { %3071 = vmatpush3.bf16.msra.mxu0 %v3317_v36  ;;  %2976 = vmatprep.subr.bf16.mxu1 %v3318_v59  ;;  %v579_v36 = vor.u32 %v578_v18, %v575_v10  ;;  %v786_v37 = vsel %vm3693_vm5, %v2508_v15, %v785_v3  ;;  %v3342_v10 = vld [vmem:[%s3559_s8 + $0x30] ss:$8 sps:$4 sm:$0xff]   ;;  %v2511_v25 = vrot.slane %v747_v29, 9  ;;  %v1804_v44 = vshrl.u32 %v2700_v35, 16 }
  0x5a   : > { %3072 = vmatprep.subr.bf16.mxu0 %v3319_v50  ;;  %v794_v40 = vsel %vm3693_vm5, %v2510_v24, %v793_v20  ;;  %v1807_v45 = vshll.u32 %v2700_v35, 16  ;;  %v1832_v16 = vshrl.u32 %v2704_v4, 16  ;;  %v2708_v20 = vld [vmem:[%s3559_s8 + $0x30] sm:$0xf] }
  0x5b   : > { %v580_v49 = vrot.slane %v579_v36, 4  ;;  %v3903_v36 = vld [vmem:[%s3559_s8 + $0x14] sm:$0x1]  ;;  %v1860_v24 = vshrl.u32 %v2708_v20, 16 }
  0x5c   : > { %2977 = vmatpush3.bf16.msra.mxu1 %v3318_v59  ;;  %v2506_v59 = vrot.slane %v742_v56, 9  ;;  %v3923_v56 = vld [vmem:[%s3559_s8 + $0x2c] sm:$0x1]  ;;  %v3343_v27 = vld [vmem:[%s4104_s1 + $0xf0] sm:$0xff]  }
  0x5d   : > { %3073 = vmatpush3.bf16.msra.mxu0 %v3319_v50  ;;  %2978 = vmatprep.subr.bf16.mxu1 %v3320_v9  ;;  %v2655_v50 = vcombine.low %v1457_v39, %v1461_v46  ;;  %v585_v54 = vsel %vm3589_vm2, %v580_v49, %v584_v30  ;;  %v3344_v30 = vld [vmem:[%s3559_s8 + $0x40] ss:$8 sps:$4 sm:$0xff]   ;;  %v2702_v39 = vld [vmem:[%s3559_s8 + $0x18] sm:$0xf]  ;;  %v1813_v46 = vshll.u32 %v3903_v36, 16  ;;  %v1809_v49 = vrot.slane %v1807_v45, 5 }
  0x5e   : > { %3074 = vmatprep.subr.bf16.mxu0 %v3321_v21  ;;  %v2495_v55 = vcombine.low %v571_v48, %v585_v54  ;;  %v778_v52 = vsel %vm3693_vm5, %v2506_v59, %v777_v58  ;;  %v1818_v41 = vshrl.u32 %v2702_v39, 16  ;;  %v1821_v42 = vshll.u32 %v2702_v39, 16  ;;  %v3338_v54 = vld [vmem:[%s4104_s1 + $0xe0] sm:$0xff]   ;;  %v3341_v58 = vld [vmem:[%s4104_s1 + $0x1e8] sm:$0xff]  }
  0x5f   : > { %3063 = vmatmul.mubr.bf16.gmra.mrb[4].mxu0 %v2655_v50  ;;  %v2529_v8 = vcombine.low %v778_v52, %v782_v63  ;;  %v1806_v48 = vrot.slane %v1804_v44, 4  ;;  %v1834_v52 = vrot.slane %v1832_v16, 4 }
  0x60   : > { %2979 = vmatpush3.bf16.msra.mxu1 %v3320_v9  ;;  %3082 = vmatprep.mubr.bf16.mxu0 %v3329_v53  ;;  %v3332_v9 = vld [vmem:[%s4104_s1 + $0xc8] sm:$0xff]   ;;  %v1820_v50 = vrot.slane %v1818_v41, 4  ;;  %v1823_v53 = vrot.slane %v1821_v42, 5  ;;  %v3958_v41 = vld [vmem:[%s3559_s8 + $0x44] sm:$0x1] }
  0x61   : > { %3075 = vmatpush3.bf16.msra.mxu0 %v3321_v21  ;;  %2980 = vmatprep.subr.bf16.mxu1 %v3322_v0  ;;  %v797_v21 = vrot.slane %v3797_v61, 5  ;;  %v2530_v61 = vcombine.low %v786_v37, %v790_v22  ;;  %v2710_v22 = vld [vmem:[%s3559_s8 + $0x38] sm:$0xf] }
  0x62   : > { %3076 = vmatprep.subr.bf16.mxu0 %v3323_v28  ;;  %2967 = vmatmul.mubr.bf16.gmra.mrb[4].mxu1 %v2495_v55  ;;  %v1815_v55 = vrot.slane %v1813_v46, 5  ;;  %v1824_v7 = vor.u32 %v1823_v53, %v1820_v50  ;;  %v2712_v46 = vld [vmem:[%s3559_s8 + $0x40] sm:$0xf] }
  0x63   : > { %2986 = vmatprep.mubr.bf16.mxu1 %v2528_v13  ;;  %v798_v18 = vsel %vm3693_vm5, %v2511_v25, %v797_v21  ;;  %v1810_v13 = vor.u32 %v1809_v49, %v1806_v48  ;;  %v3942_v21 = vld [vmem:[%s3559_s8 + $0x34] sm:$0x1]  ;;  %v2714_v48 = vld [vmem:[%s3559_s8 + $0x48] sm:$0xf]  ;;  %v3964_v49 = vld [vmem:[%s3559_s8 + $0x4c] sm:$0x1] }
  0x64   : > { %2981 = vmatpush3.bf16.msra.mxu1 %v3322_v0  ;;  %v2531_v32 = vcombine.low %v794_v40, %v798_v18  ;;  %v1827_v0 = vshll.u32 %v3907_v43, 16  ;;  %v1874_v40 = vshrl.u32 %v2710_v22, 16  ;;  %v1888_v50 = vshrl.u32 %v2712_v46, 16 }
  0x65   : > { %3077 = vmatpush3.bf16.msra.mxu0 %v3323_v28  ;;  %2982 = vmatprep.subr.bf16.mxu1 %v3324_v14  ;;  %v3337_v28 = vld [vmem:[%s4104_s1 + $0x1d8] sm:$0xff]  }
  0x66   : > { %3078 = vmatprep.subr.bf16.mxu0 %v3325_v6  ;;  %v1829_v59 = vrot.slane %v1827_v0, 5  ;;  %v1876_v39 = vrot.slane %v1874_v40, 4  ;;  %v1890_v16 = vrot.slane %v1888_v50, 4  ;;  %v2749_v40 = vld [vmem:[%s3559_s8 + $0x38] sm:$0xe] }
  0x67   : > { %v2751_v50 = vld [vmem:[%s3559_s8 + $0x48] sm:$0xe] }
  0x68   : > { %2983 = vmatpush3.bf16.msra.mxu1 %v3324_v14  ;;  %v3916_v14 = vld [vmem:[%s3559_s8 + $0x24] sm:$0x1] }
  0x69   : > { %3079 = vmatpush3.bf16.msra.mxu0 %v3325_v6  ;;  %2984 = vmatprep.subr.bf16.mxu1 %v3326_v38  ;;  %v2706_v6 = vld [vmem:[%s3559_s8 + $0x28] sm:$0xf] }
  0x6a   : > { %3080 = vmatprep.subr.bf16.mxu0 %v3327_v57  ;;  %v1846_v60 = vshrl.u32 %v2706_v6, 16 }
  0x6c   : > { %2985 = vmatpush3.bf16.msra.mxu1 %v3326_v38  ;;  %v1849_v38 = vshll.u32 %v2706_v6, 16  ;;  %v1848_v3 = vrot.slane %v1846_v60, 4  ;;  %v1897_v6 = vshll.u32 %v3958_v41, 16 }
  0x6d   : > { %3081 = vmatpush3.bf16.msra.mxu0 %v3327_v57  ;;  %2994 = vmatprep.subr.bf16.mxu1 %v3328_v62  ;;  %v1835_v57 = vshll.u32 %v2704_v4, 16  ;;  %v1891_v4 = vshll.u32 %v2712_v46, 16  ;;  %v3358_v46 = vld [vmem:[%s4104_s1 + $0x230] sm:$0xff]  }
  0x6e   : > { %3090 = vmatprep.subr.bf16.mxu0 %v3330_v47  ;;  %v1851_v5 = vrot.slane %v1849_v38, 5 }
  0x6f   : > { %2987 = vmatmul.mubr.bf16.vlgmr.msra.gmra.mrb[0].mxu1 %v2529_v8  ;;  %v1837_v63 = vrot.slane %v1835_v57, 5  ;;  %v1855_v8 = vshll.u32 %v3923_v56, 16  ;;  %v1893_v57 = vrot.slane %v1891_v4, 5 }
  0x70   : > { %3083 = vmatmul.mubr.bf16.vlgmr.msra.gmra.mrb[0].mxu0 %v3331_v1  ;;  %2995 = vmatpush3.bf16.msra.mxu1 %v3328_v62  ;;  %v3340_v62 = vld [vmem:[%s4104_s1 + $0xe8] sm:$0xff]   ;;  %v1841_v1 = vshll.u32 %v3916_v14, 16  ;;  %v1852_v17 = vor.u32 %v1851_v5, %v1848_v3 }
  0x71   : > { %3091 = vmatpush3.bf16.msra.mxu0 %v3330_v47  ;;  %2996 = vmatprep.subr.bf16.mxu1 %v3332_v9  ;;  %v1811_v47 = vrot.slane %v1810_v13, 4  ;;  %v1838_v11 = vor.u32 %v1837_v63, %v1834_v52  ;;  %v1857_v18 = vrot.slane %v1855_v8, 5  ;;  %v1905_v13 = vshll.u32 %v2714_v48, 16  ;;  %v3349_v52 = vld [vmem:[%s3559_s8 + $0x18] ss:$8 sps:$4 sm:$0xff]  }
  0x72   : > { %3092 = vmatprep.subr.bf16.mxu0 %v3333_v2  ;;  %2990 = vmatprep.mubr.bf16.mxu1 %v2530_v61  ;;  %v1843_v37 = vrot.slane %v1841_v1, 5  ;;  %v1869_v61 = vshll.u32 %v3942_v21, 16  ;;  %v1899_v63 = vrot.slane %v1897_v6, 5  ;;  %v2107_v6 = vrot.slane %v3923_v56, 5 }
  0x73   : > { %3086 = vmatprep.mubr.bf16.mxu0 %v3342_v10  ;;  %v3949_v10 = vld [vmem:[%s3559_s8 + $0x3c] sm:$0x1]  ;;  %v1839_v25 = vrot.slane %v1838_v11, 4  ;;  %v1907_v38 = vrot.slane %v1905_v13, 5  ;;  %v3351_v11 = vld [vmem:[%s4104_s1 + $0x208] sm:$0xff]   ;;  %v2123_v13 = vrot.slane %v3964_v49, 5 }
  0x74   : > { %2997 = vmatpush3.bf16.msra.mxu1 %v3332_v9  ;;  %v1816_v9 = vsel %vm3589_vm2, %v1811_v47, %v1815_v55  ;;  %v1871_v35 = vrot.slane %v1869_v61, 5  ;;  %v1894_v47 = vor.u32 %v1893_v57, %v1890_v16  ;;  %v2099_v61 = vrot.slane %v3907_v43, 5 }
  0x75   : > { %3093 = vmatpush3.bf16.msra.mxu0 %v3333_v2  ;;  %2998 = vmatprep.subr.bf16.mxu1 %v3334_v26  ;;  %v1825_v2 = vrot.slane %v1824_v7, 4  ;;  %v1844_v42 = vsel %vm3589_vm2, %v1839_v25, %v1843_v37  ;;  %v2095_v25 = vrot.slane %v3903_v36, 5  ;;  %v2759_v57 = vrot.slane %v2751_v50, 9 }
  0x76   : > { %3094 = vmatprep.subr.bf16.mxu0 %v3335_v19 }
  0x77   : > { %2991 = vmatmul.mubr.bf16.gmra.mrb[4].mxu1 %v2531_v32  ;;  %v1830_v15 = vsel %vm3589_vm2, %v1825_v2, %v1829_v59  ;;  %v1853_v32 = vrot.slane %v1852_v17, 4  ;;  %v2745_v17 = vld [vmem:[%s3559_s8 + $0x18] sm:$0xe] }
  0x78   : > { %3087 = vmatmul.mubr.bf16.gmra.mrb[4].mxu0 %v3344_v30  ;;  %2999 = vmatpush3.bf16.msra.mxu1 %v3334_v26  ;;  %v2732_v29 = vcombine.low %v1816_v9, %v1830_v15  ;;  %v1862_v26 = vrot.slane %v1860_v24, 4  ;;  %v1883_v30 = vshll.u32 %v3949_v10, 16  ;;  %v1895_v9 = vrot.slane %v1894_v47, 4  ;;  %v2744_v15 = vld [vmem:[%s3559_s8 + $0x10] sm:$0xe] }
  0x79   : > { %3095 = vmatpush3.bf16.msra.mxu0 %v3335_v19  ;;  %3000 = vmatprep.subr.bf16.mxu1 %v3336_v31  ;;  %v1863_v19 = vshll.u32 %v2708_v20, 16  ;;  %v1858_v7 = vsel %vm3589_vm2, %v1853_v32, %v1857_v18  ;;  %v3352_v20 = vld [vmem:[%s3559_s8 + $0x28] ss:$8 sps:$4 sm:$0xff]   ;;  %v2752_v24 = vrot.slane %v2744_v15, 9 }
  0x7a   : > { %3096 = vmatprep.subr.bf16.mxu0 %v3337_v28  ;;  %3010 = vmatprep.mubr.bf16.mxu1 %v3348_v34  ;;  %v1885_v45 = vrot.slane %v1883_v30, 5  ;;  %v2733_v3 = vcombine.low %v1844_v42, %v1858_v7  ;;  %v2115_v30 = vrot.slane %v3949_v10, 5  ;;  %v2746_v42 = vld [vmem:[%s3559_s8 + $0x20] sm:$0xe] }
  0x7b   : > { %3106 = vmatprep.mubr.bf16.mxu0 %v2732_v29  ;;  %v1865_v34 = vrot.slane %v1863_v19, 5  ;;  %v1900_v29 = vsel %vm3589_vm2, %v1895_v9, %v1899_v63  ;;  %v2753_v19 = vrot.slane %v2745_v17, 9  ;;  %v2096_v43 = vsel %vm3693_vm5, %v2752_v24, %v2095_v25 }
  0x7c   : > { %3001 = vmatpush3.bf16.msra.mxu1 %v3336_v31  ;;  %v3347_v31 = vld [vmem:[%s4104_s1 + $0x1f8] sm:$0xff]   ;;  %v2754_v4 = vrot.slane %v2746_v42, 9 }
  0x7d   : > { %3097 = vmatpush3.bf16.msra.mxu0 %v3337_v28  ;;  %3002 = vmatprep.subr.bf16.mxu1 %v3338_v54  ;;  %v1877_v28 = vshll.u32 %v2710_v22, 16  ;;  %v1866_v0 = vor.u32 %v1865_v34, %v1862_v26  ;;  %v2748_v22 = vld [vmem:[%s3559_s8 + $0x30] sm:$0xe]  ;;  %v2111_v26 = vrot.slane %v3942_v21, 5  ;;  %v3353_v21 = vld [vmem:[%s3559_s8 + $0x38] ss:$8 sps:$4 sm:$0xff]  }
  0x7e   : > { %3098 = vmatprep.subr.bf16.mxu0 %v3339_v51  ;;  %v2756_v18 = vrot.slane %v2748_v22, 9  ;;  %v3355_v34 = vld [vmem:[%s4104_s1 + $0x218] sm:$0xff]  }
  0x7f   : > { %v1879_v44 = vrot.slane %v1877_v28, 5  ;;  %v1867_v55 = vrot.slane %v1866_v0, 4  ;;  %v2757_v28 = vrot.slane %v2749_v40, 9  ;;  %v2747_v0 = vld [vmem:[%s3559_s8 + $0x28] sm:$0xe] }
  0x80   : > { %3003 = vmatpush3.bf16.msra.mxu1 %v3338_v54  ;;  %v1902_v54 = vshrl.u32 %v2714_v48, 16  ;;  %v2112_v10 = vsel %vm3693_vm5, %v2756_v18, %v2111_v26  ;;  %v2750_v48 = vld [vmem:[%s3559_s8 + $0x40] sm:$0xe]  ;;  %s2793_s8 = sshll.u32 %s3538_s11, 5  ;;  %s2794_s11 = sshll.u32 %s3430_s15, 10 }
  0x81   : > { %3099 = vmatpush3.bf16.msra.mxu0 %v3339_v51  ;;  %3004 = vmatprep.subr.bf16.mxu1 %v3340_v62  ;;  %v3346_v51 = vld [vmem:[%s4104_s1 + $0xf8] sm:$0xff]   ;;  %v1880_v53 = vor.u32 %v1879_v44, %v1876_v39  ;;  %v1872_v5 = vsel %vm3589_vm2, %v1867_v55, %v1871_v35  ;;  %v2116_v32 = vsel %vm3693_vm5, %v2757_v28, %v2115_v30  ;;  %v3356_v44 = vld [vmem:[%s4104_s1 + $0x220] sm:$0xff]   ;;  %v2758_v16 = vrot.slane %v2750_v48, 9  ;;  %s264_s21 = scalar_lea.vmem %s4105_s2, %s2793_s8  ;;  %s4051_s15 = scalar_lea.hbm %s4106_s3, %s2794_s11 }
  0x82   : > { %3100 = vmatprep.subr.bf16.mxu0 %v3341_v58  ;;  %v1904_v60 = vrot.slane %v1902_v54, 4  ;;  %v2778_v39 = vcombine.low %v2112_v10, %v2116_v32  ;;  %v2119_v54 = vrot.slane %v3958_v41, 5  ;;  %v3359_v55 = vld [vmem:[%s4104_s1 + $0x238] sm:$0xff]   ;;  %v2811_v15 = vld [vmem:[%s264_s21 + $0x8] sm:$0xff]  }
  0x83   : > { %v1881_v59 = vrot.slane %v1880_v53, 4  ;;  %v2755_v53 = vrot.slane %v2747_v0, 9  ;;  %v2813_v17 = vld [vmem:[%s264_s21 + $0x18] sm:$0xff]   ;;  %v2802_v18 = vunpack.c.h.bf16 %v2811_v15 }
  0x84   : > { %3005 = vmatpush3.bf16.msra.mxu1 %v3340_v62  ;;  %v3350_v62 = vld [vmem:[%s4104_s1 + $0x200] sm:$0xff]   ;;  %v1908_v1 = vor.u32 %v1907_v38, %v1904_v60  ;;  %v2120_v41 = vsel %vm3693_vm5, %v2758_v16, %v2119_v54  ;;  %v2809_v22 = vunpack.c.l.bf16 %v2813_v17 }
  0x85   : > { %3101 = vmatpush3.bf16.msra.mxu0 %v3341_v58  ;;  %3006 = vmatprep.subr.bf16.mxu1 %v3343_v27  ;;  %v1911_v58 = vshll.u32 %v3964_v49, 16  ;;  %v1886_v8 = vsel %vm3589_vm2, %v1881_v59, %v1885_v45  ;;  %v3357_v45 = vld [vmem:[%s4104_s1 + $0x228] sm:$0xff]   ;;  %v2108_v56 = vsel %vm3693_vm5, %v2755_v53, %v2107_v6  ;;  %v2124_v49 = vsel %vm3693_vm5, %v2759_v57, %v2123_v13 }
  0x86   : > { %3102 = vmatprep.subr.bf16.mxu0 %v3345_v12  ;;  %v2779_v7 = vcombine.low %v2120_v41, %v2124_v49 }
  0x87   : > { %v1913_v2 = vrot.slane %v1911_v58, 5 }
  0x88   : > { %3007 = vmatpush3.bf16.msra.mxu1 %v3343_v27  ;;  %v2734_v27 = vcombine.low %v1872_v5, %v1886_v8 }
  0x89   : > { %3103 = vmatpush3.bf16.msra.mxu0 %v3345_v12  ;;  %3008 = vmatprep.subr.bf16.mxu1 %v3346_v51  ;;  %v1909_v12 = vrot.slane %v1908_v1, 4 }
  0x8a   : > { %3104 = vmatprep.subr.bf16.mxu0 %v3347_v31 }
  0x8b   : > { %v1914_v37 = vsel %vm3589_vm2, %v1909_v12, %v1913_v2 }
  0x8c   : > { %3009 = vmatpush3.bf16.msra.mxu1 %v3346_v51  ;;  %v2735_v36 = vcombine.low %v1900_v29, %v1914_v37  ;;  %v2103_v51 = vrot.slane %v3916_v14, 5  ;;  %v2801_v29 = vunpack.c.l.bf16 %v2811_v15 }
  0x8d   : > { %3105 = vmatpush3.bf16.msra.mxu0 %v3347_v31  ;;  %3138 = vmatprep.subr.bf16.mxu1 %v3350_v62  ;;  %v2100_v31 = vsel %vm3693_vm5, %v2753_v19, %v2099_v61 }
  0x8e   : > { %3114 = vmatprep.subr.bf16.mxu0 %v3350_v62  ;;  %v2776_v35 = vcombine.low %v2096_v43, %v2100_v31  ;;  %v2104_v14 = vsel %vm3693_vm5, %v2754_v4, %v2103_v51 }
  0x8f   : > { %3011 = vmatmul.mubr.bf16.vlgmr.msra.gmra.mrb[0].mxu1 %v3349_v52  ;;  %v2777_v58 = vcombine.low %v2104_v14, %v2108_v56 }
  0x90   : > { %3107 = vmatmul.mubr.bf16.vlgmr.msra.gmra.mrb[0].mxu0 %v2733_v3  ;;  %3146 = vmatpush3.bf16.msra.mxu1 %v3350_v62 }
  0x91   : > { %3115 = vmatpush3.bf16.msra.mxu0 %v3350_v62  ;;  %3139 = vmatprep.subr.bf16.mxu1 %v3351_v11 }
  0x92   : > { %3116 = vmatprep.subr.bf16.mxu0 %v3351_v11  ;;  %3014 = vmatprep.mubr.bf16.mxu1 %v3352_v20  ;;  %v2796_v20 = vld [vmem:[%s264_s21] sm:$0xff]  }
  0x93   : > { %3110 = vmatprep.mubr.bf16.mxu0 %v2734_v27  ;;  %v2812_v27 = vld [vmem:[%s264_s21 + $0x10] sm:$0xff]   ;;  %v2797_v24 = vunpack.c.l.bf16 %v2796_v20  ;;  %v2798_v43 = vunpack.c.h.bf16 %v2796_v20 }
  0x94   : > { %3147 = vmatpush3.bf16.msra.mxu1 %v3351_v11  ;;  %v2805_v40 = vunpack.c.l.bf16 %v2812_v27 }
  0x95   : > { %3117 = vmatpush3.bf16.msra.mxu0 %v3351_v11  ;;  %3140 = vmatprep.subr.bf16.mxu1 %v3354_v33 }
  0x96   : > { %3118 = vmatprep.subr.bf16.mxu0 %v3354_v33 }
  0x97   : > { %3015 = vmatmul.mubr.bf16.gmra.mrb[4].mxu1 %v3353_v21 }
  0x98   : > { %3111 = vmatmul.mubr.bf16.gmra.mrb[4].mxu0 %v2735_v36  ;;  %3148 = vmatpush3.bf16.msra.mxu1 %v3354_v33  ;;  %v2810_v36 = vunpack.c.h.bf16 %v2813_v17 }
  0x99   : > { %3119 = vmatpush3.bf16.msra.mxu0 %v3354_v33  ;;  %3141 = vmatprep.subr.bf16.mxu1 %v3355_v34 }
  0x9a   : > { %3120 = vmatprep.subr.bf16.mxu0 %v3355_v34  ;;  %3130 = vmatprep.mubr.bf16.mxu0 %v2776_v35  ;;  %v2806_v35 = vunpack.c.h.bf16 %v2812_v27 }
  0x9b   : > { %3134 = vmatprep.mubr.bf16.mxu1 %v2778_v39 }
  0x9c   : > { %3149 = vmatpush3.bf16.msra.mxu1 %v3355_v34 }
  0x9d   : > { %3121 = vmatpush3.bf16.msra.mxu0 %v3355_v34  ;;  %3142 = vmatprep.subr.bf16.mxu1 %v3356_v44 }
  0x9e   : > { %3122 = vmatprep.subr.bf16.mxu0 %v3356_v44 }
  0xa0   : > { %3150 = vmatpush3.bf16.msra.mxu1 %v3356_v44 }
  0xa1   : > { %3123 = vmatpush3.bf16.msra.mxu0 %v3356_v44  ;;  %3143 = vmatprep.subr.bf16.mxu1 %v3357_v45 }
  0xa2   : > { %3124 = vmatprep.subr.bf16.mxu0 %v3357_v45 }
  0xa4   : > { %3151 = vmatpush3.bf16.msra.mxu1 %v3357_v45 }
  0xa5   : > { %3125 = vmatpush3.bf16.msra.mxu0 %v3357_v45  ;;  %3144 = vmatprep.subr.bf16.mxu1 %v3358_v46 }
  0xa6   : > { %3126 = vmatprep.subr.bf16.mxu0 %v3358_v46 }
  0xa8   : > { %3152 = vmatpush3.bf16.msra.mxu1 %v3358_v46 }
  0xa9   : > { %3127 = vmatpush3.bf16.msra.mxu0 %v3358_v46  ;;  %3145 = vmatprep.subr.bf16.mxu1 %v3359_v55 }
  0xaa   : > { %3128 = vmatprep.subr.bf16.mxu0 %v3359_v55 }
  0xac   : > { %3153 = vmatpush3.bf16.msra.mxu1 %v3359_v55 }
  0xad   : > { %3129 = vmatpush3.bf16.msra.mxu0 %v3359_v55 }
  0xaf   : > { %3135 = vmatmul.mubr.bf16.vlgmr.msra.gmra.mrb[8].mxu1 %v2779_v7 }
  0xb0   : > { %3131 = vmatmul.mubr.bf16.vlgmr.msra.gmra.mrb[0].mxu0 %v2777_v58 }
 0x162   : > { %v3012_v59 = vpop.f32.mrb[0].mxu1 }
 0x163   : > { %v1085_v60 = vpop.f32.mrb[1].mxu1 }
 0x164   : > { %v3013_v38 = vpop.f32.mrb[2].mxu1 }
 0x165   : > { %v1088_v62 = vpop.f32.mrb[3].mxu1 }
 0x16a   : > { %v3016_v52 = vpop.f32.mrb[4].mxu1 }
 0x16b   : > { %v3112_v47 = vpop.f32.mrb[4].mxu0  ;;  %v1101_v23 = vpop.f32.mrb[5].mxu1 }
 0x16c   : > { %v2046_v63 = vpop.f32.mrb[5].mxu0  ;;  %v3158_v1 = vadd.f32 %v3112_v47, %v3016_v52  ;;  %v3017_v5 = vpop.f32.mrb[6].mxu1 }
 0x16d   : > { %v3113_v2 = vpop.f32.mrb[6].mxu0  ;;  %v3160_v3 = vadd.f32 %v2046_v63, %v1101_v23  ;;  %v1104_v11 = vpop.f32.mrb[7].mxu1 }
 0x16e   : > { %v2049_v8 = vpop.f32.mrb[7].mxu0  ;;  %v3162_v9 = vadd.f32 %v3113_v2, %v3017_v5 }
 0x16f   : > { %v3164_v12 = vadd.f32 %v2049_v8, %v1104_v11 }
 0x182   : > { %v3136_v19 = vpop.f32.mrb[8].mxu1 }
 0x183   : > { %v3132_v37 = vpop.f32.mrb[0].mxu0  ;;  %v3159_v26 = vadd.f32 %v3158_v1, %v3136_v19  ;;  %v2256_v30 = vpop.f32.mrb[9].mxu1 }
 0x184   : > { %v3154_v25 = vadd.f32 %v3132_v37, %v3012_v59  ;;  %v2240_v61 = vpop.f32.mrb[1].mxu0  ;;  %v3161_v21 = vadd.f32 %v3160_v3, %v2256_v30  ;;  %v3137_v32 = vpop.f32.mrb[10].mxu1 }
 0x185   : > { %v3155_v28 = vadd.f32 %v2240_v61, %v1085_v60  ;;  %v3133_v33 = vpop.f32.mrb[2].mxu0  ;;  %v2312_v39 = vadd.f32 %v3159_v26, %v2809_v22  ;;  %v3163_v45 = vadd.f32 %v3162_v9, %v3137_v32  ;;  %v2259_v42 = vpop.f32.mrb[11].mxu1 }
 0x186   : > { %v2308_v31 = vadd.f32 %v3154_v25, %v2801_v29  ;;  %v3156_v10 = vadd.f32 %v3133_v33, %v3013_v38  ;;  %v2243_v34 = vpop.f32.mrb[3].mxu0  ;;  %v2310_v0 = vadd.f32 %v3161_v21, %v2805_v40  ;;  %v3165_v50 = vadd.f32 %v3164_v12, %v2259_v42 }
 0x187   : > { %v2306_v44 = vadd.f32 %v3155_v28, %v2797_v24  ;;  %v3157_v46 = vadd.f32 %v2243_v34, %v1088_v62  ;;  %2320 = vst [vmem:[%s239_s27 + $0x30] sm:$0xff] %v2312_v39  ;;  %v2313_v4 = vadd.f32 %v3163_v45, %v2810_v36 }
 0x188   : > { %2316 = vst [vmem:[%s239_s27 + $0x10] sm:$0xff] %v2308_v31  ;;  %v2309_v48 = vadd.f32 %v3156_v10, %v2802_v18  ;;  %2318 = vst [vmem:[%s239_s27 + $0x20] sm:$0xff] %v2310_v0  ;;  %v2311_v53 = vadd.f32 %v3165_v50, %v2806_v35 }
 0x189   : > { %2314 = vst [vmem:[%s239_s27] sm:$0xff] %v2306_v44  ;;  %v2307_v51 = vadd.f32 %v3157_v46, %v2798_v43  ;;  %2321 = vst [vmem:[%s239_s27 + $0x38] sm:$0xff] %v2313_v4 }
 0x18a   : > { %2317 = vst [vmem:[%s239_s27 + $0x18] sm:$0xff] %v2309_v48  ;;  %2319 = vst [vmem:[%s239_s27 + $0x28] sm:$0xff] %v2311_v53 }
 0x18b   : > { %2315 = vst [vmem:[%s239_s27 + $0x8] sm:$0xff] %v2307_v51 }
 0x18c   : > { %3373 = shalt.err (!%p3370_p5)
}
 0x18d   : > { %s3374_s10 = scalar_lea.hbm %s4051_s15, 1024  ;;  %s3378_s19 = scalar_lea.hbm %s4106_s3, 2048 }
 0x18e   : > { %p3375_p6 = scmp.ne.s32.totalorder %s4051_s15, %s3374_s10  ;;  %p3379_p10 = scmp.lt.u32.totalorder %s4051_s15, %s4106_s3 }
 0x18f   : > { %p3380_p11 = scmp.lt.u32.totalorder %s3378_s19, %s3374_s10  ;;  %p3382_p13 = scmp.lt.u32.totalorder %s3374_s10, %s4051_s15 }
 0x190   : > { %p3376_p7 = pnand %p3375_p6, %p3503_p4 }
 0x191   : > { %p3381_p12 = por %p3380_p11, %p3379_p10 }
 0x192   : > { %p3377_p9 = pneg %p3376_p7 }
 0x193   : > { %p3383_p0 = por %p3382_p13, %p3381_p12 }
 0x195   : > { %p3384_p1 = pnand %p3383_p0, %p3377_p9 }
 0x197   : > { %3387 = shalt.err (!%p3384_p1)
}
 0x198   : > { %s3441_s26 = smov 128   ;;  %s3442_s11 = smov 8  }
 0x199   : > { %3219 = dma.vmem_to_hbm [thread:$0]  (%p3503_p4), %s4053_s28, 1024, %s4051_s15, %s4057_s4, %s3441_s26, %s3441_s26, %s3442_s11  }
 0x19a PF: > { %p3225_p2 = scmp.ge.s32.totalorder %s3438_s17, 2  ;;  %s2352_s27 = sand.u32 1, %s3418_s12  }
 0x19b   : > { %s2353_s29 = scalar_lea.sflag [#allocation4], %s2352_s27 }
 0x19c   : > { %p3222_p3 = pnand %p3225_p2, %p3510_p8 }
 0x19e   : > { %3413 = dma.done.wait (!%p3222_p3), %s2353_s29, 1024  }
 0x19f   : > { %3415 = vsyncadd (!%p3222_p3), %s2353_s29, 4294966272  ;;  %s16_s17 = sadd.s32 1, %s3438_s17   ;;  %s4113_s12 = smov %s3422_s13 }
 0x1a0   : > { %p13_p5 = scmp.ge.s32.totalorder %s16_s17, 4   ;;  %s4114_s13 = smov %s3426_s14 }
 0x1a1   : > { %s4115_s14 = smov %s3516_s25  ;;  %s4116_s15 = smov %s3434_s16 }
 0x1a2   : > { %s4117_s16 = smov %s4119_s20  ;;  %15 = sbr.rel (!%p13_p5) target bundleno = 4 (0x4), region = 91 }
 0x1a9   :  { %2358 = vsyncpa [#allocation4], 1 }
 0x1aa   :  { %2360 = vsyncpa [#allocation4 + $0x1], 1 }

</bundles_post_ra>
